<compile_context>
chip_gen: v7x
topology: tpu7x:2x2x1
jax: 0.10.0
libtpu: 0.0.40
codegen_flags: <defaults>
</compile_context>

<pallas_src>
import jax
import jax.numpy as jnp
from jax.experimental import pallas as pl
from jax.experimental.pallas import tpu as pltpu


# ---------------------------------------------------------------------------
# Fused kernel: [pad -> conv3x3 -> BN -> ReLU] x 2, intermediate kept in VMEM
# ---------------------------------------------------------------------------
def _conv_block_kernel(x_ref, w1_ref, w2_ref, s1_ref, b1_ref, s2_ref, b2_ref,
                       o_ref, xpad_ref, mpad_ref):
    # x_ref:    (1, H, W, Cin)        f32 input tile (one batch element)
    # w1_ref:   (3, 3, Cin,  Cout)    bf16 HWIO weights, layer 1
    # w2_ref:   (3, 3, Cout, Cout)    bf16 HWIO weights, layer 2
    # s*/b*:    (1, Cout)             f32 folded BatchNorm scale / bias
    # o_ref:    (1, H, W, Cout)       f32 output
    # xpad_ref: (H+2, W+2, Cin)       f32 VMEM scratch (zero-padded input)
    # mpad_ref: (H+2, W+2, Cout)      f32 VMEM scratch (padded intermediate)
    _, H, W, Cin = x_ref.shape
    Cout = o_ref.shape[-1]
    HW = H * W

    w1 = w1_ref[...]
    w2 = w2_ref[...]

    # ---- layer 1: in-kernel zero pad -> 3x3 conv -> BN -> ReLU -------------
    xpad_ref[...] = jnp.zeros_like(xpad_ref)
    xpad_ref[1:H + 1, 1:W + 1, :] = x_ref[0]

    # TODO(synk): for large channel counts, widen the MXU K dim via an im2col
    #             slab (K = 9*Cin) instead of 9 K=Cin tap matmuls.
    acc = jnp.zeros((HW, Cout), jnp.float32)
    for kh in range(3):
        for kw in range(3):
            patch = xpad_ref[kh:kh + H, kw:kw + W, :].reshape(HW, Cin)
            acc = acc + jnp.dot(patch.astype(jnp.bfloat16), w1[kh, kw],
                                preferred_element_type=jnp.float32)
    y = jnp.maximum(acc * s1_ref[...] + b1_ref[...], 0.0)

    # ---- layer 2: intermediate stays in VMEM (no HBM round trip) -----------
    mpad_ref[...] = jnp.zeros_like(mpad_ref)
    mpad_ref[1:H + 1, 1:W + 1, :] = y.reshape(H, W, Cout)

    acc2 = jnp.zeros((HW, Cout), jnp.float32)
    for kh in range(3):
        for kw in range(3):
            patch = mpad_ref[kh:kh + H, kw:kw + W, :].reshape(HW, Cout)
            acc2 = acc2 + jnp.dot(patch.astype(jnp.bfloat16), w2[kh, kw],
                                  preferred_element_type=jnp.float32)
    y2 = jnp.maximum(acc2 * s2_ref[...] + b2_ref[...], 0.0)
    o_ref[...] = y2.reshape(1, H, W, Cout)


@jax.jit
def conv_block_forward(params, x_nchw):
    """conv_block forward: NCHW in, NCHW out (PyTorch semantics)."""
    x = jnp.transpose(x_nchw, (0, 2, 3, 1)).astype(jnp.float32)   # NCHW -> NHWC
    N, H, W, Cin = x.shape
    Cout = params["w1"].shape[-1]

    # bf16 weights (single-pass MXU); BN affine stays f32.
    w1 = params["w1"].astype(jnp.bfloat16)
    w2 = params["w2"].astype(jnp.bfloat16)
    s1 = params["s1"].reshape(1, Cout).astype(jnp.float32)
    b1 = params["b1"].reshape(1, Cout).astype(jnp.float32)
    s2 = params["s2"].reshape(1, Cout).astype(jnp.float32)
    b2 = params["b2"].reshape(1, Cout).astype(jnp.float32)

    # TODO(synk): for very large H*W*C, add a row-strip grid dimension with a
    #             2-row halo (manual DMA) so the per-step VMEM footprint stays
    #             within v7x's 64 MiB and the pipeline gets more overlap steps.
    out = pl.pallas_call(
        _conv_block_kernel,
        out_shape=jax.ShapeDtypeStruct((N, H, W, Cout), jnp.float32),
        grid=(N,),
        in_specs=[
            pl.BlockSpec((1, H, W, Cin), lambda b: (b, 0, 0, 0)),
            pl.BlockSpec((3, 3, Cin, Cout), lambda b: (0, 0, 0, 0)),
            pl.BlockSpec((3, 3, Cout, Cout), lambda b: (0, 0, 0, 0)),
            pl.BlockSpec((1, Cout), lambda b: (0, 0)),
            pl.BlockSpec((1, Cout), lambda b: (0, 0)),
            pl.BlockSpec((1, Cout), lambda b: (0, 0)),
            pl.BlockSpec((1, Cout), lambda b: (0, 0)),
        ],
        out_specs=pl.BlockSpec((1, H, W, Cout), lambda b: (b, 0, 0, 0)),
        scratch_shapes=[
            pltpu.VMEM((H + 2, W + 2, Cin), jnp.float32),
            pltpu.VMEM((H + 2, W + 2, Cout), jnp.float32),
        ],
        compiler_params=pltpu.CompilerParams(
            dimension_semantics=("parallel",),      # batch elems independent
            vmem_limit_bytes=64 * 1024 * 1024,
        ),
    )(x, w1, w2, s1, b1, s2, b2)
    return jnp.transpose(out, (0, 3, 1, 2))          # NHWC -> NCHW


# ---------------------------------------------------------------------------
# Pure-JAX reference (same bf16-operand / f32-accumulate math)
# ---------------------------------------------------------------------------
def ref_forward(params, x_nchw):
    def conv_bn_relu(x, w, scale, bias):
        y = jax.lax.conv_general_dilated(
            x.astype(jnp.bfloat16), w.astype(jnp.bfloat16),
            window_strides=(1, 1), padding="SAME",
            dimension_numbers=("NHWC", "HWIO", "NHWC"),
            preferred_element_type=jnp.float32)
        return jnp.maximum(y * scale + bias, 0.0)

    x = jnp.transpose(x_nchw, (0, 2, 3, 1)).astype(jnp.float32)
    out = conv_bn_relu(x, params["w1"], params["s1"], params["b1"])
    out = conv_bn_relu(out, params["w2"], params["s2"], params["b2"])
    return jnp.transpose(out, (0, 3, 1, 2))


# ---------------------------------------------------------------------------
# Deterministic parameters (inference-mode BatchNorm folded into scale/bias)
# ---------------------------------------------------------------------------
def _fold_bn(gamma, beta, mean, var, eps=1e-5):
    scale = gamma / jnp.sqrt(var + eps)
    return scale, beta - mean * scale


def make_params(key, ch_in, ch_out):
    ks = jax.random.split(key, 4)

    def conv_w(k, ci, co):
        # HWIO (torch OIHW weight transposed to (H, W, I, O))
        return 0.1 * jax.random.normal(k, (3, 3, ci, co), jnp.float32)

    def bn(k):
        kg, kb, km, kv = jax.random.split(k, 4)
        gamma = 1.0 + 0.1 * jax.random.normal(kg, (ch_out,), jnp.float32)
        beta = 0.1 * jax.random.normal(kb, (ch_out,), jnp.float32)
        mean = 0.1 * jax.random.normal(km, (ch_out,), jnp.float32)
        var = 1.0 + 0.1 * jax.random.uniform(kv, (ch_out,), jnp.float32)
        return _fold_bn(gamma, beta, mean, var)

    s1, b1 = bn(ks[2])
    s2, b2 = bn(ks[3])
    return dict(
        w1=conv_w(ks[0], ch_in, ch_out), s1=s1, b1=b1,
        w2=conv_w(ks[1], ch_out, ch_out), s2=s2, b2=b2,
    )


if __name__ == "__main__":
    key = jax.random.PRNGKey(0)
    N, CH_IN, CH_OUT, H, W = 2, 4, 8, 16, 16

    pkey, xkey = jax.random.split(key)
    params = make_params(pkey, CH_IN, CH_OUT)
    x = jax.random.normal(xkey, (N, CH_IN, H, W), jnp.float32)

    out = jax.block_until_ready(conv_block_forward(params, x))
    ref = jax.block_until_ready(ref_forward(params, x))

    assert out.shape == (N, CH_OUT, H, W), out.shape
    err = float(jnp.max(jnp.abs(out - ref)))
    assert err < 5e-3, f"mismatch vs reference: {err}"
    print("KERNEL_OK")
</pallas_src>

<mosaic_0001>
module attributes {stable_mosaic.version = 11 : i64} {
  func.func @_conv_block_kernel(%arg0: i32, %arg1: memref<1x16x16x4xf32, #tpu.memory_space<vmem>>, %arg2: memref<3x3x4x8xbf16, #tpu.memory_space<vmem>>, %arg3: memref<3x3x8x8xbf16, #tpu.memory_space<vmem>>, %arg4: memref<1x8xf32, #tpu.memory_space<vmem>>, %arg5: memref<1x8xf32, #tpu.memory_space<vmem>>, %arg6: memref<1x8xf32, #tpu.memory_space<vmem>>, %arg7: memref<1x8xf32, #tpu.memory_space<vmem>>, %arg8: memref<1x16x16x8xf32, #tpu.memory_space<vmem>>, %arg9: memref<18x18x4xf32, #tpu.memory_space<vmem>>, %arg10: memref<18x18x8xf32, #tpu.memory_space<vmem>>) attributes {dimension_semantics = [#tpu.dimension_semantics<parallel>], iteration_bounds = array<i64: 2>, scalar_prefetch = 0 : i64, scratch_operands = 2 : i64, tpu.core_type = #tpu.core_type<tc>, window_params = [{transform_indices = @transform_0, window_bounds = array<i64: 1, 16, 16, 4>}, {pipeline_mode = #tpu.pipeline_mode<synchronous>, transform_indices = @transform_1, window_bounds = array<i64: 3, 3, 4, 8>}, {pipeline_mode = #tpu.pipeline_mode<synchronous>, transform_indices = @transform_2, window_bounds = array<i64: 3, 3, 8, 8>}, {pipeline_mode = #tpu.pipeline_mode<synchronous>, transform_indices = @transform_3, window_bounds = array<i64: 1, 8>}, {pipeline_mode = #tpu.pipeline_mode<synchronous>, transform_indices = @transform_4, window_bounds = array<i64: 1, 8>}, {pipeline_mode = #tpu.pipeline_mode<synchronous>, transform_indices = @transform_5, window_bounds = array<i64: 1, 8>}, {pipeline_mode = #tpu.pipeline_mode<synchronous>, transform_indices = @transform_6, window_bounds = array<i64: 1, 8>}, {transform_indices = @transform_7, window_bounds = array<i64: 1, 16, 16, 8>}]} {
    %c0 = arith.constant 0 : index
    %c0_0 = arith.constant 0 : index
    %c0_1 = arith.constant 0 : index
    %c0_2 = arith.constant 0 : index
    %0 = vector.load %arg2[%c0, %c0_0, %c0_1, %c0_2] : memref<3x3x4x8xbf16, #tpu.memory_space<vmem>>, vector<3x3x4x8xbf16>
    %c0_3 = arith.constant 0 : index
    %c0_4 = arith.constant 0 : index
    %c0_5 = arith.constant 0 : index
    %c0_6 = arith.constant 0 : index
    %1 = vector.load %arg3[%c0_3, %c0_4, %c0_5, %c0_6] : memref<3x3x8x8xbf16, #tpu.memory_space<vmem>>, vector<3x3x8x8xbf16>
    %cst = arith.constant 0.000000e+00 : f32
    %2 = vector.broadcast %cst : f32 to vector<18x18x4xf32>
    %c0_7 = arith.constant 0 : index
    %c0_8 = arith.constant 0 : index
    %c0_9 = arith.constant 0 : index
    %3 = vector.load %arg9[%c0_7, %c0_8, %c0_9] : memref<18x18x4xf32, #tpu.memory_space<vmem>>, vector<18x18x4xf32>
    tpu.vector_store %arg9[%c0_7, %c0_8, %c0_9], %2 {strides = array<i32>} : memref<18x18x4xf32, #tpu.memory_space<vmem>>, vector<18x18x4xf32>,
    %c0_10 = arith.constant 0 : index
    %c0_11 = arith.constant 0 : index
    %c0_12 = arith.constant 0 : index
    %c0_13 = arith.constant 0 : index
    %4 = vector.load %arg1[%c0_10, %c0_11, %c0_12, %c0_13] : memref<1x16x16x4xf32, #tpu.memory_space<vmem>>, vector<1x16x16x4xf32>
    %5 = vector.shape_cast %4 : vector<1x16x16x4xf32> to vector<16x16x4xf32>
    %c1 = arith.constant 1 : index
    %c1_14 = arith.constant 1 : index
    %c0_15 = arith.constant 0 : index
    %6 = vector.load %arg9[%c1, %c1_14, %c0_15] : memref<18x18x4xf32, #tpu.memory_space<vmem>>, vector<16x16x4xf32>
    tpu.vector_store %arg9[%c1, %c1_14, %c0_15], %5 {strides = array<i32>} : memref<18x18x4xf32, #tpu.memory_space<vmem>>, vector<16x16x4xf32>,
    %cst_16 = arith.constant 0.000000e+00 : f32
    %7 = vector.broadcast %cst_16 : f32 to vector<256x8xf32>
    %c0_17 = arith.constant 0 : index
    %c0_18 = arith.constant 0 : index
    %c0_19 = arith.constant 0 : index
    %8 = vector.load %arg9[%c0_17, %c0_18, %c0_19] : memref<18x18x4xf32, #tpu.memory_space<vmem>>, vector<16x16x4xf32>
    %9 = vector.shape_cast %8 : vector<16x16x4xf32> to vector<256x4xf32>
    %10 = arith.truncf %9 : vector<256x4xf32> to vector<256x4xbf16>
    %11 = vector.extract_strided_slice %0 {offsets = [0, 0, 0, 0], sizes = [1, 1, 4, 8], strides = [1, 1, 1, 1]} : vector<3x3x4x8xbf16> to vector<1x1x4x8xbf16>
    %12 = vector.shape_cast %11 : vector<1x1x4x8xbf16> to vector<4x8xbf16>
    %cst_20 = arith.constant dense<0.000000e+00> : vector<256x8xf32>
    %13 = tpu.matmul %10, %12, %cst_20 {dimension_numbers = #tpu.dot_dimension_numbers<[1], [0], [0], [1], [0, 0, 1, 1], [], []>} : vector<256x4xbf16>, vector<4x8xbf16>, vector<256x8xf32> -> vector<256x8xf32>
    %14 = arith.addf %7, %13 : vector<256x8xf32>
    %c0_21 = arith.constant 0 : index
    %c1_22 = arith.constant 1 : index
    %c0_23 = arith.constant 0 : index
    %15 = vector.load %arg9[%c0_21, %c1_22, %c0_23] : memref<18x18x4xf32, #tpu.memory_space<vmem>>, vector<16x16x4xf32>
    %16 = vector.shape_cast %15 : vector<16x16x4xf32> to vector<256x4xf32>
    %17 = arith.truncf %16 : vector<256x4xf32> to vector<256x4xbf16>
    %18 = vector.extract_strided_slice %0 {offsets = [0, 1, 0, 0], sizes = [1, 1, 4, 8], strides = [1, 1, 1, 1]} : vector<3x3x4x8xbf16> to vector<1x1x4x8xbf16>
    %19 = vector.shape_cast %18 : vector<1x1x4x8xbf16> to vector<4x8xbf16>
    %cst_24 = arith.constant dense<0.000000e+00> : vector<256x8xf32>
    %20 = tpu.matmul %17, %19, %cst_24 {dimension_numbers = #tpu.dot_dimension_numbers<[1], [0], [0], [1], [0, 0, 1, 1], [], []>} : vector<256x4xbf16>, vector<4x8xbf16>, vector<256x8xf32> -> vector<256x8xf32>
    %21 = arith.addf %14, %20 : vector<256x8xf32>
    %c0_25 = arith.constant 0 : index
    %c2 = arith.constant 2 : index
    %c0_26 = arith.constant 0 : index
    %22 = vector.load %arg9[%c0_25, %c2, %c0_26] : memref<18x18x4xf32, #tpu.memory_space<vmem>>, vector<16x16x4xf32>
    %23 = vector.shape_cast %22 : vector<16x16x4xf32> to vector<256x4xf32>
    %24 = arith.truncf %23 : vector<256x4xf32> to vector<256x4xbf16>
    %25 = vector.extract_strided_slice %0 {offsets = [0, 2, 0, 0], sizes = [1, 1, 4, 8], strides = [1, 1, 1, 1]} : vector<3x3x4x8xbf16> to vector<1x1x4x8xbf16>
    %26 = vector.shape_cast %25 : vector<1x1x4x8xbf16> to vector<4x8xbf16>
    %cst_27 = arith.constant dense<0.000000e+00> : vector<256x8xf32>
    %27 = tpu.matmul %24, %26, %cst_27 {dimension_numbers = #tpu.dot_dimension_numbers<[1], [0], [0], [1], [0, 0, 1, 1], [], []>} : vector<256x4xbf16>, vector<4x8xbf16>, vector<256x8xf32> -> vector<256x8xf32>
    %28 = arith.addf %21, %27 : vector<256x8xf32>
    %c1_28 = arith.constant 1 : index
    %c0_29 = arith.constant 0 : index
    %c0_30 = arith.constant 0 : index
    %29 = vector.load %arg9[%c1_28, %c0_29, %c0_30] : memref<18x18x4xf32, #tpu.memory_space<vmem>>, vector<16x16x4xf32>
    %30 = vector.shape_cast %29 : vector<16x16x4xf32> to vector<256x4xf32>
    %31 = arith.truncf %30 : vector<256x4xf32> to vector<256x4xbf16>
    %32 = vector.extract_strided_slice %0 {offsets = [1, 0, 0, 0], sizes = [1, 1, 4, 8], strides = [1, 1, 1, 1]} : vector<3x3x4x8xbf16> to vector<1x1x4x8xbf16>
    %33 = vector.shape_cast %32 : vector<1x1x4x8xbf16> to vector<4x8xbf16>
    %cst_31 = arith.constant dense<0.000000e+00> : vector<256x8xf32>
    %34 = tpu.matmul %31, %33, %cst_31 {dimension_numbers = #tpu.dot_dimension_numbers<[1], [0], [0], [1], [0, 0, 1, 1], [], []>} : vector<256x4xbf16>, vector<4x8xbf16>, vector<256x8xf32> -> vector<256x8xf32>
    %35 = arith.addf %28, %34 : vector<256x8xf32>
    %c1_32 = arith.constant 1 : index
    %c1_33 = arith.constant 1 : index
    %c0_34 = arith.constant 0 : index
    %36 = vector.load %arg9[%c1_32, %c1_33, %c0_34] : memref<18x18x4xf32, #tpu.memory_space<vmem>>, vector<16x16x4xf32>
    %37 = vector.shape_cast %36 : vector<16x16x4xf32> to vector<256x4xf32>
    %38 = arith.truncf %37 : vector<256x4xf32> to vector<256x4xbf16>
    %39 = vector.extract_strided_slice %0 {offsets = [1, 1, 0, 0], sizes = [1, 1, 4, 8], strides = [1, 1, 1, 1]} : vector<3x3x4x8xbf16> to vector<1x1x4x8xbf16>
    %40 = vector.shape_cast %39 : vector<1x1x4x8xbf16> to vector<4x8xbf16>
    %cst_35 = arith.constant dense<0.000000e+00> : vector<256x8xf32>
    %41 = tpu.matmul %38, %40, %cst_35 {dimension_numbers = #tpu.dot_dimension_numbers<[1], [0], [0], [1], [0, 0, 1, 1], [], []>} : vector<256x4xbf16>, vector<4x8xbf16>, vector<256x8xf32> -> vector<256x8xf32>
    %42 = arith.addf %35, %41 : vector<256x8xf32>
    %c1_36 = arith.constant 1 : index
    %c2_37 = arith.constant 2 : index
    %c0_38 = arith.constant 0 : index
    %43 = vector.load %arg9[%c1_36, %c2_37, %c0_38] : memref<18x18x4xf32, #tpu.memory_space<vmem>>, vector<16x16x4xf32>
    %44 = vector.shape_cast %43 : vector<16x16x4xf32> to vector<256x4xf32>
    %45 = arith.truncf %44 : vector<256x4xf32> to vector<256x4xbf16>
    %46 = vector.extract_strided_slice %0 {offsets = [1, 2, 0, 0], sizes = [1, 1, 4, 8], strides = [1, 1, 1, 1]} : vector<3x3x4x8xbf16> to vector<1x1x4x8xbf16>
    %47 = vector.shape_cast %46 : vector<1x1x4x8xbf16> to vector<4x8xbf16>
    %cst_39 = arith.constant dense<0.000000e+00> : vector<256x8xf32>
    %48 = tpu.matmul %45, %47, %cst_39 {dimension_numbers = #tpu.dot_dimension_numbers<[1], [0], [0], [1], [0, 0, 1, 1], [], []>} : vector<256x4xbf16>, vector<4x8xbf16>, vector<256x8xf32> -> vector<256x8xf32>
    %49 = arith.addf %42, %48 : vector<256x8xf32>
    %c2_40 = arith.constant 2 : index
    %c0_41 = arith.constant 0 : index
    %c0_42 = arith.constant 0 : index
    %50 = vector.load %arg9[%c2_40, %c0_41, %c0_42] : memref<18x18x4xf32, #tpu.memory_space<vmem>>, vector<16x16x4xf32>
    %51 = vector.shape_cast %50 : vector<16x16x4xf32> to vector<256x4xf32>
    %52 = arith.truncf %51 : vector<256x4xf32> to vector<256x4xbf16>
    %53 = vector.extract_strided_slice %0 {offsets = [2, 0, 0, 0], sizes = [1, 1, 4, 8], strides = [1, 1, 1, 1]} : vector<3x3x4x8xbf16> to vector<1x1x4x8xbf16>
    %54 = vector.shape_cast %53 : vector<1x1x4x8xbf16> to vector<4x8xbf16>
    %cst_43 = arith.constant dense<0.000000e+00> : vector<256x8xf32>
    %55 = tpu.matmul %52, %54, %cst_43 {dimension_numbers = #tpu.dot_dimension_numbers<[1], [0], [0], [1], [0, 0, 1, 1], [], []>} : vector<256x4xbf16>, vector<4x8xbf16>, vector<256x8xf32> -> vector<256x8xf32>
    %56 = arith.addf %49, %55 : vector<256x8xf32>
    %c2_44 = arith.constant 2 : index
    %c1_45 = arith.constant 1 : index
    %c0_46 = arith.constant 0 : index
    %57 = vector.load %arg9[%c2_44, %c1_45, %c0_46] : memref<18x18x4xf32, #tpu.memory_space<vmem>>, vector<16x16x4xf32>
    %58 = vector.shape_cast %57 : vector<16x16x4xf32> to vector<256x4xf32>
    %59 = arith.truncf %58 : vector<256x4xf32> to vector<256x4xbf16>
    %60 = vector.extract_strided_slice %0 {offsets = [2, 1, 0, 0], sizes = [1, 1, 4, 8], strides = [1, 1, 1, 1]} : vector<3x3x4x8xbf16> to vector<1x1x4x8xbf16>
    %61 = vector.shape_cast %60 : vector<1x1x4x8xbf16> to vector<4x8xbf16>
    %cst_47 = arith.constant dense<0.000000e+00> : vector<256x8xf32>
    %62 = tpu.matmul %59, %61, %cst_47 {dimension_numbers = #tpu.dot_dimension_numbers<[1], [0], [0], [1], [0, 0, 1, 1], [], []>} : vector<256x4xbf16>, vector<4x8xbf16>, vector<256x8xf32> -> vector<256x8xf32>
    %63 = arith.addf %56, %62 : vector<256x8xf32>
    %c2_48 = arith.constant 2 : index
    %c2_49 = arith.constant 2 : index
    %c0_50 = arith.constant 0 : index
    %64 = vector.load %arg9[%c2_48, %c2_49, %c0_50] : memref<18x18x4xf32, #tpu.memory_space<vmem>>, vector<16x16x4xf32>
    %65 = vector.shape_cast %64 : vector<16x16x4xf32> to vector<256x4xf32>
    %66 = arith.truncf %65 : vector<256x4xf32> to vector<256x4xbf16>
    %67 = vector.extract_strided_slice %0 {offsets = [2, 2, 0, 0], sizes = [1, 1, 4, 8], strides = [1, 1, 1, 1]} : vector<3x3x4x8xbf16> to vector<1x1x4x8xbf16>
    %68 = vector.shape_cast %67 : vector<1x1x4x8xbf16> to vector<4x8xbf16>
    %cst_51 = arith.constant dense<0.000000e+00> : vector<256x8xf32>
    %69 = tpu.matmul %66, %68, %cst_51 {dimension_numbers = #tpu.dot_dimension_numbers<[1], [0], [0], [1], [0, 0, 1, 1], [], []>} : vector<256x4xbf16>, vector<4x8xbf16>, vector<256x8xf32> -> vector<256x8xf32>
    %70 = arith.addf %63, %69 : vector<256x8xf32>
    %c0_52 = arith.constant 0 : index
    %c0_53 = arith.constant 0 : index
    %71 = vector.load %arg4[%c0_52, %c0_53] : memref<1x8xf32, #tpu.memory_space<vmem>>, vector<1x8xf32>
    %72 = vector.broadcast %71 : vector<1x8xf32> to vector<256x8xf32>
    %73 = arith.mulf %70, %72 : vector<256x8xf32>
    %c0_54 = arith.constant 0 : index
    %c0_55 = arith.constant 0 : index
    %74 = vector.load %arg5[%c0_54, %c0_55] : memref<1x8xf32, #tpu.memory_space<vmem>>, vector<1x8xf32>
    %75 = vector.broadcast %74 : vector<1x8xf32> to vector<256x8xf32>
    %76 = arith.addf %73, %75 : vector<256x8xf32>
    %cst_56 = arith.constant 0.000000e+00 : f32
    %77 = vector.broadcast %cst_56 : f32 to vector<256x8xf32>
    %78 = arith.maximumf %76, %77 : vector<256x8xf32>
    %cst_57 = arith.constant 0.000000e+00 : f32
    %79 = vector.broadcast %cst_57 : f32 to vector<18x18x8xf32>
    %c0_58 = arith.constant 0 : index
    %c0_59 = arith.constant 0 : index
    %c0_60 = arith.constant 0 : index
    %80 = vector.load %arg10[%c0_58, %c0_59, %c0_60] : memref<18x18x8xf32, #tpu.memory_space<vmem>>, vector<18x18x8xf32>
    tpu.vector_store %arg10[%c0_58, %c0_59, %c0_60], %79 {strides = array<i32>} : memref<18x18x8xf32, #tpu.memory_space<vmem>>, vector<18x18x8xf32>,
    %81 = vector.shape_cast %78 : vector<256x8xf32> to vector<16x16x8xf32>
    %c1_61 = arith.constant 1 : index
    %c1_62 = arith.constant 1 : index
    %c0_63 = arith.constant 0 : index
    %82 = vector.load %arg10[%c1_61, %c1_62, %c0_63] : memref<18x18x8xf32, #tpu.memory_space<vmem>>, vector<16x16x8xf32>
    tpu.vector_store %arg10[%c1_61, %c1_62, %c0_63], %81 {strides = array<i32>} : memref<18x18x8xf32, #tpu.memory_space<vmem>>, vector<16x16x8xf32>,
    %cst_64 = arith.constant 0.000000e+00 : f32
    %83 = vector.broadcast %cst_64 : f32 to vector<256x8xf32>
    %c0_65 = arith.constant 0 : index
    %c0_66 = arith.constant 0 : index
    %c0_67 = arith.constant 0 : index
    %84 = vector.load %arg10[%c0_65, %c0_66, %c0_67] : memref<18x18x8xf32, #tpu.memory_space<vmem>>, vector<16x16x8xf32>
    %85 = vector.shape_cast %84 : vector<16x16x8xf32> to vector<256x8xf32>
    %86 = arith.truncf %85 : vector<256x8xf32> to vector<256x8xbf16>
    %87 = vector.extract_strided_slice %1 {offsets = [0, 0, 0, 0], sizes = [1, 1, 8, 8], strides = [1, 1, 1, 1]} : vector<3x3x8x8xbf16> to vector<1x1x8x8xbf16>
    %88 = vector.shape_cast %87 : vector<1x1x8x8xbf16> to vector<8x8xbf16>
    %cst_68 = arith.constant dense<0.000000e+00> : vector<256x8xf32>
    %89 = tpu.matmul %86, %88, %cst_68 {dimension_numbers = #tpu.dot_dimension_numbers<[1], [0], [0], [1], [0, 0, 1, 1], [], []>} : vector<256x8xbf16>, vector<8x8xbf16>, vector<256x8xf32> -> vector<256x8xf32>
    %90 = arith.addf %83, %89 : vector<256x8xf32>
    %c0_69 = arith.constant 0 : index
    %c1_70 = arith.constant 1 : index
    %c0_71 = arith.constant 0 : index
    %91 = vector.load %arg10[%c0_69, %c1_70, %c0_71] : memref<18x18x8xf32, #tpu.memory_space<vmem>>, vector<16x16x8xf32>
    %92 = vector.shape_cast %91 : vector<16x16x8xf32> to vector<256x8xf32>
    %93 = arith.truncf %92 : vector<256x8xf32> to vector<256x8xbf16>
    %94 = vector.extract_strided_slice %1 {offsets = [0, 1, 0, 0], sizes = [1, 1, 8, 8], strides = [1, 1, 1, 1]} : vector<3x3x8x8xbf16> to vector<1x1x8x8xbf16>
    %95 = vector.shape_cast %94 : vector<1x1x8x8xbf16> to vector<8x8xbf16>
    %cst_72 = arith.constant dense<0.000000e+00> : vector<256x8xf32>
    %96 = tpu.matmul %93, %95, %cst_72 {dimension_numbers = #tpu.dot_dimension_numbers<[1], [0], [0], [1], [0, 0, 1, 1], [], []>} : vector<256x8xbf16>, vector<8x8xbf16>, vector<256x8xf32> -> vector<256x8xf32>
    %97 = arith.addf %90, %96 : vector<256x8xf32>
    %c0_73 = arith.constant 0 : index
    %c2_74 = arith.constant 2 : index
    %c0_75 = arith.constant 0 : index
    %98 = vector.load %arg10[%c0_73, %c2_74, %c0_75] : memref<18x18x8xf32, #tpu.memory_space<vmem>>, vector<16x16x8xf32>
    %99 = vector.shape_cast %98 : vector<16x16x8xf32> to vector<256x8xf32>
    %100 = arith.truncf %99 : vector<256x8xf32> to vector<256x8xbf16>
    %101 = vector.extract_strided_slice %1 {offsets = [0, 2, 0, 0], sizes = [1, 1, 8, 8], strides = [1, 1, 1, 1]} : vector<3x3x8x8xbf16> to vector<1x1x8x8xbf16>
    %102 = vector.shape_cast %101 : vector<1x1x8x8xbf16> to vector<8x8xbf16>
    %cst_76 = arith.constant dense<0.000000e+00> : vector<256x8xf32>
    %103 = tpu.matmul %100, %102, %cst_76 {dimension_numbers = #tpu.dot_dimension_numbers<[1], [0], [0], [1], [0, 0, 1, 1], [], []>} : vector<256x8xbf16>, vector<8x8xbf16>, vector<256x8xf32> -> vector<256x8xf32>
    %104 = arith.addf %97, %103 : vector<256x8xf32>
    %c1_77 = arith.constant 1 : index
    %c0_78 = arith.constant 0 : index
    %c0_79 = arith.constant 0 : index
    %105 = vector.load %arg10[%c1_77, %c0_78, %c0_79] : memref<18x18x8xf32, #tpu.memory_space<vmem>>, vector<16x16x8xf32>
    %106 = vector.shape_cast %105 : vector<16x16x8xf32> to vector<256x8xf32>
    %107 = arith.truncf %106 : vector<256x8xf32> to vector<256x8xbf16>
    %108 = vector.extract_strided_slice %1 {offsets = [1, 0, 0, 0], sizes = [1, 1, 8, 8], strides = [1, 1, 1, 1]} : vector<3x3x8x8xbf16> to vector<1x1x8x8xbf16>
    %109 = vector.shape_cast %108 : vector<1x1x8x8xbf16> to vector<8x8xbf16>
    %cst_80 = arith.constant dense<0.000000e+00> : vector<256x8xf32>
    %110 = tpu.matmul %107, %109, %cst_80 {dimension_numbers = #tpu.dot_dimension_numbers<[1], [0], [0], [1], [0, 0, 1, 1], [], []>} : vector<256x8xbf16>, vector<8x8xbf16>, vector<256x8xf32> -> vector<256x8xf32>
    %111 = arith.addf %104, %110 : vector<256x8xf32>
    %c1_81 = arith.constant 1 : index
    %c1_82 = arith.constant 1 : index
    %c0_83 = arith.constant 0 : index
    %112 = vector.load %arg10[%c1_81, %c1_82, %c0_83] : memref<18x18x8xf32, #tpu.memory_space<vmem>>, vector<16x16x8xf32>
    %113 = vector.shape_cast %112 : vector<16x16x8xf32> to vector<256x8xf32>
    %114 = arith.truncf %113 : vector<256x8xf32> to vector<256x8xbf16>
    %115 = vector.extract_strided_slice %1 {offsets = [1, 1, 0, 0], sizes = [1, 1, 8, 8], strides = [1, 1, 1, 1]} : vector<3x3x8x8xbf16> to vector<1x1x8x8xbf16>
    %116 = vector.shape_cast %115 : vector<1x1x8x8xbf16> to vector<8x8xbf16>
    %cst_84 = arith.constant dense<0.000000e+00> : vector<256x8xf32>
    %117 = tpu.matmul %114, %116, %cst_84 {dimension_numbers = #tpu.dot_dimension_numbers<[1], [0], [0], [1], [0, 0, 1, 1], [], []>} : vector<256x8xbf16>, vector<8x8xbf16>, vector<256x8xf32> -> vector<256x8xf32>
    %118 = arith.addf %111, %117 : vector<256x8xf32>
    %c1_85 = arith.constant 1 : index
    %c2_86 = arith.constant 2 : index
    %c0_87 = arith.constant 0 : index
    %119 = vector.load %arg10[%c1_85, %c2_86, %c0_87] : memref<18x18x8xf32, #tpu.memory_space<vmem>>, vector<16x16x8xf32>
    %120 = vector.shape_cast %119 : vector<16x16x8xf32> to vector<256x8xf32>
    %121 = arith.truncf %120 : vector<256x8xf32> to vector<256x8xbf16>
    %122 = vector.extract_strided_slice %1 {offsets = [1, 2, 0, 0], sizes = [1, 1, 8, 8], strides = [1, 1, 1, 1]} : vector<3x3x8x8xbf16> to vector<1x1x8x8xbf16>
    %123 = vector.shape_cast %122 : vector<1x1x8x8xbf16> to vector<8x8xbf16>
    %cst_88 = arith.constant dense<0.000000e+00> : vector<256x8xf32>
    %124 = tpu.matmul %121, %123, %cst_88 {dimension_numbers = #tpu.dot_dimension_numbers<[1], [0], [0], [1], [0, 0, 1, 1], [], []>} : vector<256x8xbf16>, vector<8x8xbf16>, vector<256x8xf32> -> vector<256x8xf32>
    %125 = arith.addf %118, %124 : vector<256x8xf32>
    %c2_89 = arith.constant 2 : index
    %c0_90 = arith.constant 0 : index
    %c0_91 = arith.constant 0 : index
    %126 = vector.load %arg10[%c2_89, %c0_90, %c0_91] : memref<18x18x8xf32, #tpu.memory_space<vmem>>, vector<16x16x8xf32>
    %127 = vector.shape_cast %126 : vector<16x16x8xf32> to vector<256x8xf32>
    %128 = arith.truncf %127 : vector<256x8xf32> to vector<256x8xbf16>
    %129 = vector.extract_strided_slice %1 {offsets = [2, 0, 0, 0], sizes = [1, 1, 8, 8], strides = [1, 1, 1, 1]} : vector<3x3x8x8xbf16> to vector<1x1x8x8xbf16>
    %130 = vector.shape_cast %129 : vector<1x1x8x8xbf16> to vector<8x8xbf16>
    %cst_92 = arith.constant dense<0.000000e+00> : vector<256x8xf32>
    %131 = tpu.matmul %128, %130, %cst_92 {dimension_numbers = #tpu.dot_dimension_numbers<[1], [0], [0], [1], [0, 0, 1, 1], [], []>} : vector<256x8xbf16>, vector<8x8xbf16>, vector<256x8xf32> -> vector<256x8xf32>
    %132 = arith.addf %125, %131 : vector<256x8xf32>
    %c2_93 = arith.constant 2 : index
    %c1_94 = arith.constant 1 : index
    %c0_95 = arith.constant 0 : index
    %133 = vector.load %arg10[%c2_93, %c1_94, %c0_95] : memref<18x18x8xf32, #tpu.memory_space<vmem>>, vector<16x16x8xf32>
    %134 = vector.shape_cast %133 : vector<16x16x8xf32> to vector<256x8xf32>
    %135 = arith.truncf %134 : vector<256x8xf32> to vector<256x8xbf16>
    %136 = vector.extract_strided_slice %1 {offsets = [2, 1, 0, 0], sizes = [1, 1, 8, 8], strides = [1, 1, 1, 1]} : vector<3x3x8x8xbf16> to vector<1x1x8x8xbf16>
    %137 = vector.shape_cast %136 : vector<1x1x8x8xbf16> to vector<8x8xbf16>
    %cst_96 = arith.constant dense<0.000000e+00> : vector<256x8xf32>
    %138 = tpu.matmul %135, %137, %cst_96 {dimension_numbers = #tpu.dot_dimension_numbers<[1], [0], [0], [1], [0, 0, 1, 1], [], []>} : vector<256x8xbf16>, vector<8x8xbf16>, vector<256x8xf32> -> vector<256x8xf32>
    %139 = arith.addf %132, %138 : vector<256x8xf32>
    %c2_97 = arith.constant 2 : index
    %c2_98 = arith.constant 2 : index
    %c0_99 = arith.constant 0 : index
    %140 = vector.load %arg10[%c2_97, %c2_98, %c0_99] : memref<18x18x8xf32, #tpu.memory_space<vmem>>, vector<16x16x8xf32>
    %141 = vector.shape_cast %140 : vector<16x16x8xf32> to vector<256x8xf32>
    %142 = arith.truncf %141 : vector<256x8xf32> to vector<256x8xbf16>
    %143 = vector.extract_strided_slice %1 {offsets = [2, 2, 0, 0], sizes = [1, 1, 8, 8], strides = [1, 1, 1, 1]} : vector<3x3x8x8xbf16> to vector<1x1x8x8xbf16>
    %144 = vector.shape_cast %143 : vector<1x1x8x8xbf16> to vector<8x8xbf16>
    %cst_100 = arith.constant dense<0.000000e+00> : vector<256x8xf32>
    %145 = tpu.matmul %142, %144, %cst_100 {dimension_numbers = #tpu.dot_dimension_numbers<[1], [0], [0], [1], [0, 0, 1, 1], [], []>} : vector<256x8xbf16>, vector<8x8xbf16>, vector<256x8xf32> -> vector<256x8xf32>
    %146 = arith.addf %139, %145 : vector<256x8xf32>
    %c0_101 = arith.constant 0 : index
    %c0_102 = arith.constant 0 : index
    %147 = vector.load %arg6[%c0_101, %c0_102] : memref<1x8xf32, #tpu.memory_space<vmem>>, vector<1x8xf32>
    %148 = vector.broadcast %147 : vector<1x8xf32> to vector<256x8xf32>
    %149 = arith.mulf %146, %148 : vector<256x8xf32>
    %c0_103 = arith.constant 0 : index
    %c0_104 = arith.constant 0 : index
    %150 = vector.load %arg7[%c0_103, %c0_104] : memref<1x8xf32, #tpu.memory_space<vmem>>, vector<1x8xf32>
    %151 = vector.broadcast %150 : vector<1x8xf32> to vector<256x8xf32>
    %152 = arith.addf %149, %151 : vector<256x8xf32>
    %cst_105 = arith.constant 0.000000e+00 : f32
    %153 = vector.broadcast %cst_105 : f32 to vector<256x8xf32>
    %154 = arith.maximumf %152, %153 : vector<256x8xf32>
    %155 = vector.shape_cast %154 : vector<256x8xf32> to vector<1x16x16x8xf32>
    %c0_106 = arith.constant 0 : index
    %c0_107 = arith.constant 0 : index
    %c0_108 = arith.constant 0 : index
    %c0_109 = arith.constant 0 : index
    %156 = vector.load %arg8[%c0_106, %c0_107, %c0_108, %c0_109] : memref<1x16x16x8xf32, #tpu.memory_space<vmem>>, vector<1x16x16x8xf32>
    tpu.vector_store %arg8[%c0_106, %c0_107, %c0_108, %c0_109], %155 {strides = array<i32>} : memref<1x16x16x8xf32, #tpu.memory_space<vmem>>, vector<1x16x16x8xf32>,
    return
  }
  func.func @transform_0(%arg0: i32) -> (i32, i32, i32, i32) {
    %c0_i32 = arith.constant 0 : i32
    %c0_i32_0 = arith.constant 0 : i32
    %c0_i32_1 = arith.constant 0 : i32
    %c0_i32_2 = arith.constant 0 : i32
    return %arg0, %c0_i32, %c0_i32_0, %c0_i32_1 : i32, i32, i32, i32
  }
  func.func @transform_1(%arg0: i32) -> (i32, i32, i32, i32) {
    %c0_i32 = arith.constant 0 : i32
    %c0_i32_0 = arith.constant 0 : i32
    %c0_i32_1 = arith.constant 0 : i32
    %c0_i32_2 = arith.constant 0 : i32
    %c0_i32_3 = arith.constant 0 : i32
    return %c0_i32, %c0_i32_0, %c0_i32_1, %c0_i32_2 : i32, i32, i32, i32
  }
  func.func @transform_2(%arg0: i32) -> (i32, i32, i32, i32) {
    %c0_i32 = arith.constant 0 : i32
    %c0_i32_0 = arith.constant 0 : i32
    %c0_i32_1 = arith.constant 0 : i32
    %c0_i32_2 = arith.constant 0 : i32
    %c0_i32_3 = arith.constant 0 : i32
    return %c0_i32, %c0_i32_0, %c0_i32_1, %c0_i32_2 : i32, i32, i32, i32
  }
  func.func @transform_3(%arg0: i32) -> (i32, i32) {
    %c0_i32 = arith.constant 0 : i32
    %c0_i32_0 = arith.constant 0 : i32
    %c0_i32_1 = arith.constant 0 : i32
    return %c0_i32, %c0_i32_0 : i32, i32
  }
  func.func @transform_4(%arg0: i32) -> (i32, i32) {
    %c0_i32 = arith.constant 0 : i32
    %c0_i32_0 = arith.constant 0 : i32
    %c0_i32_1 = arith.constant 0 : i32
    return %c0_i32, %c0_i32_0 : i32, i32
  }
  func.func @transform_5(%arg0: i32) -> (i32, i32) {
    %c0_i32 = arith.constant 0 : i32
    %c0_i32_0 = arith.constant 0 : i32
    %c0_i32_1 = arith.constant 0 : i32
    return %c0_i32, %c0_i32_0 : i32, i32
  }
  func.func @transform_6(%arg0: i32) -> (i32, i32) {
    %c0_i32 = arith.constant 0 : i32
    %c0_i32_0 = arith.constant 0 : i32
    %c0_i32_1 = arith.constant 0 : i32
    return %c0_i32, %c0_i32_0 : i32, i32
  }
  func.func @transform_7(%arg0: i32) -> (i32, i32, i32, i32) {
    %c0_i32 = arith.constant 0 : i32
    %c0_i32_0 = arith.constant 0 : i32
    %c0_i32_1 = arith.constant 0 : i32
    %c0_i32_2 = arith.constant 0 : i32
    return %arg0, %c0_i32, %c0_i32_0, %c0_i32_1 : i32, i32, i32, i32
  }
}

</mosaic_0001>

<bundles_post_ra>
// kernel: conv_block_forward.1
= control target key start
LH: loop header
LB: loop body
LE: loop exit
PB: predicated region body
PF: predicated region fallthrough
CT: control target
= control target key end

     0   :  { %12 = vsyncpa [#allocation5], 0  ;;  %s10004_s0 = inlined_call_operand.hbm [shape: f32[2,16,16,4], index: 0, kind: input, shape index: {}]   ;;  %s10005_s1 = inlined_call_operand.hbm [shape: bf16[3,3,4,8], index: 1, kind: input, shape index: {}]   ;;  %s10006_s2 = inlined_call_operand.hbm [shape: bf16[3,3,8,8], index: 2, kind: input, shape index: {}]   ;;  %s10007_s3 = inlined_call_operand.hbm [shape: f32[1,8], index: 3, kind: input, shape index: {}]   ;;  %s10008_s4 = inlined_call_operand.hbm [shape: f32[1,8], index: 4, kind: input, shape index: {}]   ;;  %s10009_s5 = inlined_call_operand.hbm [shape: f32[1,8], index: 5, kind: input, shape index: {}]   ;;  %s10010_s6 = inlined_call_operand.hbm [shape: f32[1,8], index: 6, kind: input, shape index: {}]   ;;  %s10011_s7 = inlined_call_operand.hbm [shape: f32[2,16,16,8], index: 7, kind: output, shape index: {}]  }
   0x1   :  { %14 = vsyncpa [#allocation5 + $0x1], 0 }
   0x2   :  { %15 = vsyncpa [#allocation8], 0 }
   0x3   :  { %16 = vsyncpa [#allocation11], 0 }
   0x4   :  { %17 = vsyncpa [#allocation14], 0 }
   0x5   :  { %18 = vsyncpa [#allocation6], 0 }
   0x6   :  { %20 = vsyncpa [#allocation6 + $0x1], 0  ;;  %s8352_s24 = smov 0   ;;  %s8354_s25 = smov 0  }
   0x7   :  { %s8356_s26 = smov 0   ;;  %s8358_s27 = smov 0  }
   0x8 LB: > { %s8295_s28 = smov [#allocation7]   ;;  %s8373_s30 = sadd.s32 4294967295, %s8293_s27   ;;  %s8293_s27 = sphi %s8358_s27, %s10037_s27   ;;  %s8289_s26 = sphi %s8356_s26, %s10036_s26   ;;  %s8285_s25 = sphi %s8354_s25, %s10035_s25   ;;  %s8281_s24 = sphi %s8352_s24, %s10034_s24  }
   0x9   : > { %s221_s29 = sshll.u32 %s8295_s28, 4  ;;  %p6134_p0 = scmp.ge.s32.totalorder %s8293_s27, 1  ;;  %s8378_s29 = int_to_ptr.vmem [resolvable:$true] %s221_s29 }
   0xa   : > { %p10012_p1 = scmp.eq.s32.totalorder %s8373_s30, 0  ;;  %p209_p2 = scmp.lt.s32.totalorder %s8293_s27, 3 }
   0xb   : > { %s8296_s9 = smov [#allocation10]   ;;  %s8297_s12 = smov [#allocation13]  }
   0xc   : > { %p8380_p3 = pnand %p6134_p0, %p209_p2  ;;  %s248_s10 = sshll.u32 %s8296_s9, 4  ;;  %s8393_s10 = int_to_ptr.vmem [resolvable:$true] %s248_s10 }
   0xd   : > { %s270_s13 = sshll.u32 %s8297_s12, 4  ;;  %s8017_s16 = scalar_lea.hbm %s10005_s1, 288  ;;  %s8395_s13 = int_to_ptr.vmem [resolvable:$true] %s270_s13 }
   0xe   : > { %s10015_s8 = scalar_select %p8380_p3, 1, 0 }
   0xf   : > { %p7929_p5 = pneg %p8380_p3  ;;  %p8018_p7 = scmp.ne.s32.totalorder %s10005_s1, %s8017_s16 }
  0x10   : > { %p8024_p11 = scmp.lt.u32.totalorder %s8017_s16, %s10005_s1 }
  0x11   : > { %p8389_p6 = pnand %p7929_p5, %p10012_p1 }
  0x13   : > { %p8405_p8 = pneg %p8389_p6 }
  0x15   : > { %p8020_p9 = pnand %p8405_p8, %p8018_p7 }
  0x17   : > { %p8021_p10 = pneg %p8020_p9 }
  0x19   : > { %p8026_p12 = pnand %p8024_p11, %p8021_p10 }
  0x1b   : > { %8029 = shalt.err (!%p8026_p12)
}
  0x1c   : > { %s8030_s22 = scalar_lea.vmem %s8378_s29, 288  ;;  %p8038_p5 = scmp.lt.s32.totalorder %s8378_s29, %s8378_s29 }
  0x1d   : > { %p8031_p13 = scmp.ne.s32.totalorder %s8378_s29, %s8030_s22  ;;  %p8039_p4 = scmp.lt.s32.totalorder %s8030_s22, %s8030_s22 }
  0x1f   : > { %p8033_p0 = pnand %p8031_p13, %p8405_p8  ;;  %p8040_p7 = por %p8039_p4, %p8038_p5 }
  0x21   : > { %p8034_p2 = pneg %p8033_p0 }
  0x23   : > { %p8041_p9 = pnand %p8040_p7, %p8034_p2 }
  0x25   : > { %8044 = shalt.err (!%p8041_p9)
}
  0x26   : > { %s8298_s23 = smov 32   ;;  %s8299_s28 = smov 2  }
  0x27   : > { %7932 = dma.hbm_to_vmem [thread:$0]  (!%p8389_p6), %s10005_s1, 288, %s8378_s29, [#allocation8], %s8298_s23, %s8298_s23, %s8299_s28  }
  0x28   : > { %s8045_s16 = scalar_lea.hbm %s10007_s3, 16 }
  0x29   : > { %p8046_p4 = scmp.ne.s32.totalorder %s10007_s3, %s8045_s16  ;;  %p8052_p12 = scmp.lt.u32.totalorder %s8045_s16, %s10007_s3 }
  0x2b   : > { %p8048_p10 = pnand %p8046_p4, %p8405_p8 }
  0x2d   : > { %p8049_p11 = pneg %p8048_p10 }
  0x2f   : > { %p8054_p13 = pnand %p8052_p12, %p8049_p11 }
  0x31   : > { %8057 = shalt.err (!%p8054_p13)
}
  0x32   : > { %s8058_s29 = scalar_lea.vmem %s8393_s10, 16  ;;  %s8065_s22 = scalar_lea.vmem %s8393_s10, 32 }
  0x33   : > { %p8059_p0 = scmp.ne.s32.totalorder %s8393_s10, %s8058_s29  ;;  %p8066_p7 = scmp.lt.s32.totalorder %s8393_s10, %s8393_s10 }
  0x34   : > { %p8067_p9 = scmp.lt.s32.totalorder %s8065_s22, %s8058_s29 }
  0x35   : > { %p8061_p2 = pnand %p8059_p0, %p8405_p8 }
  0x36   : > { %p8068_p4 = por %p8067_p9, %p8066_p7 }
  0x37   : > { %p8062_p5 = pneg %p8061_p2 }
  0x39   : > { %p8069_p10 = pnand %p8068_p4, %p8062_p5 }
  0x3b   : > { %8072 = shalt.err (!%p8069_p10)
}
  0x3c   : > { %7938 = dma.hbm_to_vmem [thread:$0]  (!%p8389_p6), %s10007_s3, 16, %s8393_s10, [#allocation11]  }
  0x3d   : > { %s8073_s14 = scalar_lea.hbm %s10009_s5, 16 }
  0x3e   : > { %p8074_p11 = scmp.ne.s32.totalorder %s10009_s5, %s8073_s14  ;;  %p8080_p0 = scmp.lt.u32.totalorder %s8073_s14, %s10009_s5 }
  0x40   : > { %p8076_p12 = pnand %p8074_p11, %p8405_p8 }
  0x42   : > { %p8077_p13 = pneg %p8076_p12 }
  0x44   : > { %p8082_p2 = pnand %p8080_p0, %p8077_p13 }
  0x46   : > { %8085 = shalt.err (!%p8082_p2)
}
  0x47   : > { %s8086_s10 = scalar_lea.vmem %s8395_s13, 16  ;;  %s8093_s20 = scalar_lea.vmem %s8395_s13, 32 }
  0x48   : > { %p8087_p5 = scmp.ne.s32.totalorder %s8395_s13, %s8086_s10  ;;  %p8094_p4 = scmp.lt.s32.totalorder %s8395_s13, %s8395_s13 }
  0x49   : > { %p8095_p10 = scmp.lt.s32.totalorder %s8093_s20, %s8086_s10 }
  0x4a   : > { %p8089_p7 = pnand %p8087_p5, %p8405_p8 }
  0x4b   : > { %p8096_p11 = por %p8095_p10, %p8094_p4 }
  0x4c   : > { %p8090_p9 = pneg %p8089_p7 }
  0x4e   : > { %p8097_p12 = pnand %p8096_p11, %p8090_p9 }
  0x50   : > { %8100 = shalt.err (!%p8097_p12)
}
  0x51   : > { %7944 = dma.hbm_to_vmem [thread:$0]  (!%p8389_p6), %s10009_s5, 16, %s8395_s13, [#allocation14]  }
  0x52   : > { %s8300_s22 = smov [#allocation9]   ;;  %s8101_s12 = scalar_lea.hbm %s10006_s2, 576 }
  0x53   : > { %s234_s23 = sshll.u32 %s8300_s22, 4  ;;  %p8102_p13 = scmp.ne.s32.totalorder %s10006_s2, %s8101_s12  ;;  %s235_s23 = int_to_ptr.vmem [resolvable:$true] %s234_s23 }
  0x54   : > { %p8108_p5 = scmp.lt.u32.totalorder %s8101_s12, %s10006_s2 }
  0x55   : > { %p8104_p0 = pnand %p8102_p13, %p8405_p8 }
  0x57   : > { %p8105_p2 = pneg %p8104_p0 }
  0x59   : > { %p8110_p7 = pnand %p8108_p5, %p8105_p2 }
  0x5b   : > { %8113 = shalt.err (!%p8110_p7)
}
  0x5c   : > { %s8114_s13 = scalar_lea.vmem %s235_s23, 576  ;;  %p8122_p11 = scmp.lt.s32.totalorder %s235_s23, %s235_s23 }
  0x5d   : > { %p8115_p9 = scmp.ne.s32.totalorder %s235_s23, %s8114_s13  ;;  %p8123_p12 = scmp.lt.s32.totalorder %s8114_s13, %s8114_s13 }
  0x5f   : > { %p8117_p4 = pnand %p8115_p9, %p8405_p8  ;;  %p8124_p1 = por %p8123_p12, %p8122_p11 }
  0x61   : > { %p8118_p10 = pneg %p8117_p4 }
  0x63   : > { %p8125_p3 = pnand %p8124_p1, %p8118_p10 }
  0x65   : > { %8128 = shalt.err (!%p8125_p3)
}
  0x66   : > { %s8301_s18 = smov 64   ;;  %s8302_s10 = smov 4  }
  0x67   : > { %7935 = dma.hbm_to_vmem [thread:$0]  (!%p8389_p6), %s10006_s2, 576, %s235_s23, [#allocation8], %s8301_s18, %s8301_s18, %s8302_s10  }
  0x68   : > { %s8303_s29 = smov [#allocation12]   ;;  %s8304_s28 = smov [#allocation15]  }
  0x69   : > { %s259_s22 = sshll.u32 %s8303_s29, 4  ;;  %s281_s9 = sshll.u32 %s8304_s28, 4  ;;  %s260_s22 = int_to_ptr.vmem [resolvable:$true] %s259_s22  ;;  %s8492_s9 = int_to_ptr.vmem [resolvable:$true] %s281_s9 }
  0x6a   : > { %s8129_s15 = scalar_lea.hbm %s10008_s4, 16 }
  0x6b   : > { %p8130_p1 = scmp.ne.s32.totalorder %s10008_s4, %s8129_s15  ;;  %p8136_p0 = scmp.lt.u32.totalorder %s8129_s15, %s10008_s4 }
  0x6d   : > { %p8132_p3 = pnand %p8130_p1, %p8405_p8 }
  0x6f   : > { %p8133_p13 = pneg %p8132_p3 }
  0x71   : > { %p8138_p2 = pnand %p8136_p0, %p8133_p13 }
  0x73   : > { %8141 = shalt.err (!%p8138_p2)
}
  0x74   : > { %s8142_s18 = scalar_lea.vmem %s260_s22, 16  ;;  %s8149_s10 = scalar_lea.vmem %s260_s22, 32 }
  0x75   : > { %p8143_p5 = scmp.ne.s32.totalorder %s260_s22, %s8142_s18  ;;  %p8150_p4 = scmp.lt.s32.totalorder %s260_s22, %s260_s22 }
  0x76   : > { %p8151_p10 = scmp.lt.s32.totalorder %s8149_s10, %s8142_s18 }
  0x77   : > { %p8145_p7 = pnand %p8143_p5, %p8405_p8 }
  0x78   : > { %p8152_p11 = por %p8151_p10, %p8150_p4 }
  0x79   : > { %p8146_p9 = pneg %p8145_p7 }
  0x7b   : > { %p8153_p12 = pnand %p8152_p11, %p8146_p9 }
  0x7d   : > { %8156 = shalt.err (!%p8153_p12)
}
  0x7e   : > { %7941 = dma.hbm_to_vmem [thread:$0]  (!%p8389_p6), %s10008_s4, 16, %s260_s22, [#allocation11]  }
  0x7f   : > { %s8157_s12 = scalar_lea.hbm %s10010_s6, 16 }
  0x80   : > { %p8158_p1 = scmp.ne.s32.totalorder %s10010_s6, %s8157_s12  ;;  %p8164_p0 = scmp.lt.u32.totalorder %s8157_s12, %s10010_s6 }
  0x82   : > { %p8160_p3 = pnand %p8158_p1, %p8405_p8 }
  0x84   : > { %p8161_p13 = pneg %p8160_p3 }
  0x86   : > { %p8166_p2 = pnand %p8164_p0, %p8161_p13 }
  0x88   : > { %8169 = shalt.err (!%p8166_p2)
}
  0x89   : > { %s8170_s22 = scalar_lea.vmem %s8492_s9, 16  ;;  %s8177_s13 = scalar_lea.vmem %s8492_s9, 32 }
  0x8a   : > { %p8171_p5 = scmp.ne.s32.totalorder %s8492_s9, %s8170_s22  ;;  %p8178_p4 = scmp.lt.s32.totalorder %s8492_s9, %s8492_s9 }
  0x8b   : > { %p8179_p10 = scmp.lt.s32.totalorder %s8177_s13, %s8170_s22 }
  0x8c   : > { %p8173_p7 = pnand %p8171_p5, %p8405_p8 }
  0x8d   : > { %p8180_p11 = por %p8179_p10, %p8178_p4 }
  0x8e   : > { %p8174_p9 = pneg %p8173_p7 }
  0x90   : > { %p8181_p12 = pnand %p8180_p11, %p8174_p9 }
  0x92   : > { %8184 = shalt.err (!%p8181_p12)
}
  0x93   : > { %7947 = dma.hbm_to_vmem [thread:$0]  (!%p8389_p6), %s10010_s6, 16, %s8492_s9, [#allocation14]  }
  0x94   : > { %s6133_s11 = sadd.s32 4294967294, %s8293_s27   ;;  %s8538_s19 = sadd.s32 1, %s8293_s27  }
  0x95   : > { %s30_s10 = ssub.s32 %s8293_s27, %s8538_s19  ;;  %s33_s20 = sadd.s32 1, %s8289_s26 }
  0x96   : > { %p31_p8 = scmp.eq.s32.totalorder %s30_s10, 0  ;;  %p40_p1 = scmp.ne.s32.totalorder %s8289_s26, %s8285_s25 }
  0x97   : > { %p41_p3 = scmp.eq.s32.totalorder %s8293_s27, 0  ;;  %p46_p13 = scmp.ne.s32.totalorder %s8285_s25, %s8281_s24 }
  0x98   : > { %s8549_s21 = scalar_select %p31_p8, %s8289_s26, %s33_s20  }
  0x99   : > { %p8551_p0 = por %p41_p3, %p40_p1  ;;  %p10019_p2 = scmp.eq.s32.totalorder %s8373_s30, 0 }
  0x9a   : > { %p196_p5 = scmp.eq.s32.totalorder %s8373_s30, 1  ;;  %p202_p7 = scmp.eq.s32.totalorder %s6133_s11, 1 }
  0x9b   : > { %p8557_p6 = por %p10019_p2, %p46_p13  ;;  %p7962_p9 = scmp.lt.s32.totalorder %s8293_s27, 2 }
  0x9c   : > { %s292_s28 = sand.u32 1, %s8289_s26   ;;  %p8564_p4 = por %p196_p5, %p40_p1 }
  0x9d   : > { %p8568_p10 = por %p202_p7, %p46_p13  ;;  %s6142_s15 = sshll.u32 %s292_s28, 8 }
  0x9e   : > { %s10021_s12 = scalar_select %p8564_p4, 1, 0 }
  0x9f   : > { %s10022_s14 = scalar_select %p8568_p10, 1, 0 }
  0xa0   : > { %s6451_s16 = sshll.u32 %s8293_s27, 12  ;;  %s296_s23 = scalar_lea.vmem [#allocation4], %s6142_s15 }
  0xa1   : > { %s8576_s13 = scalar_lea.hbm %s10004_s0, %s6451_s16  ;;  %s303_s18 = sshll.u32 %s296_s23, 4  ;;  %s8578_s18 = int_to_ptr.vmem [resolvable:$true] %s303_s18 }
  0xa2   : > { %p8582_p11 = pnand %p7962_p9, %p8551_p0  ;;  %s8586_s10 = scalar_lea.sflag [#allocation5], %s292_s28 }
  0xa3   : > { %s8185_s20 = scalar_lea.hbm %s8576_s13, 4096  ;;  %s8190_s29 = scalar_lea.hbm %s10004_s0, 8192 }
  0xa4   : > { %p8186_p12 = scmp.ne.s32.totalorder %s8576_s13, %s8185_s20  ;;  %p8187_p8 = pneg %p8582_p11 }
  0xa5   : > { %p8191_p13 = scmp.lt.u32.totalorder %s8576_s13, %s10004_s0  ;;  %p8192_p0 = scmp.lt.u32.totalorder %s8190_s29, %s8185_s20 }
  0xa6   : > { %p8188_p1 = pnand %p8187_p8, %p8186_p12  ;;  %p8194_p5 = scmp.lt.u32.totalorder %s8185_s20, %s8576_s13 }
  0xa7   : > { %p8193_p2 = por %p8192_p0, %p8191_p13 }
  0xa8   : > { %p8189_p3 = pneg %p8188_p1 }
  0xa9   : > { %p8195_p7 = por %p8194_p5, %p8193_p2 }
  0xab   : > { %p8196_p9 = pnand %p8195_p7, %p8189_p3 }
  0xad   : > { %8199 = shalt.err (!%p8196_p9)
}
  0xae   : > { %s8200_s28 = scalar_lea.vmem %s8578_s18, 4096  ;;  %s8305_s23 = smov [#allocation4]  }
  0xaf   : > { %p8201_p12 = scmp.ne.s32.totalorder %s8578_s18, %s8200_s28  ;;  %s8205_s15 = sshll.u32 %s8305_s23, 4  ;;  %s8206_s15 = int_to_ptr.vmem [resolvable:$false] %s8205_s15 }
  0xb0   : > { %s8207_s16 = scalar_lea.vmem %s8206_s15, 8192  ;;  %p8208_p4 = scmp.lt.s32.totalorder %s8578_s18, %s8206_s15 }
  0xb1   : > { %p8203_p1 = pnand %p8201_p12, %p8187_p8  ;;  %p8209_p13 = scmp.lt.s32.totalorder %s8207_s16, %s8200_s28 }
  0xb3   : > { %p8204_p10 = pneg %p8203_p1  ;;  %p8210_p0 = por %p8209_p13, %p8208_p4 }
  0xb5   : > { %p8211_p2 = pnand %p8210_p0, %p8204_p10 }
  0xb7   : > { %8214 = shalt.err (!%p8211_p2)
}
  0xb8   : > { %s8306_s20 = smov 128   ;;  %s8307_s29 = smov 8  }
  0xb9   : > { %7951 = dma.hbm_to_vmem [thread:$0]  (!%p8582_p11), %s8576_s13, 4096, %s8578_s18, %s8586_s10, %s8306_s20, %s8306_s20, %s8307_s29  }
  0xba   : > { %p10024_p8 = scmp.ne.s32.totalorder %s10015_s8, 0 }
  0xbb   : > { %s8617_s17 = sand.u32 (!%p10024_p8), 1, %s8285_s25  }
  0xbc   : > { %315 = sbr.rel (%p10024_p8) target bundleno = 1791 (0x6ff), region = 48  ;;  %s6146_s22 = sshll.u32 (!%p10024_p8), %s8617_s17, 8 }
  0xbd   : > { %s318_s28 = scalar_lea.sflag (!%p10024_p8), [#allocation5], %s8617_s17  ;;  %s8623_s23 = scalar_lea.vmem (!%p10024_p8), [#allocation4], %s6146_s22 }
  0xc3   : > { %8260 = dma.done.wait (%p8557_p6), %s318_s28, 4096  }
  0xc4   : > { %8262 = vsyncadd (%p8557_p6), %s318_s28, 4294963200  ;;  %p10025_p4 = scmp.eq.s32.totalorder %s8373_s30, 0 }
  0xc6   : > { %8264 = dma.done.wait (%p10025_p4), [#allocation8], 864   ;;  %p10026_p10 = pmov %p10025_p4 }
  0xc7   : > { %p10027_p11 = pmov %p10025_p4 }
  0xc8   : > { %8266 = vsyncadd (%p10026_p10), [#allocation8], 4294966432 }
  0xc9   : > { %8268 = dma.done.wait (%p10027_p11), [#allocation11], 32   ;;  %p10028_p3 = pmov %p10025_p4 }
  0xcb   : > { %8270 = vsyncadd (%p10028_p3), [#allocation11], 4294967264  ;;  %p10029_p5 = pmov %p10028_p3 }
  0xcc   : > { %p10030_p7 = pmov %p10028_p3 }
  0xcd   : > { %8272 = dma.done.wait (%p10029_p5), [#allocation14], 32  }
  0xce   : > { %8274 = vsyncadd (%p10030_p7), [#allocation14], 4294967264  ;;  %vm395_vm0 = vcmask 31744   ;;  %vm398_vm1 = vcmask 25600   ;;  %v8308_v0 = vmov 0.0   ;;  %vm660_vm2 = vcmask 1041408  }
  0xcf   : > { %396 = vst.msk [vmem:[#allocation2] sm:$0xff] %vm395_vm0, %v8308_v0  ;;  %397 = vst.msk [vmem:[#allocation2 + $0x8] sm:$0xff] %vm395_vm0, %v8308_v0  ;;  %v378_v1 = vld [vmem:[#allocation7 + $0x2] sm:$0x3]  ;;  %v377_v2 = vld [vmem:[#allocation7] sm:$0x3] }
  0xd0   : > { %399 = vst.msk [vmem:[#allocation2 + $0x10] sm:$0x3] %vm398_vm1, %v8308_v0  ;;  %402 = vst.msk [vmem:[#allocation2 + $0x28] sm:$0x3] %vm398_vm1, %v8308_v0  ;;  %v451_v3 = vld [vmem:[%s8623_s23] sm:$0xff]  ;;  %7883 = vmatprep.subr.msk.bf16.mxu0 %vm660_vm2, %v378_v1  ;;  %v662_v4 = vsel %vm660_vm2, %v378_v1, 0 }
  0xd1   : > { %400 = vst.msk [vmem:[#allocation2 + $0x18] sm:$0xff] %vm395_vm0, %v8308_v0  ;;  %401 = vst.msk [vmem:[#allocation2 + $0x20] sm:$0xff] %vm395_vm0, %v8308_v0  ;;  %v452_v7 = vld [vmem:[%s8623_s23 + $0x8] sm:$0xff]  ;;  %6760 = vmatpush3.bf16.msra.mxu0 %v662_v4  ;;  %v453_v9 = vld [vmem:[%s8623_s23 + $0x10] sm:$0xff]  ;;  %v874_v34 = vsel %vm660_vm2, %v377_v2, 0  ;;  %vm3192_vm3 = vcmask 64512  }
  0xd2   : > { %403 = vst.msk [vmem:[#allocation2 + $0x30] sm:$0xff] %vm395_vm0, %v8308_v0  ;;  %404 = vst.msk [vmem:[#allocation2 + $0x38] sm:$0xff] %vm395_vm0, %v8308_v0  ;;  %v454_v10 = vld [vmem:[%s8623_s23 + $0x18] sm:$0xff]  ;;  %v455_v11 = vld [vmem:[%s8623_s23 + $0x20] sm:$0xff]  ;;  %7884 = vmatprep.subr.msk.bf16.mxu0 %vm660_vm2, %v377_v2  ;;  %vm3195_vm4 = vcmask 58368   ;;  %vm3425_vm5 = vcmask 1043456  }
  0xd3   : > { %405 = vst.msk [vmem:[#allocation2 + $0x40] sm:$0x3] %vm398_vm1, %v8308_v0  ;;  %408 = vst.msk [vmem:[#allocation2 + $0x58] sm:$0x3] %vm398_vm1, %v8308_v0  ;;  %v456_v12 = vld [vmem:[%s8623_s23 + $0x28] sm:$0xff]  ;;  %v457_v13 = vld [vmem:[%s8623_s23 + $0x30] sm:$0xff] }
  0xd4   : > { %406 = vst.msk [vmem:[#allocation2 + $0x48] sm:$0xff] %vm395_vm0, %v8308_v0  ;;  %407 = vst.msk [vmem:[#allocation2 + $0x50] sm:$0xff] %vm395_vm0, %v8308_v0  ;;  %v458_v14 = vld [vmem:[%s8623_s23 + $0x38] sm:$0xff]  ;;  %v459_v15 = vld [vmem:[%s8623_s23 + $0x40] sm:$0xff]  ;;  %s9831_s8 = scalar_lea.vmem [#allocation16], %s6146_s22  ;;  %s6452_s9 = sshll.u32 %s8373_s30, 12 }
  0xd5   : > { %409 = vst.msk [vmem:[#allocation2 + $0x60] sm:$0xff] %vm395_vm0, %v8308_v0  ;;  %410 = vst.msk [vmem:[#allocation2 + $0x68] sm:$0xff] %vm395_vm0, %v8308_v0  ;;  %v460_v16 = vld [vmem:[%s8623_s23 + $0x48] sm:$0xff]  ;;  %v461_v17 = vld [vmem:[%s8623_s23 + $0x50] sm:$0xff]  ;;  %s6003_s13 = sshll.u32 %s9831_s8, 4  ;;  %s9952_s10 = scalar_lea.hbm %s10011_s7, %s6452_s9  ;;  %s9954_s13 = int_to_ptr.vmem [resolvable:$true] %s6003_s13 }
  0xd6   : > { %411 = vst.msk [vmem:[#allocation2 + $0x70] sm:$0x3] %vm398_vm1, %v8308_v0  ;;  %414 = vst.msk [vmem:[#allocation2 + $0x88] sm:$0x3] %vm398_vm1, %v8308_v0  ;;  %v564_v5 = vld [vmem:[#allocation2 + $0x1] sm:$0xff]  ;;  %v462_v18 = vld [vmem:[%s8623_s23 + $0x58] sm:$0xff] }
  0xd7   : > { %412 = vst.msk [vmem:[#allocation2 + $0x78] sm:$0xff] %vm395_vm0, %v8308_v0  ;;  %413 = vst.msk [vmem:[#allocation2 + $0x80] sm:$0xff] %vm395_vm0, %v8308_v0  ;;  %v565_v6 = vld [vmem:[#allocation2 + $0x9] sm:$0xff]  ;;  %v463_v19 = vld [vmem:[%s8623_s23 + $0x60] sm:$0xff]  ;;  %s5990_s30 = scalar_lea.sflag [#allocation6], %s8617_s17  ;;  %s8215_s15 = scalar_lea.vmem %s9954_s13, 4096 }
  0xd8   : > { %415 = vst.msk [vmem:[#allocation2 + $0x90] sm:$0xff] %vm395_vm0, %v8308_v0  ;;  %416 = vst.msk [vmem:[#allocation2 + $0x98] sm:$0xff] %vm395_vm0, %v8308_v0  ;;  %v596_v8 = vpack.c.bf16 %v565_v6, %v564_v5  ;;  %v464_v20 = vld [vmem:[%s8623_s23 + $0x68] sm:$0xff]  ;;  %v465_v21 = vld [vmem:[%s8623_s23 + $0x70] sm:$0xff]  ;;  %p8216_p6 = scmp.ne.s32.totalorder %s9954_s13, %s8215_s15  ;;  %p10031_p9 = scmp.ne.s32.totalorder %s10021_s12, 0 }
  0xd9   : > { %417 = vst.msk [vmem:[#allocation2 + $0xa0] sm:$0x3] %vm398_vm1, %v8308_v0  ;;  %420 = vst.msk [vmem:[#allocation2 + $0xb8] sm:$0x3] %vm398_vm1, %v8308_v0  ;;  %v466_v22 = vld [vmem:[%s8623_s23 + $0x78] sm:$0xff]  ;;  %v467_v23 = vld [vmem:[%s8623_s23 + $0x80] sm:$0xff] }
  0xda   : > { %418 = vst.msk [vmem:[#allocation2 + $0xa8] sm:$0xff] %vm395_vm0, %v8308_v0  ;;  %419 = vst.msk [vmem:[#allocation2 + $0xb0] sm:$0xff] %vm395_vm0, %v8308_v0  ;;  %6761 = vmatprep.mubr.msk.bf16.mxu0 %vm395_vm0, %v596_v8  ;;  %v468_v24 = vld [vmem:[%s8623_s23 + $0x88] sm:$0xff]  ;;  %v469_v25 = vld [vmem:[%s8623_s23 + $0x90] sm:$0xff]  ;;  %p8217_p12 = pnand %p8216_p6, %p10031_p9  ;;  %s8309_s16 = smov [#allocation16]  }
  0xdb   : > { %421 = vst.msk [vmem:[#allocation2 + $0xc0] sm:$0xff] %vm395_vm0, %v8308_v0  ;;  %422 = vst.msk [vmem:[#allocation2 + $0xc8] sm:$0xff] %vm395_vm0, %v8308_v0  ;;  %v470_v26 = vld [vmem:[%s8623_s23 + $0x98] sm:$0xff]  ;;  %v471_v28 = vld [vmem:[%s8623_s23 + $0xa0] sm:$0xff]  ;;  %s8219_s20 = sshll.u32 %s8309_s16, 4  ;;  %s8220_s20 = int_to_ptr.vmem [resolvable:$false] %s8219_s20 }
  0xdc   : > { %423 = vst.msk [vmem:[#allocation2 + $0xd0] sm:$0x3] %vm398_vm1, %v8308_v0  ;;  %426 = vst.msk [vmem:[#allocation2 + $0xe8] sm:$0x3] %vm398_vm1, %v8308_v0  ;;  %v472_v29 = vld [vmem:[%s8623_s23 + $0xa8] sm:$0xff]  ;;  %v473_v31 = vld [vmem:[%s8623_s23 + $0xb0] sm:$0xff]  ;;  %p8218_p1 = pneg %p8217_p12  ;;  %p8222_p13 = scmp.lt.s32.totalorder %s9954_s13, %s8220_s20 }
  0xdd   : > { %424 = vst.msk [vmem:[#allocation2 + $0xd8] sm:$0xff] %vm395_vm0, %v8308_v0  ;;  %425 = vst.msk [vmem:[#allocation2 + $0xe0] sm:$0xff] %vm395_vm0, %v8308_v0  ;;  %v474_v32 = vld [vmem:[%s8623_s23 + $0xb8] sm:$0xff]  ;;  %v475_v43 = vld [vmem:[%s8623_s23 + $0xc0] sm:$0xff]  ;;  %s8221_s29 = scalar_lea.vmem %s8220_s20, 8192 }
  0xde   : > { %427 = vst.msk [vmem:[#allocation2 + $0xf0] sm:$0xff] %vm395_vm0, %v8308_v0  ;;  %428 = vst.msk [vmem:[#allocation2 + $0xf8] sm:$0xff] %vm395_vm0, %v8308_v0  ;;  %v476_v45 = vld [vmem:[%s8623_s23 + $0xc8] sm:$0xff]  ;;  %v477_v46 = vld [vmem:[%s8623_s23 + $0xd0] sm:$0xff]  ;;  %p8223_p0 = scmp.lt.s32.totalorder %s8221_s29, %s8215_s15 }
  0xdf   : > { %429 = vst.msk [vmem:[#allocation2 + $0x100] sm:$0x3] %vm398_vm1, %v8308_v0  ;;  %432 = vst.msk [vmem:[#allocation2 + $0x118] sm:$0x3] %vm398_vm1, %v8308_v0  ;;  %v478_v47 = vld [vmem:[%s8623_s23 + $0xd8] sm:$0xff]  ;;  %v479_v48 = vld [vmem:[%s8623_s23 + $0xe0] sm:$0xff] }
  0xe0   : > { %430 = vst.msk [vmem:[#allocation2 + $0x108] sm:$0xff] %vm395_vm0, %v8308_v0  ;;  %431 = vst.msk [vmem:[#allocation2 + $0x110] sm:$0xff] %vm395_vm0, %v8308_v0  ;;  %v480_v49 = vld [vmem:[%s8623_s23 + $0xe8] sm:$0xff]  ;;  %v379_v50 = vld [vmem:[#allocation7 + $0x4] sm:$0x3]  ;;  %p8224_p2 = por %p8223_p0, %p8222_p13 }
  0xe1   : > { %433 = vst.msk [vmem:[#allocation2 + $0x120] sm:$0xff] %vm395_vm0, %v8308_v0  ;;  %434 = vst.msk [vmem:[#allocation2 + $0x128] sm:$0xff] %vm395_vm0, %v8308_v0 }
  0xe2   : > { %435 = vst.msk [vmem:[#allocation2 + $0x130] sm:$0x3] %vm398_vm1, %v8308_v0  ;;  %438 = vst.msk [vmem:[#allocation2 + $0x148] sm:$0x3] %vm398_vm1, %v8308_v0  ;;  %p8225_p8 = pnand %p8224_p2, %p8218_p1 }
  0xe3   : > { %436 = vst.msk [vmem:[#allocation2 + $0x138] sm:$0xff] %vm395_vm0, %v8308_v0  ;;  %437 = vst.msk [vmem:[#allocation2 + $0x140] sm:$0xff] %vm395_vm0, %v8308_v0 }
  0xe4   : > { %439 = vst.msk [vmem:[#allocation2 + $0x150] sm:$0xff] %vm395_vm0, %v8308_v0  ;;  %440 = vst.msk [vmem:[#allocation2 + $0x158] sm:$0xff] %vm395_vm0, %v8308_v0 }
  0xe5   : > { %441 = vst.msk [vmem:[#allocation2 + $0x160] sm:$0x3] %vm398_vm1, %v8308_v0  ;;  %444 = vst.msk [vmem:[#allocation2 + $0x178] sm:$0x3] %vm398_vm1, %v8308_v0 }
  0xe6   : > { %442 = vst.msk [vmem:[#allocation2 + $0x168] sm:$0xff] %vm395_vm0, %v8308_v0  ;;  %443 = vst.msk [vmem:[#allocation2 + $0x170] sm:$0xff] %vm395_vm0, %v8308_v0 }
  0xe7   : > { %445 = vst.msk [vmem:[#allocation2 + $0x180] sm:$0xff] %vm395_vm0, %v8308_v0  ;;  %446 = vst.msk [vmem:[#allocation2 + $0x188] sm:$0xff] %vm395_vm0, %v8308_v0 }
  0xe8   : > { %447 = vst.msk [vmem:[#allocation2 + $0x190] sm:$0x3] %vm398_vm1, %v8308_v0  ;;  %450 = vst.msk [vmem:[#allocation2 + $0x1a8] sm:$0x3] %vm398_vm1, %v8308_v0 }
  0xe9   : > { %448 = vst.msk [vmem:[#allocation2 + $0x198] sm:$0xff] %vm395_vm0, %v8308_v0  ;;  %449 = vst.msk [vmem:[#allocation2 + $0x1a0] sm:$0xff] %vm395_vm0, %v8308_v0 }
  0xea   : > { %484 = vst.msk [vmem:[#allocation2 + $0x19] sm:$0xff] %vm395_vm0, %v451_v3  ;;  %485 = vst.msk [vmem:[#allocation2 + $0x21] sm:$0xff] %vm395_vm0, %v452_v7 }
  0xeb   : > { %486 = vst.msk [vmem:[#allocation2 + $0x31] sm:$0xff] %vm395_vm0, %v453_v9  ;;  %487 = vst.msk [vmem:[#allocation2 + $0x39] sm:$0xff] %vm395_vm0, %v454_v10 }
  0xec   : > { %488 = vst.msk [vmem:[#allocation2 + $0x49] sm:$0xff] %vm395_vm0, %v455_v11  ;;  %489 = vst.msk [vmem:[#allocation2 + $0x51] sm:$0xff] %vm395_vm0, %v456_v12 }
  0xed   : > { %490 = vst.msk [vmem:[#allocation2 + $0x61] sm:$0xff] %vm395_vm0, %v457_v13  ;;  %491 = vst.msk [vmem:[#allocation2 + $0x69] sm:$0xff] %vm395_vm0, %v458_v14 }
  0xee   : > { %492 = vst.msk [vmem:[#allocation2 + $0x79] sm:$0xff] %vm395_vm0, %v459_v15  ;;  %493 = vst.msk [vmem:[#allocation2 + $0x81] sm:$0xff] %vm395_vm0, %v460_v16 }
  0xef   : > { %494 = vst.msk [vmem:[#allocation2 + $0x91] sm:$0xff] %vm395_vm0, %v461_v17  ;;  %495 = vst.msk [vmem:[#allocation2 + $0x99] sm:$0xff] %vm395_vm0, %v462_v18 }
  0xf0   : > { %496 = vst.msk [vmem:[#allocation2 + $0xa9] sm:$0xff] %vm395_vm0, %v463_v19  ;;  %497 = vst.msk [vmem:[#allocation2 + $0xb1] sm:$0xff] %vm395_vm0, %v464_v20  ;;  %v516_v20 = vld [vmem:[#allocation2] sm:$0xff] }
  0xf1   : > { %498 = vst.msk [vmem:[#allocation2 + $0xc1] sm:$0xff] %vm395_vm0, %v465_v21  ;;  %499 = vst.msk [vmem:[#allocation2 + $0xc9] sm:$0xff] %vm395_vm0, %v466_v22  ;;  %v566_v27 = vld [vmem:[#allocation2 + $0x19] sm:$0xff]  ;;  %v567_v30 = vld [vmem:[#allocation2 + $0x21] sm:$0xff] }
  0xf2   : > { %500 = vst.msk [vmem:[#allocation2 + $0xd9] sm:$0xff] %vm395_vm0, %v467_v23  ;;  %501 = vst.msk [vmem:[#allocation2 + $0xe1] sm:$0xff] %vm395_vm0, %v468_v24  ;;  %v8799_v33 = vpack.c.bf16 %v567_v30, %v566_v27  ;;  %v568_v35 = vld [vmem:[#allocation2 + $0x31] sm:$0xff]  ;;  %v569_v36 = vld [vmem:[#allocation2 + $0x39] sm:$0xff]  ;;  %v1134_v30 = vsel %vm660_vm2, %v379_v50, 0 }
  0xf3   : > { %502 = vst.msk [vmem:[#allocation2 + $0xf1] sm:$0xff] %vm395_vm0, %v469_v25  ;;  %503 = vst.msk [vmem:[#allocation2 + $0xf9] sm:$0xff] %vm395_vm0, %v470_v26  ;;  %v8804_v37 = vpack.c.bf16 %v569_v36, %v568_v35  ;;  %v570_v38 = vld [vmem:[#allocation2 + $0x49] sm:$0xff]  ;;  %v571_v39 = vld [vmem:[#allocation2 + $0x51] sm:$0xff] }
  0xf4   : > { %504 = vst.msk [vmem:[#allocation2 + $0x109] sm:$0xff] %vm395_vm0, %v471_v28  ;;  %505 = vst.msk [vmem:[#allocation2 + $0x111] sm:$0xff] %vm395_vm0, %v472_v29  ;;  %6762 = vmatmul.mubr.msk.bf16.vlgmr.msra.gmra.mrb[0].mxu0 %vm395_vm0, %v8799_v33  ;;  %v572_v40 = vld [vmem:[#allocation2 + $0x61] sm:$0xff]  ;;  %v573_v41 = vld [vmem:[#allocation2 + $0x69] sm:$0xff]  ;;  %v8810_v42 = vpack.c.bf16 %v571_v39, %v570_v38 }
  0xf5   : > { %506 = vst.msk [vmem:[#allocation2 + $0x121] sm:$0xff] %vm395_vm0, %v473_v31  ;;  %507 = vst.msk [vmem:[#allocation2 + $0x129] sm:$0xff] %vm395_vm0, %v474_v32  ;;  %6794 = vmatpush3.bf16.msra.mxu0 %v874_v34  ;;  %6765 = vmatprep.mubr.msk.bf16.mxu0 %vm395_vm0, %v8804_v37  ;;  %v8813_v44 = vpack.c.bf16 %v573_v41, %v572_v40  ;;  %v574_v51 = vld [vmem:[#allocation2 + $0x79] sm:$0xff]  ;;  %v575_v52 = vld [vmem:[#allocation2 + $0x81] sm:$0xff] }
  0xf6   : > { %508 = vst.msk [vmem:[#allocation2 + $0x139] sm:$0xff] %vm395_vm0, %v475_v43  ;;  %509 = vst.msk [vmem:[#allocation2 + $0x141] sm:$0xff] %vm395_vm0, %v476_v45  ;;  %7885 = vmatprep.subr.msk.bf16.mxu0 %vm660_vm2, %v379_v50  ;;  %v576_v53 = vld [vmem:[#allocation2 + $0x91] sm:$0xff]  ;;  %v577_v54 = vld [vmem:[#allocation2 + $0x99] sm:$0xff]  ;;  %v8831_v55 = vpack.c.bf16 %v575_v52, %v574_v51 }
  0xf7   : > { %510 = vst.msk [vmem:[#allocation2 + $0x151] sm:$0xff] %vm395_vm0, %v477_v46  ;;  %511 = vst.msk [vmem:[#allocation2 + $0x159] sm:$0xff] %vm395_vm0, %v478_v47  ;;  %v8833_v56 = vpack.c.bf16 %v577_v54, %v576_v53  ;;  %v578_v57 = vld [vmem:[#allocation2 + $0xa9] sm:$0xff]  ;;  %v579_v58 = vld [vmem:[#allocation2 + $0xb1] sm:$0xff] }
  0xf8   : > { %512 = vst.msk [vmem:[#allocation2 + $0x169] sm:$0xff] %vm395_vm0, %v479_v48  ;;  %513 = vst.msk [vmem:[#allocation2 + $0x171] sm:$0xff] %vm395_vm0, %v480_v49  ;;  %v580_v59 = vld [vmem:[#allocation2 + $0xc1] sm:$0xff]  ;;  %v581_v60 = vld [vmem:[#allocation2 + $0xc9] sm:$0xff]  ;;  %v8839_v61 = vpack.c.bf16 %v579_v58, %v578_v57 }
  0xf9   : > { %v8841_v62 = vpack.c.bf16 %v581_v60, %v580_v59  ;;  %v582_v63 = vld [vmem:[#allocation2 + $0xd9] sm:$0xff]  ;;  %v583_v1 = vld [vmem:[#allocation2 + $0xe1] sm:$0xff]  ;;  %v520_v26 = vld [vmem:[#allocation2 + $0x30] sm:$0xff]  ;;  %3200 = vst.msk [vmem:[#allocation3 + $0x30] sm:$0xff] %vm3192_vm3, %v8308_v0 }
  0xfa   : > { %v584_v2 = vld [vmem:[#allocation2 + $0xf1] sm:$0xff]  ;;  %v585_v3 = vld [vmem:[#allocation2 + $0xf9] sm:$0xff]  ;;  %v8847_v4 = vpack.c.bf16 %v583_v1, %v582_v63  ;;  %v517_v21 = vld [vmem:[#allocation2 + $0x8] sm:$0xff]  ;;  %3201 = vst.msk [vmem:[#allocation3 + $0x38] sm:$0xff] %vm3192_vm3, %v8308_v0 }
  0xfb   : > { %v8849_v5 = vpack.c.bf16 %v585_v3, %v584_v2  ;;  %v586_v6 = vld [vmem:[#allocation2 + $0x109] sm:$0xff]  ;;  %v587_v7 = vld [vmem:[#allocation2 + $0x111] sm:$0xff]  ;;  %v548_v23 = vpack.c.bf16 %v517_v21, %v516_v20  ;;  %v519_v25 = vld [vmem:[#allocation2 + $0x20] sm:$0xff]  ;;  %3193 = vst.msk [vmem:[#allocation3] sm:$0xff] %vm3192_vm3, %v8308_v0 }
  0xfc   : > { %6766 = vmatmul.mubr.msk.bf16.gmra.mrb[4].mxu0 %vm395_vm0, %v8810_v42  ;;  %v588_v8 = vld [vmem:[#allocation2 + $0x121] sm:$0xff]  ;;  %v589_v9 = vld [vmem:[#allocation2 + $0x129] sm:$0xff]  ;;  %v8855_v10 = vpack.c.bf16 %v587_v7, %v586_v6  ;;  %v518_v24 = vld [vmem:[#allocation2 + $0x18] sm:$0xff]  ;;  %3194 = vst.msk [vmem:[#allocation3 + $0x8] sm:$0xff] %vm3192_vm3, %v8308_v0 }
  0xfd   : > { %6769 = vmatprep.mubr.msk.bf16.mxu0 %vm395_vm0, %v8813_v44  ;;  %v8857_v11 = vpack.c.bf16 %v589_v9, %v588_v8  ;;  %v590_v12 = vld [vmem:[#allocation2 + $0x139] sm:$0xff]  ;;  %v591_v13 = vld [vmem:[#allocation2 + $0x141] sm:$0xff]  ;;  %v8876_v28 = vpack.c.bf16 %v519_v25, %v518_v24  ;;  %v523_v34 = vld [vmem:[#allocation2 + $0x50] sm:$0xff]  ;;  %3197 = vst.msk [vmem:[#allocation3 + $0x18] sm:$0xff] %vm3192_vm3, %v8308_v0 }
  0xfe   : > { %v592_v14 = vld [vmem:[#allocation2 + $0x151] sm:$0xff]  ;;  %v593_v15 = vld [vmem:[#allocation2 + $0x159] sm:$0xff]  ;;  %v8863_v16 = vpack.c.bf16 %v591_v13, %v590_v12  ;;  %v8881_v31 = vld [vmem:[#allocation7 + $0x6] sm:$0x3]  ;;  %3198 = vst.msk [vmem:[#allocation3 + $0x20] sm:$0xff] %vm3192_vm3, %v8308_v0 }
  0xff   : > { %v8865_v17 = vpack.c.bf16 %v593_v15, %v592_v14  ;;  %v594_v18 = vld [vmem:[#allocation2 + $0x169] sm:$0xff]  ;;  %v595_v19 = vld [vmem:[#allocation2 + $0x171] sm:$0xff]  ;;  %v524_v35 = vld [vmem:[#allocation2 + $0x60] sm:$0xff]  ;;  %3203 = vst.msk [vmem:[#allocation3 + $0x48] sm:$0xff] %vm3192_vm3, %v8308_v0 }
 0x100   : > { %v8871_v22 = vpack.c.bf16 %v595_v19, %v594_v18  ;;  %v521_v27 = vld [vmem:[#allocation2 + $0x38] sm:$0xff]  ;;  %v522_v32 = vld [vmem:[#allocation2 + $0x48] sm:$0xff]  ;;  %v527_v41 = vld [vmem:[#allocation2 + $0x80] sm:$0xff]  ;;  %3204 = vst.msk [vmem:[#allocation3 + $0x50] sm:$0xff] %vm3192_vm3, %v8308_v0 }
 0x101   : > { %v8878_v29 = vpack.c.bf16 %v521_v27, %v520_v26  ;;  %v525_v36 = vld [vmem:[#allocation2 + $0x68] sm:$0xff]  ;;  %v8889_v38 = vpack.c.bf16 %v523_v34, %v522_v32  ;;  %v526_v40 = vld [vmem:[#allocation2 + $0x78] sm:$0xff]  ;;  %v528_v43 = vld [vmem:[#allocation2 + $0x90] sm:$0xff]  ;;  %3206 = vst.msk [vmem:[#allocation3 + $0x60] sm:$0xff] %vm3192_vm3, %v8308_v0 }
 0x102   : > { %v8891_v39 = vpack.c.bf16 %v525_v36, %v524_v35  ;;  %v529_v45 = vld [vmem:[#allocation2 + $0x98] sm:$0xff]  ;;  %v8897_v46 = vpack.c.bf16 %v527_v41, %v526_v40  ;;  %v530_v48 = vld [vmem:[#allocation2 + $0xa8] sm:$0xff]  ;;  %v531_v49 = vld [vmem:[#allocation2 + $0xb0] sm:$0xff]  ;;  %v1426_v41 = vsel %vm660_vm2, %v8881_v31, 0  ;;  %3207 = vst.msk [vmem:[#allocation3 + $0x68] sm:$0xff] %vm3192_vm3, %v8308_v0 }
 0x103   : > { %v8899_v47 = vpack.c.bf16 %v529_v45, %v528_v43  ;;  %v532_v50 = vld [vmem:[#allocation2 + $0xc0] sm:$0xff]  ;;  %v533_v51 = vld [vmem:[#allocation2 + $0xc8] sm:$0xff]  ;;  %v8905_v52 = vpack.c.bf16 %v531_v49, %v530_v48  ;;  %v534_v54 = vld [vmem:[#allocation2 + $0xd8] sm:$0xff]  ;;  %3209 = vst.msk [vmem:[#allocation3 + $0x78] sm:$0xff] %vm3192_vm3, %v8308_v0 }
 0x104   : > { %6770 = vmatmul.mubr.msk.bf16.gmra.mrb[8].mxu0 %vm395_vm0, %v8831_v55  ;;  %v8907_v53 = vpack.c.bf16 %v533_v51, %v532_v50  ;;  %v535_v57 = vld [vmem:[#allocation2 + $0xe0] sm:$0xff]  ;;  %v536_v58 = vld [vmem:[#allocation2 + $0xf0] sm:$0xff]  ;;  %v537_v59 = vld [vmem:[#allocation2 + $0xf8] sm:$0xff]  ;;  %3210 = vst.msk [vmem:[#allocation3 + $0x80] sm:$0xff] %vm3192_vm3, %v8308_v0 }
 0x105   : > { %6773 = vmatprep.mubr.msk.bf16.mxu0 %vm395_vm0, %v8833_v56  ;;  %v8913_v60 = vpack.c.bf16 %v535_v57, %v534_v54  ;;  %v8915_v63 = vpack.c.bf16 %v537_v59, %v536_v58  ;;  %v538_v1 = vld [vmem:[#allocation2 + $0x108] sm:$0xff]  ;;  %v539_v2 = vld [vmem:[#allocation2 + $0x110] sm:$0xff]  ;;  %v540_v3 = vld [vmem:[#allocation2 + $0x120] sm:$0xff]  ;;  %3212 = vst.msk [vmem:[#allocation3 + $0x90] sm:$0xff] %vm3192_vm3, %v8308_v0 }
 0x106   : > { %v541_v6 = vld [vmem:[#allocation2 + $0x128] sm:$0xff]  ;;  %v8921_v7 = vpack.c.bf16 %v539_v2, %v538_v1  ;;  %v542_v9 = vld [vmem:[#allocation2 + $0x138] sm:$0xff]  ;;  %v543_v12 = vld [vmem:[#allocation2 + $0x140] sm:$0xff]  ;;  %3213 = vst.msk [vmem:[#allocation3 + $0x98] sm:$0xff] %vm3192_vm3, %v8308_v0 }
 0x107   : > { %v8923_v8 = vpack.c.bf16 %v541_v6, %v540_v3  ;;  %v544_v13 = vld [vmem:[#allocation2 + $0x150] sm:$0xff]  ;;  %v545_v14 = vld [vmem:[#allocation2 + $0x158] sm:$0xff]  ;;  %v8929_v15 = vpack.c.bf16 %v543_v12, %v542_v9  ;;  %v546_v21 = vld [vmem:[#allocation2 + $0x168] sm:$0xff]  ;;  %3215 = vst.msk [vmem:[#allocation3 + $0xa8] sm:$0xff] %vm3192_vm3, %v8308_v0 }
 0x108   : > { %v8931_v18 = vpack.c.bf16 %v545_v14, %v544_v13  ;;  %v481_v19 = vld [vmem:[%s8623_s23 + $0xf0] sm:$0xff]  ;;  %v482_v20 = vld [vmem:[%s8623_s23 + $0xf8] sm:$0xff]  ;;  %v1037_v24 = vld [vmem:[#allocation2 + $0x2] sm:$0xff]  ;;  %3216 = vst.msk [vmem:[#allocation3 + $0xb0] sm:$0xff] %vm3192_vm3, %v8308_v0 }
 0x109   : > { %514 = vst.msk [vmem:[#allocation2 + $0x181] sm:$0xff] %vm395_vm0, %v481_v19  ;;  %515 = vst.msk [vmem:[#allocation2 + $0x189] sm:$0xff] %vm395_vm0, %v482_v20  ;;  %v1038_v25 = vld [vmem:[#allocation2 + $0xa] sm:$0xff]  ;;  %v1040_v32 = vld [vmem:[#allocation2 + $0x22] sm:$0xff] }
 0x10a   : > { %v1069_v27 = vpack.c.bf16 %v1038_v25, %v1037_v24  ;;  %v1041_v34 = vld [vmem:[#allocation2 + $0x32] sm:$0xff]  ;;  %v1042_v35 = vld [vmem:[#allocation2 + $0x3a] sm:$0xff]  ;;  %v381_v43 = vld [vmem:[#allocation7 + $0x8] sm:$0x3]  ;;  %3218 = vst.msk [vmem:[#allocation3 + $0xc0] sm:$0xff] %vm3192_vm3, %v8308_v0 }
 0x10b   : > { %v8948_v40 = vpack.c.bf16 %v1042_v35, %v1041_v34  ;;  %v1043_v45 = vld [vmem:[#allocation2 + $0x4a] sm:$0xff]  ;;  %v1044_v48 = vld [vmem:[#allocation2 + $0x52] sm:$0xff]  ;;  %v1045_v49 = vld [vmem:[#allocation2 + $0x62] sm:$0xff]  ;;  %3219 = vst.msk [vmem:[#allocation3 + $0xc8] sm:$0xff] %vm3192_vm3, %v8308_v0 }
 0x10c   : > { %6774 = vmatmul.mubr.msk.bf16.gmra.mrb[12].mxu0 %vm395_vm0, %v8839_v61  ;;  %v1046_v50 = vld [vmem:[#allocation2 + $0x6a] sm:$0xff]  ;;  %v8957_v51 = vpack.c.bf16 %v1044_v48, %v1043_v45  ;;  %v1048_v57 = vld [vmem:[#allocation2 + $0x82] sm:$0xff]  ;;  %v1049_v58 = vld [vmem:[#allocation2 + $0x92] sm:$0xff]  ;;  %3221 = vst.msk [vmem:[#allocation3 + $0xd8] sm:$0xff] %vm3192_vm3, %v8308_v0 }
 0x10d   : > { %6777 = vmatprep.mubr.msk.bf16.mxu0 %vm395_vm0, %v8841_v62  ;;  %v8959_v54 = vpack.c.bf16 %v1046_v50, %v1045_v49  ;;  %v1050_v59 = vld [vmem:[#allocation2 + $0x9a] sm:$0xff]  ;;  %v1051_v3 = vld [vmem:[#allocation2 + $0xaa] sm:$0xff]  ;;  %v1052_v6 = vld [vmem:[#allocation2 + $0xb2] sm:$0xff]  ;;  %3222 = vst.msk [vmem:[#allocation3 + $0xe0] sm:$0xff] %vm3192_vm3, %v8308_v0 }
 0x10e   : > { %v8967_v2 = vpack.c.bf16 %v1050_v59, %v1049_v58  ;;  %v1053_v9 = vld [vmem:[#allocation2 + $0xc2] sm:$0xff]  ;;  %v1054_v12 = vld [vmem:[#allocation2 + $0xca] sm:$0xff]  ;;  %v8973_v13 = vpack.c.bf16 %v1052_v6, %v1051_v3  ;;  %v1055_v19 = vld [vmem:[#allocation2 + $0xda] sm:$0xff]  ;;  %v1718_v6 = vsel %vm660_vm2, %v381_v43, 0  ;;  %3224 = vst.msk [vmem:[#allocation3 + $0xf0] sm:$0xff] %vm3192_vm3, %v8308_v0 }
 0x10f   : > { %v8975_v14 = vpack.c.bf16 %v1054_v12, %v1053_v9  ;;  %v1056_v20 = vld [vmem:[#allocation2 + $0xe2] sm:$0xff]  ;;  %v1062_v34 = vld [vmem:[#allocation2 + $0x12a] sm:$0xff]  ;;  %v1063_v45 = vld [vmem:[#allocation2 + $0x13a] sm:$0xff]  ;;  %3225 = vst.msk [vmem:[#allocation3 + $0xf8] sm:$0xff] %vm3192_vm3, %v8308_v0 }
 0x110   : > { %v8981_v24 = vpack.c.bf16 %v1056_v20, %v1055_v19  ;;  %v1064_v48 = vld [vmem:[#allocation2 + $0x142] sm:$0xff]  ;;  %v1065_v49 = vld [vmem:[#allocation2 + $0x152] sm:$0xff]  ;;  %v1066_v50 = vld [vmem:[#allocation2 + $0x15a] sm:$0xff]  ;;  %3227 = vst.msk [vmem:[#allocation3 + $0x108] sm:$0xff] %vm3192_vm3, %v8308_v0 }
 0x111   : > { %v1067_v58 = vld [vmem:[#allocation2 + $0x16a] sm:$0xff]  ;;  %v1068_v59 = vld [vmem:[#allocation2 + $0x172] sm:$0xff]  ;;  %3228 = vst.msk [vmem:[#allocation3 + $0x110] sm:$0xff] %vm3192_vm3, %v8308_v0  ;;  %3230 = vst.msk [vmem:[#allocation3 + $0x120] sm:$0xff] %vm3192_vm3, %v8308_v0 }
 0x112   : > { %v9005_v3 = vpack.c.bf16 %v1068_v59, %v1067_v58  ;;  %v382_v9 = vld [vmem:[#allocation7 + $0xa] sm:$0x3]  ;;  %v383_v20 = vld [vmem:[#allocation7 + $0xc] sm:$0x3]  ;;  %3231 = vst.msk [vmem:[#allocation3 + $0x128] sm:$0xff] %vm3192_vm3, %v8308_v0  ;;  %3233 = vst.msk [vmem:[#allocation3 + $0x138] sm:$0xff] %vm3192_vm3, %v8308_v0 }
 0x113   : > { %v2010_v19 = vsel %vm660_vm2, %v382_v9, 0  ;;  %3234 = vst.msk [vmem:[#allocation3 + $0x140] sm:$0xff] %vm3192_vm3, %v8308_v0  ;;  %3236 = vst.msk [vmem:[#allocation3 + $0x150] sm:$0xff] %vm3192_vm3, %v8308_v0 }
 0x114   : > { %6778 = vmatmul.mubr.msk.bf16.gmra.mrb[16].mxu0 %vm395_vm0, %v8847_v4  ;;  %3237 = vst.msk [vmem:[#allocation3 + $0x158] sm:$0xff] %vm3192_vm3, %v8308_v0  ;;  %3239 = vst.msk [vmem:[#allocation3 + $0x168] sm:$0xff] %vm3192_vm3, %v8308_v0 }
 0x115   : > { %6781 = vmatprep.mubr.msk.bf16.mxu0 %vm395_vm0, %v8849_v5  ;;  %3240 = vst.msk [vmem:[#allocation3 + $0x170] sm:$0xff] %vm3192_vm3, %v8308_v0  ;;  %3242 = vst.msk [vmem:[#allocation3 + $0x180] sm:$0xff] %vm3192_vm3, %v8308_v0 }
 0x116   : > { %3243 = vst.msk [vmem:[#allocation3 + $0x188] sm:$0xff] %vm3192_vm3, %v8308_v0  ;;  %3245 = vst.msk [vmem:[#allocation3 + $0x198] sm:$0xff] %vm3192_vm3, %v8308_v0 }
 0x117   : > { %3246 = vst.msk [vmem:[#allocation3 + $0x1a0] sm:$0xff] %vm3192_vm3, %v8308_v0 }
 0x118   : > { %3202 = vst.msk [vmem:[#allocation3 + $0x40] sm:$0x3] %vm3195_vm4, %v8308_v0  ;;  %3196 = vst.msk [vmem:[#allocation3 + $0x10] sm:$0x3] %vm3195_vm4, %v8308_v0 }
 0x119   : > { %3199 = vst.msk [vmem:[#allocation3 + $0x28] sm:$0x3] %vm3195_vm4, %v8308_v0  ;;  %3205 = vst.msk [vmem:[#allocation3 + $0x58] sm:$0x3] %vm3195_vm4, %v8308_v0 }
 0x11a   : > { %3208 = vst.msk [vmem:[#allocation3 + $0x70] sm:$0x3] %vm3195_vm4, %v8308_v0  ;;  %3211 = vst.msk [vmem:[#allocation3 + $0x88] sm:$0x3] %vm3195_vm4, %v8308_v0 }
 0x11b   : > { %3214 = vst.msk [vmem:[#allocation3 + $0xa0] sm:$0x3] %vm3195_vm4, %v8308_v0  ;;  %3217 = vst.msk [vmem:[#allocation3 + $0xb8] sm:$0x3] %vm3195_vm4, %v8308_v0 }
 0x11c   : > { %6782 = vmatmul.mubr.msk.bf16.gmra.mrb[20].mxu0 %vm395_vm0, %v8855_v10  ;;  %3220 = vst.msk [vmem:[#allocation3 + $0xd0] sm:$0x3] %vm3195_vm4, %v8308_v0  ;;  %3223 = vst.msk [vmem:[#allocation3 + $0xe8] sm:$0x3] %vm3195_vm4, %v8308_v0 }
 0x11d   : > { %6785 = vmatprep.mubr.msk.bf16.mxu0 %vm395_vm0, %v8857_v11  ;;  %3226 = vst.msk [vmem:[#allocation3 + $0x100] sm:$0x3] %vm3195_vm4, %v8308_v0  ;;  %3229 = vst.msk [vmem:[#allocation3 + $0x118] sm:$0x3] %vm3195_vm4, %v8308_v0 }
 0x11e   : > { %3232 = vst.msk [vmem:[#allocation3 + $0x130] sm:$0x3] %vm3195_vm4, %v8308_v0  ;;  %3235 = vst.msk [vmem:[#allocation3 + $0x148] sm:$0x3] %vm3195_vm4, %v8308_v0 }
 0x11f   : > { %3238 = vst.msk [vmem:[#allocation3 + $0x160] sm:$0x3] %vm3195_vm4, %v8308_v0  ;;  %3241 = vst.msk [vmem:[#allocation3 + $0x178] sm:$0x3] %vm3195_vm4, %v8308_v0 }
 0x120   : > { %3244 = vst.msk [vmem:[#allocation3 + $0x190] sm:$0x3] %vm3195_vm4, %v8308_v0  ;;  %3247 = vst.msk [vmem:[#allocation3 + $0x1a8] sm:$0x3] %vm3195_vm4, %v8308_v0 }
 0x124   : > { %6786 = vmatmul.mubr.msk.bf16.gmra.mrb[24].mxu0 %vm395_vm0, %v8863_v16 }
 0x125   : > { %6789 = vmatprep.mubr.msk.bf16.mxu0 %vm395_vm0, %v8865_v17 }
 0x12c   : > { %6790 = vmatmul.mubr.msk.bf16.gmra.mrb[28].mxu0 %vm395_vm0, %v8871_v22 }
 0x12d   : > { %6795 = vmatprep.mubr.msk.bf16.mxu0 %vm395_vm0, %v548_v23  ;;  %v547_v23 = vld [vmem:[#allocation2 + $0x170] sm:$0xff] }
 0x12e   : > { %v8941_v26 = vpack.c.bf16 %v547_v23, %v546_v21  ;;  %v1057_v21 = vld [vmem:[#allocation2 + $0xf2] sm:$0xff]  ;;  %v1058_v23 = vld [vmem:[#allocation2 + $0xfa] sm:$0xff] }
 0x12f   : > { %v8983_v25 = vpack.c.bf16 %v1058_v23, %v1057_v21  ;;  %v384_v21 = vld [vmem:[#allocation7 + $0xe] sm:$0x3] }
 0x130   : > { %v1944_v23 = vld [vmem:[#allocation2 + $0x18a] sm:$0xff] }
 0x134   : > { %6796 = vmatmul.mubr.msk.bf16.vlgmr.msra.gmra.mrb[0].mxu0 %vm395_vm0, %v8876_v28 }
 0x135   : > { %6828 = vmatpush3.bf16.msra.mxu0 %v1134_v30  ;;  %6799 = vmatprep.mubr.msk.bf16.mxu0 %vm395_vm0, %v8878_v29  ;;  %v1039_v30 = vld [vmem:[#allocation2 + $0x1a] sm:$0xff] }
 0x136   : > { %7886 = vmatprep.subr.msk.bf16.mxu0 %vm660_vm2, %v8881_v31  ;;  %v8946_v36 = vpack.c.bf16 %v1040_v32, %v1039_v30  ;;  %v1047_v31 = vld [vmem:[#allocation2 + $0x7a] sm:$0xff]  ;;  %v1060_v30 = vld [vmem:[#allocation2 + $0x112] sm:$0xff]  ;;  %v1061_v32 = vld [vmem:[#allocation2 + $0x122] sm:$0xff] }
 0x137   : > { %v8965_v1 = vpack.c.bf16 %v1048_v57, %v1047_v31  ;;  %v8997_v31 = vpack.c.bf16 %v1064_v48, %v1063_v45  ;;  %v8999_v57 = vpack.c.bf16 %v1066_v50, %v1065_v49 }
 0x13c   : > { %6800 = vmatmul.mubr.msk.bf16.gmra.mrb[4].mxu0 %vm395_vm0, %v8889_v38 }
 0x13d   : > { %6803 = vmatprep.mubr.msk.bf16.mxu0 %vm395_vm0, %v8891_v39 }
 0x144   : > { %6804 = vmatmul.mubr.msk.bf16.gmra.mrb[8].mxu0 %vm395_vm0, %v8897_v46 }
 0x145   : > { %6807 = vmatprep.mubr.msk.bf16.mxu0 %vm395_vm0, %v8899_v47 }
 0x14c   : > { %6808 = vmatmul.mubr.msk.bf16.gmra.mrb[12].mxu0 %vm395_vm0, %v8905_v52 }
 0x14d   : > { %6811 = vmatprep.mubr.msk.bf16.mxu0 %vm395_vm0, %v8907_v53 }
 0x154   : > { %6812 = vmatmul.mubr.msk.bf16.gmra.mrb[16].mxu0 %vm395_vm0, %v8913_v60 }
 0x155   : > { %6815 = vmatprep.mubr.msk.bf16.mxu0 %vm395_vm0, %v8915_v63 }
 0x15c   : > { %6816 = vmatmul.mubr.msk.bf16.gmra.mrb[20].mxu0 %vm395_vm0, %v8921_v7 }
 0x15d   : > { %6819 = vmatprep.mubr.msk.bf16.mxu0 %vm395_vm0, %v8923_v8 }
 0x164   : > { %6820 = vmatmul.mubr.msk.bf16.gmra.mrb[24].mxu0 %vm395_vm0, %v8929_v15 }
 0x165   : > { %6823 = vmatprep.mubr.msk.bf16.mxu0 %vm395_vm0, %v8931_v18 }
 0x16c   : > { %6824 = vmatmul.mubr.msk.bf16.gmra.mrb[28].mxu0 %vm395_vm0, %v8941_v26 }
 0x16d   : > { %6829 = vmatprep.mubr.msk.bf16.mxu0 %vm395_vm0, %v1069_v27  ;;  %v1059_v27 = vld [vmem:[#allocation2 + $0x10a] sm:$0xff] }
 0x16e   : > { %v8989_v35 = vpack.c.bf16 %v1060_v30, %v1059_v27  ;;  %v2595_v30 = vsel %vm660_vm2, %v384_v21, 0 }
 0x174   : > { %6830 = vmatmul.mubr.msk.bf16.vlgmr.msra.gmra.mrb[0].mxu0 %vm395_vm0, %v8946_v36 }
 0x175   : > { %6862 = vmatpush3.bf16.msra.mxu0 %v1426_v41  ;;  %6833 = vmatprep.mubr.msk.bf16.mxu0 %vm395_vm0, %v8948_v40  ;;  %v8991_v41 = vpack.c.bf16 %v1062_v34, %v1061_v32  ;;  %v385_v32 = vld [vmem:[#allocation7 + $0x10] sm:$0x3] }
 0x176   : > { %7887 = vmatprep.subr.msk.bf16.mxu0 %vm660_vm2, %v381_v43  ;;  %v1360_v43 = vld [vmem:[#allocation2 + $0x188] sm:$0xff] }
 0x17c   : > { %6834 = vmatmul.mubr.msk.bf16.gmra.mrb[4].mxu0 %vm395_vm0, %v8957_v51 }
 0x17d   : > { %6837 = vmatprep.mubr.msk.bf16.mxu0 %vm395_vm0, %v8959_v54 }
 0x184   : > { %6838 = vmatmul.mubr.msk.bf16.gmra.mrb[8].mxu0 %vm395_vm0, %v8965_v1 }
 0x185   : > { %6841 = vmatprep.mubr.msk.bf16.mxu0 %vm395_vm0, %v8967_v2 }
 0x18c   : > { %6842 = vmatmul.mubr.msk.bf16.gmra.mrb[12].mxu0 %vm395_vm0, %v8973_v13 }
 0x18d   : > { %6845 = vmatprep.mubr.msk.bf16.mxu0 %vm395_vm0, %v8975_v14 }
 0x194   : > { %6846 = vmatmul.mubr.msk.bf16.gmra.mrb[16].mxu0 %vm395_vm0, %v8981_v24 }
 0x195   : > { %6849 = vmatprep.mubr.msk.bf16.mxu0 %vm395_vm0, %v8983_v25 }
 0x19c   : > { %6850 = vmatmul.mubr.msk.bf16.gmra.mrb[20].mxu0 %vm395_vm0, %v8989_v35 }
 0x19d   : > { %6853 = vmatprep.mubr.msk.bf16.mxu0 %vm395_vm0, %v8991_v41 }
 0x1a4   : > { %6854 = vmatmul.mubr.msk.bf16.gmra.mrb[24].mxu0 %vm395_vm0, %v8997_v31 }
 0x1a5   : > { %6857 = vmatprep.mubr.msk.bf16.mxu0 %vm395_vm0, %v8999_v57 }
 0x1ac   : > { %6858 = vmatmul.mubr.msk.bf16.gmra.mrb[28].mxu0 %vm395_vm0, %v9005_v3 }
 0x1ad   : > { %6863 = vmatprep.mubr.msk.bf16.mxu0 %vm395_vm0, %v8876_v28  ;;  %v1359_v28 = vld [vmem:[#allocation2 + $0x180] sm:$0xff] }
 0x1ae   : > { %v9041_v12 = vpack.c.bf16 %v1360_v43, %v1359_v28 }
 0x1b4   : > { %6864 = vmatmul.mubr.msk.bf16.vlgmr.msra.gmra.mrb[0].mxu0 %vm395_vm0, %v8878_v29 }
 0x1b5   : > { %6896 = vmatpush3.bf16.msra.mxu0 %v1718_v6  ;;  %6867 = vmatprep.mubr.msk.bf16.mxu0 %vm395_vm0, %v8889_v38 }
 0x1b6   : > { %7888 = vmatprep.subr.msk.bf16.mxu0 %vm660_vm2, %v382_v9 }
 0x1bc   : > { %6868 = vmatmul.mubr.msk.bf16.gmra.mrb[4].mxu0 %vm395_vm0, %v8891_v39 }
 0x1bd   : > { %6871 = vmatprep.mubr.msk.bf16.mxu0 %vm395_vm0, %v8897_v46 }
 0x1c4   : > { %6872 = vmatmul.mubr.msk.bf16.gmra.mrb[8].mxu0 %vm395_vm0, %v8899_v47 }
 0x1c5   : > { %6875 = vmatprep.mubr.msk.bf16.mxu0 %vm395_vm0, %v8905_v52 }
 0x1cc   : > { %6876 = vmatmul.mubr.msk.bf16.gmra.mrb[12].mxu0 %vm395_vm0, %v8907_v53 }
 0x1cd   : > { %6879 = vmatprep.mubr.msk.bf16.mxu0 %vm395_vm0, %v8913_v60 }
 0x1d4   : > { %6880 = vmatmul.mubr.msk.bf16.gmra.mrb[16].mxu0 %vm395_vm0, %v8915_v63 }
 0x1d5   : > { %6883 = vmatprep.mubr.msk.bf16.mxu0 %vm395_vm0, %v8921_v7 }
 0x1dc   : > { %6884 = vmatmul.mubr.msk.bf16.gmra.mrb[20].mxu0 %vm395_vm0, %v8923_v8 }
 0x1dd   : > { %6887 = vmatprep.mubr.msk.bf16.mxu0 %vm395_vm0, %v8929_v15 }
 0x1e4   : > { %6888 = vmatmul.mubr.msk.bf16.gmra.mrb[24].mxu0 %vm395_vm0, %v8931_v18 }
 0x1e5   : > { %6891 = vmatprep.mubr.msk.bf16.mxu0 %vm395_vm0, %v8941_v26 }
 0x1ec   : > { %6892 = vmatmul.mubr.msk.bf16.gmra.mrb[28].mxu0 %vm395_vm0, %v9041_v12 }
 0x1ed   : > { %6897 = vmatprep.mubr.msk.bf16.mxu0 %vm395_vm0, %v8799_v33  ;;  %v1651_v33 = vld [vmem:[#allocation2 + $0x181] sm:$0xff] }
 0x1f4   : > { %6898 = vmatmul.mubr.msk.bf16.vlgmr.msra.gmra.mrb[0].mxu0 %vm395_vm0, %v8804_v37  ;;  %v1652_v37 = vld [vmem:[#allocation2 + $0x189] sm:$0xff] }
 0x1f5   : > { %6930 = vmatpush3.bf16.msra.mxu0 %v2010_v19  ;;  %6901 = vmatprep.mubr.msk.bf16.mxu0 %vm395_vm0, %v8810_v42  ;;  %v9077_v42 = vpack.c.bf16 %v1652_v37, %v1651_v33 }
 0x1f6   : > { %7889 = vmatprep.subr.msk.bf16.mxu0 %vm660_vm2, %v383_v20 }
 0x1fc   : > { %6902 = vmatmul.mubr.msk.bf16.gmra.mrb[4].mxu0 %vm395_vm0, %v8813_v44  ;;  %v2303_v44 = vsel %vm660_vm2, %v383_v20, 0 }
 0x1fd   : > { %6905 = vmatprep.mubr.msk.bf16.mxu0 %vm395_vm0, %v8831_v55 }
 0x204   : > { %6906 = vmatmul.mubr.msk.bf16.gmra.mrb[8].mxu0 %vm395_vm0, %v8833_v56 }
 0x205   : > { %6909 = vmatprep.mubr.msk.bf16.mxu0 %vm395_vm0, %v8839_v61 }
 0x20c   : > { %6910 = vmatmul.mubr.msk.bf16.gmra.mrb[12].mxu0 %vm395_vm0, %v8841_v62 }
 0x20d   : > { %6913 = vmatprep.mubr.msk.bf16.mxu0 %vm395_vm0, %v8847_v4 }
 0x214   : > { %6914 = vmatmul.mubr.msk.bf16.gmra.mrb[16].mxu0 %vm395_vm0, %v8849_v5 }
 0x215   : > { %6917 = vmatprep.mubr.msk.bf16.mxu0 %vm395_vm0, %v8855_v10 }
 0x21c   : > { %6918 = vmatmul.mubr.msk.bf16.gmra.mrb[20].mxu0 %vm395_vm0, %v8857_v11 }
 0x21d   : > { %6921 = vmatprep.mubr.msk.bf16.mxu0 %vm395_vm0, %v8863_v16 }
 0x224   : > { %6922 = vmatmul.mubr.msk.bf16.gmra.mrb[24].mxu0 %vm395_vm0, %v8865_v17 }
 0x225   : > { %6925 = vmatprep.mubr.msk.bf16.mxu0 %vm395_vm0, %v8871_v22 }
 0x22c   : > { %6926 = vmatmul.mubr.msk.bf16.gmra.mrb[28].mxu0 %vm395_vm0, %v9077_v42 }
 0x22d   : > { %6931 = vmatprep.mubr.msk.bf16.mxu0 %vm395_vm0, %v8946_v36  ;;  %v1943_v36 = vld [vmem:[#allocation2 + $0x182] sm:$0xff] }
 0x22e   : > { %v9113_v27 = vpack.c.bf16 %v1944_v23, %v1943_v36 }
 0x234   : > { %6932 = vmatmul.mubr.msk.bf16.vlgmr.msra.gmra.mrb[0].mxu0 %vm395_vm0, %v8948_v40 }
 0x235   : > { %6964 = vmatpush3.bf16.msra.mxu0 %v2303_v44  ;;  %6935 = vmatprep.mubr.msk.bf16.mxu0 %vm395_vm0, %v8957_v51 }
 0x236   : > { %7890 = vmatprep.subr.msk.bf16.mxu0 %vm660_vm2, %v384_v21 }
 0x23c   : > { %6936 = vmatmul.mubr.msk.bf16.gmra.mrb[4].mxu0 %vm395_vm0, %v8959_v54 }
 0x23d   : > { %6939 = vmatprep.mubr.msk.bf16.mxu0 %vm395_vm0, %v8965_v1 }
 0x244   : > { %6940 = vmatmul.mubr.msk.bf16.gmra.mrb[8].mxu0 %vm395_vm0, %v8967_v2 }
 0x245   : > { %6943 = vmatprep.mubr.msk.bf16.mxu0 %vm395_vm0, %v8973_v13 }
 0x24c   : > { %6944 = vmatmul.mubr.msk.bf16.gmra.mrb[12].mxu0 %vm395_vm0, %v8975_v14 }
 0x24d   : > { %6947 = vmatprep.mubr.msk.bf16.mxu0 %vm395_vm0, %v8981_v24 }
 0x254   : > { %6948 = vmatmul.mubr.msk.bf16.gmra.mrb[16].mxu0 %vm395_vm0, %v8983_v25 }
 0x255   : > { %6951 = vmatprep.mubr.msk.bf16.mxu0 %vm395_vm0, %v8989_v35 }
 0x25c   : > { %6952 = vmatmul.mubr.msk.bf16.gmra.mrb[20].mxu0 %vm395_vm0, %v8991_v41 }
 0x25d   : > { %6955 = vmatprep.mubr.msk.bf16.mxu0 %vm395_vm0, %v8997_v31 }
 0x264   : > { %6956 = vmatmul.mubr.msk.bf16.gmra.mrb[24].mxu0 %vm395_vm0, %v8999_v57 }
 0x265   : > { %6959 = vmatprep.mubr.msk.bf16.mxu0 %vm395_vm0, %v9005_v3 }
 0x26c   : > { %6960 = vmatmul.mubr.msk.bf16.gmra.mrb[28].mxu0 %vm395_vm0, %v9113_v27 }
 0x26d   : > { %6965 = vmatprep.mubr.msk.bf16.mxu0 %vm395_vm0, %v8878_v29  ;;  %v2236_v29 = vld [vmem:[#allocation2 + $0x198] sm:$0xff] }
 0x274   : > { %6966 = vmatmul.mubr.msk.bf16.vlgmr.msra.gmra.mrb[0].mxu0 %vm395_vm0, %v8889_v38  ;;  %v2237_v38 = vld [vmem:[#allocation2 + $0x1a0] sm:$0xff] }
 0x275   : > { %6998 = vmatpush3.bf16.msra.mxu0 %v2595_v30  ;;  %6969 = vmatprep.mubr.msk.bf16.mxu0 %vm395_vm0, %v8891_v39  ;;  %v2498_v39 = vld [vmem:[#allocation2 + $0x31] sm:$0xff] }
 0x276   : > { %7891 = vmatprep.subr.msk.bf16.mxu0 %vm660_vm2, %v385_v32 }
 0x27c   : > { %6970 = vmatmul.mubr.msk.bf16.gmra.mrb[4].mxu0 %vm395_vm0, %v8897_v46  ;;  %v2499_v46 = vld [vmem:[#allocation2 + $0x39] sm:$0xff] }
 0x27d   : > { %6973 = vmatprep.mubr.msk.bf16.mxu0 %vm395_vm0, %v8899_v47  ;;  %v2253_v47 = vpack.c.bf16 %v2237_v38, %v2236_v29 }
 0x284   : > { %6974 = vmatmul.mubr.msk.bf16.gmra.mrb[8].mxu0 %vm395_vm0, %v8905_v52  ;;  %v2530_v52 = vpack.c.bf16 %v2499_v46, %v2498_v39 }
 0x285   : > { %6977 = vmatprep.mubr.msk.bf16.mxu0 %vm395_vm0, %v8907_v53  ;;  %v2500_v53 = vld [vmem:[#allocation2 + $0x49] sm:$0xff] }
 0x28c   : > { %6978 = vmatmul.mubr.msk.bf16.gmra.mrb[12].mxu0 %vm395_vm0, %v8913_v60  ;;  %v2501_v60 = vld [vmem:[#allocation2 + $0x51] sm:$0xff] }
 0x28d   : > { %6981 = vmatprep.mubr.msk.bf16.mxu0 %vm395_vm0, %v8915_v63  ;;  %v2502_v63 = vld [vmem:[#allocation2 + $0x61] sm:$0xff] }
 0x294   : > { %6982 = vmatmul.mubr.msk.bf16.gmra.mrb[16].mxu0 %vm395_vm0, %v8921_v7  ;;  %v2503_v7 = vld [vmem:[#allocation2 + $0x69] sm:$0xff] }
 0x295   : > { %6985 = vmatprep.mubr.msk.bf16.mxu0 %vm395_vm0, %v8923_v8  ;;  %v2531_v8 = vpack.c.bf16 %v2501_v60, %v2500_v53 }
 0x29c   : > { %6986 = vmatmul.mubr.msk.bf16.gmra.mrb[20].mxu0 %vm395_vm0, %v8929_v15  ;;  %v2532_v15 = vpack.c.bf16 %v2503_v7, %v2502_v63 }
 0x29d   : > { %6989 = vmatprep.mubr.msk.bf16.mxu0 %vm395_vm0, %v8931_v18  ;;  %v2887_v18 = vsel %vm660_vm2, %v385_v32, 0 }
 0x2a4   : > { %6990 = vmatmul.mubr.msk.bf16.gmra.mrb[24].mxu0 %vm395_vm0, %v8941_v26  ;;  %v386_v26 = vld [vmem:[#allocation9] sm:$0xf] }
 0x2a5   : > { %6993 = vmatprep.mubr.msk.bf16.mxu0 %vm395_vm0, %v9041_v12 }
 0x2ac   : > { %6994 = vmatmul.mubr.msk.bf16.gmra.mrb[28].mxu0 %vm395_vm0, %v2253_v47  ;;  %v3639_v47 = vsel %vm3425_vm5, %v386_v26, 0 }
 0x2ad   : > { %6999 = vmatprep.mubr.msk.bf16.mxu0 %vm395_vm0, %v2530_v52 }
 0x2b4   : > { %7000 = vmatmul.mubr.msk.bf16.vlgmr.msra.gmra.mrb[0].mxu0 %vm395_vm0, %v2531_v8  ;;  %v9359_v8 = vld [vmem:[#allocation9 + $0x8] sm:$0xf] }
 0x2b5   : > { %7032 = vmatpush3.bf16.msra.mxu0 %v2887_v18  ;;  %7003 = vmatprep.mubr.msk.bf16.mxu0 %vm395_vm0, %v2532_v15 }
 0x2bc   : > { %7004 = vmatmul.mubr.msk.bf16.gmra.mrb[4].mxu0 %vm395_vm0, %v8831_v55  ;;  %v2528_v55 = vld [vmem:[#allocation2 + $0x199] sm:$0xff] }
 0x2bd   : > { %7007 = vmatprep.mubr.msk.bf16.mxu0 %vm395_vm0, %v8833_v56  ;;  %v2529_v56 = vld [vmem:[#allocation2 + $0x1a1] sm:$0xff] }
 0x2c4   : > { %7008 = vmatmul.mubr.msk.bf16.gmra.mrb[8].mxu0 %vm395_vm0, %v8839_v61  ;;  %v2545_v61 = vpack.c.bf16 %v2529_v56, %v2528_v55 }
 0x2c5   : > { %7011 = vmatprep.mubr.msk.bf16.mxu0 %vm395_vm0, %v8841_v62  ;;  %v2820_v62 = vld [vmem:[#allocation2 + $0x19a] sm:$0xff] }
 0x2cc   : > { %7012 = vmatmul.mubr.msk.bf16.gmra.mrb[12].mxu0 %vm395_vm0, %v8847_v4  ;;  %v2821_v4 = vld [vmem:[#allocation2 + $0x1a2] sm:$0xff] }
 0x2cd   : > { %7015 = vmatprep.mubr.msk.bf16.mxu0 %vm395_vm0, %v8849_v5  ;;  %v2837_v5 = vpack.c.bf16 %v2821_v4, %v2820_v62 }
 0x2d4   : > { %7016 = vmatmul.mubr.msk.bf16.gmra.mrb[16].mxu0 %vm395_vm0, %v8855_v10  ;;  %v387_v10 = vld [vmem:[#allocation9 + $0x4] sm:$0xf] }
 0x2d5   : > { %7019 = vmatprep.mubr.msk.bf16.mxu0 %vm395_vm0, %v8857_v11  ;;  %7892 = vmatprep.subr.msk.bf16.mxu1 %vm3425_vm5, %v387_v10  ;;  %v3427_v11 = vsel %vm3425_vm5, %v387_v10, 0 }
 0x2d6   : > { %7066 = vmatpush3.bf16.msra.mxu1 %v3427_v11 }
 0x2d7   : > { %7893 = vmatprep.subr.msk.bf16.mxu1 %vm3425_vm5, %v386_v26 }
 0x2dc   : > { %7020 = vmatmul.mubr.msk.bf16.gmra.mrb[20].mxu0 %vm395_vm0, %v8863_v16  ;;  %v3329_v16 = vld [vmem:[#allocation3 + $0x1] sm:$0xff] }
 0x2dd   : > { %7023 = vmatprep.mubr.msk.bf16.mxu0 %vm395_vm0, %v8865_v17  ;;  %v3330_v17 = vld [vmem:[#allocation3 + $0x9] sm:$0xff] }
 0x2e4   : > { %7024 = vmatmul.mubr.msk.bf16.gmra.mrb[24].mxu0 %vm395_vm0, %v8871_v22  ;;  %v3361_v22 = vpack.c.bf16 %v3330_v17, %v3329_v16 }
 0x2e5   : > { %7027 = vmatprep.mubr.msk.bf16.mxu0 %vm395_vm0, %v9077_v42 }
 0x2e6   : > { %7067 = vmatprep.mubr.msk.bf16.mxu1 %vm3192_vm3, %v3361_v22 }
 0x2ec   : > { %7028 = vmatmul.mubr.msk.bf16.gmra.mrb[28].mxu0 %vm395_vm0, %v2545_v61 }
 0x2ed   : > { %7033 = vmatprep.mubr.msk.bf16.mxu0 %vm395_vm0, %v8948_v40  ;;  %v9322_v40 = vld [vmem:[#allocation10] ss:$0 sm:$0xff] }
 0x2f4   : > { %7034 = vmatmul.mubr.msk.bf16.vlgmr.msra.gmra.mrb[0].mxu0 %vm395_vm0, %v8957_v51 }
 0x2f5   : > { %7037 = vmatprep.mubr.msk.bf16.mxu0 %vm395_vm0, %v8959_v54  ;;  %v9324_v54 = vld [vmem:[#allocation12] ss:$0 sm:$0xff] }
 0x2fc   : > { %7038 = vmatmul.mubr.msk.bf16.gmra.mrb[4].mxu0 %vm395_vm0, %v8965_v1 }
 0x2fd   : > { %7041 = vmatprep.mubr.msk.bf16.mxu0 %vm395_vm0, %v8967_v2 }
 0x304   : > { %7042 = vmatmul.mubr.msk.bf16.gmra.mrb[8].mxu0 %vm395_vm0, %v8973_v13 }
 0x305   : > { %7045 = vmatprep.mubr.msk.bf16.mxu0 %vm395_vm0, %v8975_v14 }
 0x30c   : > { %7046 = vmatmul.mubr.msk.bf16.gmra.mrb[12].mxu0 %vm395_vm0, %v8981_v24 }
 0x30d   : > { %7049 = vmatprep.mubr.msk.bf16.mxu0 %vm395_vm0, %v8983_v25 }
 0x314   : > { %7050 = vmatmul.mubr.msk.bf16.gmra.mrb[16].mxu0 %vm395_vm0, %v8989_v35 }
 0x315   : > { %7053 = vmatprep.mubr.msk.bf16.mxu0 %vm395_vm0, %v8991_v41 }
 0x31c   : > { %7054 = vmatmul.mubr.msk.bf16.gmra.mrb[20].mxu0 %vm395_vm0, %v8997_v31 }
 0x31d   : > { %7057 = vmatprep.mubr.msk.bf16.mxu0 %vm395_vm0, %v8999_v57 }
 0x324   : > { %7058 = vmatmul.mubr.msk.bf16.gmra.mrb[24].mxu0 %vm395_vm0, %v9005_v3 }
 0x325   : > { %7061 = vmatprep.mubr.msk.bf16.mxu0 %vm395_vm0, %v9113_v27 }
 0x32c   : > { %7062 = vmatmul.mubr.msk.bf16.gmra.mrb[28].mxu0 %vm395_vm0, %v2837_v5 }
 0x3c7   : > { %v7035_v51 = vpop.f32.mrb[0].mxu0 }
 0x3c8   : > { %v3091_v0 = vmul.f32 %v7035_v51, %v9322_v40  ;;  %v2923_v1 = vpop.f32.mrb[1].mxu0 }
 0x3c9   : > { %v3089_v2 = vmul.f32 %v9322_v40, %v2923_v1  ;;  %v7036_v13 = vpop.f32.mrb[2].mxu0 }
 0x3ca   : > { %v3130_v14 = vadd.f32 %v9324_v54, %v3091_v0  ;;  %v3092_v24 = vmul.f32 %v7036_v13, %v9322_v40  ;;  %v2926_v25 = vpop.f32.mrb[3].mxu0 }
 0x3cb   : > { %v3128_v34 = vadd.f32 %v9324_v54, %v3089_v2  ;;  %v3090_v35 = vmul.f32 %v9322_v40, %v2926_v25 }
 0x3cc   : > { %v3162_v41 = vmax.f32 %v3130_v14, 0.0  ;;  %v3131_v45 = vadd.f32 %v9324_v54, %v3092_v24 }
 0x3cd   : > { %v3160_v48 = vmax.f32 %v3128_v34, 0.0  ;;  %v3129_v49 = vadd.f32 %v9324_v54, %v3090_v35 }
 0x3ce   : > { %3251 = vst.msk [vmem:[#allocation3 + $0x31] sm:$0xff] %vm3192_vm3, %v3162_v41  ;;  %v3163_v50 = vmax.f32 %v3131_v45, 0.0 }
 0x3cf   : > { %3249 = vst.msk [vmem:[#allocation3 + $0x19] sm:$0xff] %vm3192_vm3, %v3160_v48  ;;  %v3161_v31 = vmax.f32 %v3129_v49, 0.0  ;;  %v7039_v57 = vpop.f32.mrb[4].mxu0 }
 0x3d0   : > { %3252 = vst.msk [vmem:[#allocation3 + $0x39] sm:$0xff] %vm3192_vm3, %v3163_v50  ;;  %v3095_v58 = vmul.f32 %v7039_v57, %v9322_v40  ;;  %v2939_v59 = vpop.f32.mrb[5].mxu0 }
 0x3d1   : > { %3250 = vst.msk [vmem:[#allocation3 + $0x21] sm:$0xff] %vm3192_vm3, %v3161_v31  ;;  %v3093_v3 = vmul.f32 %v9322_v40, %v2939_v59  ;;  %v7040_v6 = vpop.f32.mrb[6].mxu0 }
 0x3d2   : > { %v3134_v9 = vadd.f32 %v9324_v54, %v3095_v58  ;;  %v3096_v28 = vmul.f32 %v7040_v6, %v9322_v40  ;;  %v2942_v43 = vpop.f32.mrb[7].mxu0 }
 0x3d3   : > { %v3132_v12 = vadd.f32 %v9324_v54, %v3093_v3  ;;  %v3094_v19 = vmul.f32 %v9322_v40, %v2942_v43 }
 0x3d4   : > { %v3166_v20 = vmax.f32 %v3134_v9, 0.0  ;;  %v3135_v33 = vadd.f32 %v9324_v54, %v3096_v28 }
 0x3d5   : > { %v3164_v37 = vmax.f32 %v3132_v12, 0.0  ;;  %v3133_v42 = vadd.f32 %v9324_v54, %v3094_v19  ;;  %v3333_v52 = vld [vmem:[#allocation3 + $0x31] sm:$0xff] }
 0x3d6   : > { %3255 = vst.msk [vmem:[#allocation3 + $0x61] sm:$0xff] %vm3192_vm3, %v3166_v20  ;;  %v3167_v44 = vmax.f32 %v3135_v33, 0.0  ;;  %v3331_v32 = vld [vmem:[#allocation3 + $0x19] sm:$0xff] }
 0x3d7   : > { %3253 = vst.msk [vmem:[#allocation3 + $0x49] sm:$0xff] %vm3192_vm3, %v3164_v37  ;;  %v3165_v21 = vmax.f32 %v3133_v42, 0.0  ;;  %v7043_v36 = vpop.f32.mrb[8].mxu0  ;;  %v3334_v23 = vld [vmem:[#allocation3 + $0x39] sm:$0xff] }
 0x3d8   : > { %3256 = vst.msk [vmem:[#allocation3 + $0x69] sm:$0xff] %vm3192_vm3, %v3167_v44  ;;  %v3099_v27 = vmul.f32 %v7043_v36, %v9322_v40  ;;  %v2955_v30 = vpop.f32.mrb[9].mxu0  ;;  %v3332_v29 = vld [vmem:[#allocation3 + $0x21] sm:$0xff]  ;;  %v9357_v7 = vpack.c.bf16 %v3334_v23, %v3333_v52 }
 0x3d9   : > { %3254 = vst.msk [vmem:[#allocation3 + $0x51] sm:$0xff] %vm3192_vm3, %v3165_v21  ;;  %v3097_v38 = vmul.f32 %v9322_v40, %v2955_v30  ;;  %v7044_v39 = vpop.f32.mrb[10].mxu0  ;;  %v9352_v46 = vpack.c.bf16 %v3332_v29, %v3331_v32 }
 0x3da   : > { %v3138_v53 = vadd.f32 %v9324_v54, %v3099_v27  ;;  %v3100_v60 = vmul.f32 %v7044_v39, %v9322_v40  ;;  %v2958_v63 = vpop.f32.mrb[11].mxu0 }
 0x3db   : > { %v3136_v15 = vadd.f32 %v9324_v54, %v3097_v38  ;;  %v3098_v18 = vmul.f32 %v9322_v40, %v2958_v63  ;;  %7068 = vmatmul.mubr.msk.bf16.vlgmr.msra.gmra.mrb[0].mxu1 %vm3192_vm3, %v9352_v46 }
 0x3dc   : > { %v3170_v55 = vmax.f32 %v3138_v53, 0.0  ;;  %v3139_v56 = vadd.f32 %v9324_v54, %v3100_v60  ;;  %7100 = vmatpush3.bf16.msra.mxu1 %v3639_v47  ;;  %7071 = vmatprep.mubr.msk.bf16.mxu1 %vm3192_vm3, %v9357_v7 }
 0x3dd   : > { %v3168_v61 = vmax.f32 %v3136_v15, 0.0  ;;  %v3137_v62 = vadd.f32 %v9324_v54, %v3098_v18  ;;  %7894 = vmatprep.subr.msk.bf16.mxu1 %vm3425_vm5, %v9359_v8  ;;  %v3337_v2 = vld [vmem:[#allocation3 + $0x61] sm:$0xff] }
 0x3de   : > { %3259 = vst.msk [vmem:[#allocation3 + $0x91] sm:$0xff] %vm3192_vm3, %v3170_v55  ;;  %v3171_v4 = vmax.f32 %v3139_v56, 0.0  ;;  %v3335_v22 = vld [vmem:[#allocation3 + $0x49] sm:$0xff] }
 0x3df   : > { %3257 = vst.msk [vmem:[#allocation3 + $0x79] sm:$0xff] %vm3192_vm3, %v3168_v61  ;;  %v3169_v5 = vmax.f32 %v3137_v62, 0.0  ;;  %v7047_v10 = vpop.f32.mrb[12].mxu0  ;;  %v3338_v11 = vld [vmem:[#allocation3 + $0x69] sm:$0xff] }
 0x3e0   : > { %3260 = vst.msk [vmem:[#allocation3 + $0x99] sm:$0xff] %vm3192_vm3, %v3171_v4  ;;  %v3103_v16 = vmul.f32 %v7047_v10, %v9322_v40  ;;  %v2971_v17 = vpop.f32.mrb[13].mxu0  ;;  %v3336_v26 = vld [vmem:[#allocation3 + $0x51] sm:$0xff]  ;;  %v9381_v25 = vpack.c.bf16 %v3338_v11, %v3337_v2 }
 0x3e1   : > { %3258 = vst.msk [vmem:[#allocation3 + $0x81] sm:$0xff] %vm3192_vm3, %v3169_v5  ;;  %v3101_v51 = vmul.f32 %v9322_v40, %v2971_v17  ;;  %v7048_v0 = vpop.f32.mrb[14].mxu0  ;;  %v9377_v1 = vpack.c.bf16 %v3336_v26, %v3335_v22 }
 0x3e2   : > { %v3142_v13 = vadd.f32 %v9324_v54, %v3103_v16  ;;  %v3104_v14 = vmul.f32 %v7048_v0, %v9322_v40  ;;  %v2974_v24 = vpop.f32.mrb[15].mxu0 }
 0x3e3   : > { %v3140_v34 = vadd.f32 %v9324_v54, %v3101_v51  ;;  %v3102_v35 = vmul.f32 %v9322_v40, %v2974_v24  ;;  %7072 = vmatmul.mubr.msk.bf16.gmra.mrb[4].mxu1 %vm3192_vm3, %v9377_v1 }
 0x3e4   : > { %v3174_v41 = vmax.f32 %v3142_v13, 0.0  ;;  %v3143_v45 = vadd.f32 %v9324_v54, %v3104_v14  ;;  %7075 = vmatprep.mubr.msk.bf16.mxu1 %vm3192_vm3, %v9381_v25 }
 0x3e5   : > { %v3172_v48 = vmax.f32 %v3140_v34, 0.0  ;;  %v3141_v49 = vadd.f32 %v9324_v54, %v3102_v35  ;;  %v3341_v19 = vld [vmem:[#allocation3 + $0x91] sm:$0xff] }
 0x3e6   : > { %3263 = vst.msk [vmem:[#allocation3 + $0xc1] sm:$0xff] %vm3192_vm3, %v3174_v41  ;;  %v3175_v50 = vmax.f32 %v3143_v45, 0.0  ;;  %v3339_v6 = vld [vmem:[#allocation3 + $0x79] sm:$0xff] }
 0x3e7   : > { %3261 = vst.msk [vmem:[#allocation3 + $0xa9] sm:$0xff] %vm3192_vm3, %v3172_v48  ;;  %v3173_v31 = vmax.f32 %v3141_v49, 0.0  ;;  %v7051_v57 = vpop.f32.mrb[16].mxu0  ;;  %v3342_v58 = vld [vmem:[#allocation3 + $0x99] sm:$0xff] }
 0x3e8   : > { %3264 = vst.msk [vmem:[#allocation3 + $0xc9] sm:$0xff] %vm3192_vm3, %v3175_v50  ;;  %v3107_v59 = vmul.f32 %v7051_v57, %v9322_v40  ;;  %v2987_v3 = vpop.f32.mrb[17].mxu0  ;;  %v3340_v9 = vld [vmem:[#allocation3 + $0x81] sm:$0xff]  ;;  %v9401_v42 = vpack.c.bf16 %v3342_v58, %v3341_v19 }
 0x3e9   : > { %3262 = vst.msk [vmem:[#allocation3 + $0xb1] sm:$0xff] %vm3192_vm3, %v3173_v31  ;;  %v3105_v28 = vmul.f32 %v9322_v40, %v2987_v3  ;;  %v7052_v43 = vpop.f32.mrb[18].mxu0  ;;  %v9397_v12 = vpack.c.bf16 %v3340_v9, %v3339_v6 }
 0x3ea   : > { %v3146_v20 = vadd.f32 %v9324_v54, %v3107_v59  ;;  %v3108_v33 = vmul.f32 %v7052_v43, %v9322_v40  ;;  %v2990_v37 = vpop.f32.mrb[19].mxu0 }
 0x3eb   : > { %v3144_v44 = vadd.f32 %v9324_v54, %v3105_v28  ;;  %v3106_v21 = vmul.f32 %v9322_v40, %v2990_v37  ;;  %7076 = vmatmul.mubr.msk.bf16.gmra.mrb[8].mxu1 %vm3192_vm3, %v9397_v12 }
 0x3ec   : > { %v3178_v36 = vmax.f32 %v3146_v20, 0.0  ;;  %v3147_v23 = vadd.f32 %v9324_v54, %v3108_v33  ;;  %7079 = vmatprep.mubr.msk.bf16.mxu1 %vm3192_vm3, %v9401_v42 }
 0x3ed   : > { %v3176_v27 = vmax.f32 %v3144_v44, 0.0  ;;  %v3145_v30 = vadd.f32 %v9324_v54, %v3106_v21  ;;  %v3345_v55 = vld [vmem:[#allocation3 + $0xc1] sm:$0xff] }
 0x3ee   : > { %3267 = vst.msk [vmem:[#allocation3 + $0xf1] sm:$0xff] %vm3192_vm3, %v3178_v36  ;;  %v3179_v32 = vmax.f32 %v3147_v23, 0.0  ;;  %v3343_v53 = vld [vmem:[#allocation3 + $0xa9] sm:$0xff] }
 0x3ef   : > { %3265 = vst.msk [vmem:[#allocation3 + $0xd9] sm:$0xff] %vm3192_vm3, %v3176_v27  ;;  %v3177_v29 = vmax.f32 %v3145_v30, 0.0  ;;  %v7055_v38 = vpop.f32.mrb[20].mxu0  ;;  %v3346_v39 = vld [vmem:[#allocation3 + $0xc9] sm:$0xff] }
 0x3f0   : > { %3268 = vst.msk [vmem:[#allocation3 + $0xf9] sm:$0xff] %vm3192_vm3, %v3179_v32  ;;  %v3111_v47 = vmul.f32 %v7055_v38, %v9322_v40  ;;  %v3003_v52 = vpop.f32.mrb[21].mxu0  ;;  %v3344_v60 = vld [vmem:[#allocation3 + $0xb1] sm:$0xff]  ;;  %v9421_v4 = vpack.c.bf16 %v3346_v39, %v3345_v55 }
 0x3f1   : > { %3266 = vst.msk [vmem:[#allocation3 + $0xe1] sm:$0xff] %vm3192_vm3, %v3177_v29  ;;  %v3109_v63 = vmul.f32 %v9322_v40, %v3003_v52  ;;  %v7056_v15 = vpop.f32.mrb[22].mxu0  ;;  %v9417_v18 = vpack.c.bf16 %v3344_v60, %v3343_v53 }
 0x3f2   : > { %v3150_v56 = vadd.f32 %v9324_v54, %v3111_v47  ;;  %v3112_v61 = vmul.f32 %v7056_v15, %v9322_v40  ;;  %v3006_v62 = vpop.f32.mrb[23].mxu0 }
 0x3f3   : > { %v3148_v5 = vadd.f32 %v9324_v54, %v3109_v63  ;;  %v3110_v10 = vmul.f32 %v9322_v40, %v3006_v62  ;;  %7080 = vmatmul.mubr.msk.bf16.gmra.mrb[12].mxu1 %vm3192_vm3, %v9417_v18 }
 0x3f4   : > { %v3182_v11 = vmax.f32 %v3150_v56, 0.0  ;;  %v3151_v16 = vadd.f32 %v9324_v54, %v3112_v61  ;;  %7083 = vmatprep.mubr.msk.bf16.mxu1 %vm3192_vm3, %v9421_v4 }
 0x3f5   : > { %v3180_v17 = vmax.f32 %v3148_v5, 0.0  ;;  %v3149_v22 = vadd.f32 %v9324_v54, %v3110_v10  ;;  %v3349_v48 = vld [vmem:[#allocation3 + $0xf1] sm:$0xff] }
 0x3f6   : > { %3271 = vst.msk [vmem:[#allocation3 + $0x121] sm:$0xff] %vm3192_vm3, %v3182_v11  ;;  %v3183_v26 = vmax.f32 %v3151_v16, 0.0  ;;  %v3347_v24 = vld [vmem:[#allocation3 + $0xd9] sm:$0xff] }
 0x3f7   : > { %3269 = vst.msk [vmem:[#allocation3 + $0x109] sm:$0xff] %vm3192_vm3, %v3180_v17  ;;  %v3181_v51 = vmax.f32 %v3149_v22, 0.0  ;;  %v7059_v0 = vpop.f32.mrb[24].mxu0  ;;  %v3350_v2 = vld [vmem:[#allocation3 + $0xf9] sm:$0xff]  ;;  %v3282_v17 = vld [vmem:[#allocation3 + $0x8] sm:$0xff] }
 0x3f8   : > { %3272 = vst.msk [vmem:[#allocation3 + $0x129] sm:$0xff] %vm3192_vm3, %v3183_v26  ;;  %v3115_v13 = vmul.f32 %v7059_v0, %v9322_v40  ;;  %v3019_v14 = vpop.f32.mrb[25].mxu0  ;;  %v3348_v34 = vld [vmem:[#allocation3 + $0xe1] sm:$0xff]  ;;  %v9441_v57 = vpack.c.bf16 %v3350_v2, %v3349_v48  ;;  %v9494_v48 = vld [vmem:[#allocation9 + $0xc] sm:$0xf] }
 0x3f9   : > { %3270 = vst.msk [vmem:[#allocation3 + $0x111] sm:$0xff] %vm3192_vm3, %v3181_v51  ;;  %v3113_v35 = vmul.f32 %v9322_v40, %v3019_v14  ;;  %v7060_v41 = vpop.f32.mrb[26].mxu0  ;;  %v9437_v45 = vpack.c.bf16 %v3348_v34, %v3347_v24  ;;  %v3284_v2 = vld [vmem:[#allocation3 + $0x20] sm:$0xff]  ;;  %v3283_v14 = vld [vmem:[#allocation3 + $0x18] sm:$0xff]  ;;  %v3899_v34 = vsel %vm3425_vm5, %v9359_v8, 0 }
 0x3fa   : > { %v3154_v49 = vadd.f32 %v9324_v54, %v3115_v13  ;;  %v3116_v50 = vmul.f32 %v7060_v41, %v9322_v40  ;;  %v3022_v31 = vpop.f32.mrb[27].mxu0  ;;  %v3286_v13 = vld [vmem:[#allocation3 + $0x38] sm:$0xff]  ;;  %v9488_v24 = vpack.c.bf16 %v3284_v2, %v3283_v14  ;;  %v3289_v8 = vld [vmem:[#allocation3 + $0x60] sm:$0xff] }
 0x3fb   : > { %v3152_v58 = vadd.f32 %v9324_v54, %v3113_v35  ;;  %v3114_v59 = vmul.f32 %v9322_v40, %v3022_v31  ;;  %7084 = vmatmul.mubr.msk.bf16.gmra.mrb[16].mxu1 %vm3192_vm3, %v9437_v45  ;;  %v3285_v35 = vld [vmem:[#allocation3 + $0x30] sm:$0xff]  ;;  %v3287_v31 = vld [vmem:[#allocation3 + $0x48] sm:$0xff] }
 0x3fc   : > { %v3186_v3 = vmax.f32 %v3154_v49, 0.0  ;;  %v3155_v6 = vadd.f32 %v9324_v54, %v3116_v50  ;;  %7087 = vmatprep.mubr.msk.bf16.mxu1 %vm3192_vm3, %v9441_v57  ;;  %v9492_v41 = vpack.c.bf16 %v3286_v13, %v3285_v35  ;;  %v3288_v49 = vld [vmem:[#allocation3 + $0x50] sm:$0xff]  ;;  %v3290_v50 = vld [vmem:[#allocation3 + $0x68] sm:$0xff]  ;;  %v3804_v13 = vld [vmem:[#allocation3 + $0x1a] sm:$0xff] }
 0x3fd   : > { %v3184_v9 = vmax.f32 %v3152_v58, 0.0  ;;  %v3153_v28 = vadd.f32 %v9324_v54, %v3114_v59  ;;  %v3353_v32 = vld [vmem:[#allocation3 + $0x121] sm:$0xff]  ;;  %v9502_v58 = vpack.c.bf16 %v3288_v49, %v3287_v31  ;;  %v9504_v59 = vpack.c.bf16 %v3290_v50, %v3289_v8  ;;  %v390_v8 = vld [vmem:[#allocation9 + $0x10] sm:$0xf] }
 0x3fe   : > { %3275 = vst.msk [vmem:[#allocation3 + $0x151] sm:$0xff] %vm3192_vm3, %v3186_v3  ;;  %v3187_v43 = vmax.f32 %v3155_v6, 0.0  ;;  %v3351_v21 = vld [vmem:[#allocation3 + $0x109] sm:$0xff]  ;;  %v3292_v3 = vld [vmem:[#allocation3 + $0x80] sm:$0xff]  ;;  %v3294_v6 = vld [vmem:[#allocation3 + $0x98] sm:$0xff]  ;;  %v4191_v50 = vsel %vm3425_vm5, %v9494_v48, 0 }
 0x3ff   : > { %3273 = vst.msk [vmem:[#allocation3 + $0x139] sm:$0xff] %vm3192_vm3, %v3184_v9  ;;  %v3185_v19 = vmax.f32 %v3153_v28, 0.0  ;;  %v7063_v20 = vpop.f32.mrb[28].mxu0  ;;  %v3354_v33 = vld [vmem:[#allocation3 + $0x129] sm:$0xff]  ;;  %v3291_v9 = vld [vmem:[#allocation3 + $0x78] sm:$0xff] }
 0x400   : > { %3276 = vst.msk [vmem:[#allocation3 + $0x159] sm:$0xff] %vm3192_vm3, %v3187_v43  ;;  %v3119_v37 = vmul.f32 %v7063_v20, %v9322_v40  ;;  %v3035_v44 = vpop.f32.mrb[29].mxu0  ;;  %v3352_v36 = vld [vmem:[#allocation3 + $0x111] sm:$0xff]  ;;  %v9461_v47 = vpack.c.bf16 %v3354_v33, %v3353_v32  ;;  %v9510_v28 = vpack.c.bf16 %v3292_v3, %v3291_v9  ;;  %v3298_v33 = vld [vmem:[#allocation3 + $0xc8] sm:$0xff]  ;;  %v3807_v35 = vld [vmem:[#allocation3 + $0x3a] sm:$0xff] }
 0x401   : > { %3274 = vst.msk [vmem:[#allocation3 + $0x141] sm:$0xff] %vm3192_vm3, %v3185_v19  ;;  %v3117_v23 = vmul.f32 %v9322_v40, %v3035_v44  ;;  %v7064_v27 = vpop.f32.mrb[30].mxu0  ;;  %v9457_v30 = vpack.c.bf16 %v3352_v36, %v3351_v21  ;;  %v3293_v43 = vld [vmem:[#allocation3 + $0x90] sm:$0xff]  ;;  %v3297_v21 = vld [vmem:[#allocation3 + $0xc0] sm:$0xff]  ;;  %v3299_v32 = vld [vmem:[#allocation3 + $0xd8] sm:$0xff] }
 0x402   : > { %v3158_v29 = vadd.f32 %v9324_v54, %v3119_v37  ;;  %v3120_v38 = vmul.f32 %v7064_v27, %v9322_v40  ;;  %v3038_v39 = vpop.f32.mrb[31].mxu0  ;;  %v9512_v19 = vpack.c.bf16 %v3294_v6, %v3293_v43  ;;  %v3296_v20 = vld [vmem:[#allocation3 + $0xb0] sm:$0xff]  ;;  %v3295_v37 = vld [vmem:[#allocation3 + $0xa8] sm:$0xff]  ;;  %v9520_v36 = vpack.c.bf16 %v3298_v33, %v3297_v21  ;;  %v3302_v27 = vld [vmem:[#allocation3 + $0xf8] sm:$0xff] }
 0x403   : > { %v3156_v52 = vadd.f32 %v9324_v54, %v3117_v23  ;;  %v3118_v53 = vmul.f32 %v9322_v40, %v3038_v39  ;;  %7088 = vmatmul.mubr.msk.bf16.gmra.mrb[20].mxu1 %vm3192_vm3, %v9457_v30  ;;  %v9518_v44 = vpack.c.bf16 %v3296_v20, %v3295_v37  ;;  %v3300_v23 = vld [vmem:[#allocation3 + $0xe0] sm:$0xff]  ;;  %v3808_v3 = vld [vmem:[#allocation3 + $0x4a] sm:$0xff]  ;;  %v3809_v6 = vld [vmem:[#allocation3 + $0x52] sm:$0xff] }
 0x404   : > { %v3190_v60 = vmax.f32 %v3158_v29, 0.0  ;;  %v3159_v63 = vadd.f32 %v9324_v54, %v3120_v38  ;;  %7091 = vmatprep.mubr.msk.bf16.mxu1 %vm3192_vm3, %v9461_v47  ;;  %v9526_v29 = vpack.c.bf16 %v3300_v23, %v3299_v32  ;;  %v3301_v38 = vld [vmem:[#allocation3 + $0xf0] sm:$0xff]  ;;  %v3805_v14 = vld [vmem:[#allocation3 + $0x22] sm:$0xff]  ;;  %v9566_v20 = vpack.c.bf16 %v3809_v6, %v3808_v3  ;;  %v3815_v23 = vld [vmem:[#allocation3 + $0x9a] sm:$0xff] }
 0x405   : > { %v3188_v15 = vmax.f32 %v3156_v52, 0.0  ;;  %v3157_v55 = vadd.f32 %v9324_v54, %v3118_v53  ;;  %v3357_v11 = vld [vmem:[#allocation3 + $0x151] sm:$0xff]  ;;  %v3281_v54 = vld [vmem:[#allocation3] sm:$0xff]  ;;  %v9528_v39 = vpack.c.bf16 %v3302_v27, %v3301_v38  ;;  %v3306_v53 = vld [vmem:[#allocation3 + $0x128] sm:$0xff]  ;;  %v9555_v49 = vpack.c.bf16 %v3805_v14, %v3804_v13 }
 0x406   : > { %3279 = vst.msk [vmem:[#allocation3 + $0x181] sm:$0xff] %vm3192_vm3, %v3190_v60  ;;  %v3191_v56 = vmax.f32 %v3159_v63, 0.0  ;;  %v3355_v40 = vld [vmem:[#allocation3 + $0x139] sm:$0xff]  ;;  %v3313_v51 = vpack.c.bf16 %v3282_v17, %v3281_v54  ;;  %v3304_v52 = vld [vmem:[#allocation3 + $0x110] sm:$0xff]  ;;  %v3303_v60 = vld [vmem:[#allocation3 + $0x108] sm:$0xff] }
 0x407   : > { %3277 = vst.msk [vmem:[#allocation3 + $0x169] sm:$0xff] %vm3192_vm3, %v3188_v15  ;;  %v3189_v61 = vmax.f32 %v3157_v55, 0.0  ;;  %v3358_v62 = vld [vmem:[#allocation3 + $0x159] sm:$0xff]  ;;  %v9534_v63 = vpack.c.bf16 %v3304_v52, %v3303_v60  ;;  %v3802_v54 = vld [vmem:[#allocation3 + $0x2] sm:$0xff]  ;;  %v3803_v17 = vld [vmem:[#allocation3 + $0xa] sm:$0xff] }
 0x408   : > { %3280 = vst.msk [vmem:[#allocation3 + $0x189] sm:$0xff] %vm3192_vm3, %v3191_v56  ;;  %v3356_v5 = vld [vmem:[#allocation3 + $0x141] sm:$0xff]  ;;  %v9477_v16 = vpack.c.bf16 %v3358_v62, %v3357_v11  ;;  %v3307_v62 = vld [vmem:[#allocation3 + $0x138] sm:$0xff]  ;;  %v3811_v43 = vld [vmem:[#allocation3 + $0x6a] sm:$0xff] }
 0x409   : > { %3278 = vst.msk [vmem:[#allocation3 + $0x171] sm:$0xff] %vm3192_vm3, %v3189_v61  ;;  %v9475_v10 = vpack.c.bf16 %v3356_v5, %v3355_v40  ;;  %v3305_v15 = vld [vmem:[#allocation3 + $0x120] sm:$0xff]  ;;  %v3310_v61 = vld [vmem:[#allocation3 + $0x158] sm:$0xff]  ;;  %v3309_v5 = vld [vmem:[#allocation3 + $0x150] sm:$0xff] }
 0x40a   : > { %v9536_v55 = vpack.c.bf16 %v3306_v53, %v3305_v15  ;;  %v3308_v56 = vld [vmem:[#allocation3 + $0x140] sm:$0xff]  ;;  %v9544_v11 = vpack.c.bf16 %v3310_v61, %v3309_v5  ;;  %v3814_v21 = vld [vmem:[#allocation3 + $0x92] sm:$0xff]  ;;  %v3816_v38 = vld [vmem:[#allocation3 + $0xaa] sm:$0xff] }
 0x40b   : > { %7092 = vmatmul.mubr.msk.bf16.gmra.mrb[24].mxu1 %vm3192_vm3, %v9475_v10  ;;  %v9542_v40 = vpack.c.bf16 %v3308_v56, %v3307_v62  ;;  %v3810_v9 = vld [vmem:[#allocation3 + $0x62] sm:$0xff]  ;;  %v9576_v32 = vpack.c.bf16 %v3815_v23, %v3814_v21  ;;  %v3817_v52 = vld [vmem:[#allocation3 + $0xb2] sm:$0xff]  ;;  %v3819_v60 = vld [vmem:[#allocation3 + $0xca] sm:$0xff] }
 0x40c   : > { %7095 = vmatprep.mubr.msk.bf16.mxu1 %vm3192_vm3, %v9477_v16  ;;  %v9568_v33 = vpack.c.bf16 %v3811_v43, %v3810_v9  ;;  %v3813_v37 = vld [vmem:[#allocation3 + $0x82] sm:$0xff]  ;;  %v9582_v15 = vpack.c.bf16 %v3817_v52, %v3816_v38  ;;  %v3820_v61 = vld [vmem:[#allocation3 + $0xda] sm:$0xff]  ;;  %v3822_v5 = vld [vmem:[#allocation3 + $0xf2] sm:$0xff]  ;;  %v4483_v38 = vsel %vm3425_vm5, %v390_v8, 0 }
 0x40d   : > { %v3818_v53 = vld [vmem:[#allocation3 + $0xc2] sm:$0xff]  ;;  %v3827_v14 = vld [vmem:[#allocation3 + $0x12a] sm:$0xff]  ;;  %v3830_v6 = vld [vmem:[#allocation3 + $0x152] sm:$0xff] }
 0x40e   : > { %v3359_v22 = vld [vmem:[#allocation3 + $0x169] sm:$0xff]  ;;  %v9584_v56 = vpack.c.bf16 %v3819_v60, %v3818_v53  ;;  %v3831_v9 = vld [vmem:[#allocation3 + $0x15a] sm:$0xff]  ;;  %v391_v52 = vld [vmem:[#allocation9 + $0x14] sm:$0xf] }
 0x40f   : > { %v3821_v62 = vld [vmem:[#allocation3 + $0xe2] sm:$0xff]  ;;  %v4775_v60 = vsel %vm3425_vm5, %v391_v52, 0 }
 0x410   : > { %v3360_v26 = vld [vmem:[#allocation3 + $0x171] sm:$0xff]  ;;  %v3826_v13 = vld [vmem:[#allocation3 + $0x122] sm:$0xff] }
 0x411   : > { %v9483_v0 = vpack.c.bf16 %v3360_v26, %v3359_v22  ;;  %v3312_v22 = vld [vmem:[#allocation3 + $0x170] sm:$0xff]  ;;  %v3311_v26 = vld [vmem:[#allocation3 + $0x168] sm:$0xff] }
 0x412   : > { %v9550_v2 = vpack.c.bf16 %v3312_v22, %v3311_v26  ;;  %v3824_v26 = vld [vmem:[#allocation3 + $0x10a] sm:$0xff]  ;;  %v3829_v3 = vld [vmem:[#allocation3 + $0x142] sm:$0xff]  ;;  %v3833_v21 = vld [vmem:[#allocation3 + $0x172] sm:$0xff] }
 0x413   : > { %7096 = vmatmul.mubr.msk.bf16.gmra.mrb[28].mxu1 %vm3192_vm3, %v9483_v0 }
 0x414   : > { %7101 = vmatprep.mubr.msk.bf16.mxu1 %vm3192_vm3, %v3313_v51  ;;  %v3834_v51 = vpack.c.bf16 %v3803_v17, %v3802_v54  ;;  %v3823_v54 = vld [vmem:[#allocation3 + $0xfa] sm:$0xff]  ;;  %v9590_v17 = vpack.c.bf16 %v3821_v62, %v3820_v61 }
 0x415   : > { %v9592_v22 = vpack.c.bf16 %v3823_v54, %v3822_v5  ;;  %v392_v61 = vld [vmem:[#allocation9 + $0x18] sm:$0xf]  ;;  %v394_v54 = vld [vmem:[#allocation9 + $0x20] sm:$0xf] }
 0x41b   : > { %7102 = vmatmul.mubr.msk.bf16.vlgmr.msra.gmra.mrb[0].mxu1 %vm3192_vm3, %v9488_v24 }
 0x41c   : > { %7134 = vmatpush3.bf16.msra.mxu1 %v3899_v34  ;;  %7105 = vmatprep.mubr.msk.bf16.mxu1 %vm3192_vm3, %v9492_v41  ;;  %v3806_v34 = vld [vmem:[#allocation3 + $0x32] sm:$0xff] }
 0x41d   : > { %7895 = vmatprep.subr.msk.bf16.mxu1 %vm3425_vm5, %v9494_v48  ;;  %v9559_v31 = vpack.c.bf16 %v3807_v35, %v3806_v34  ;;  %v3812_v48 = vld [vmem:[#allocation3 + $0x7a] sm:$0xff]  ;;  %v9600_v35 = vpack.c.bf16 %v3827_v14, %v3826_v13  ;;  %v5271_v14 = vld [vmem:[#allocation3 + $0x91] sm:$0xff] }
 0x41e   : > { %v9574_v27 = vpack.c.bf16 %v3813_v37, %v3812_v48  ;;  %v9608_v48 = vpack.c.bf16 %v3831_v9, %v3830_v6  ;;  %v3832_v37 = vld [vmem:[#allocation3 + $0x16a] sm:$0xff] }
 0x41f   : > { %v9614_v23 = vpack.c.bf16 %v3833_v21, %v3832_v37 }
 0x423   : > { %7106 = vmatmul.mubr.msk.bf16.gmra.mrb[4].mxu1 %vm3192_vm3, %v9502_v58 }
 0x424   : > { %7109 = vmatprep.mubr.msk.bf16.mxu1 %vm3192_vm3, %v9504_v59 }
 0x42b   : > { %7110 = vmatmul.mubr.msk.bf16.gmra.mrb[8].mxu1 %vm3192_vm3, %v9510_v28 }
 0x42c   : > { %7113 = vmatprep.mubr.msk.bf16.mxu1 %vm3192_vm3, %v9512_v19 }
 0x433   : > { %7114 = vmatmul.mubr.msk.bf16.gmra.mrb[12].mxu1 %vm3192_vm3, %v9518_v44 }
 0x434   : > { %7117 = vmatprep.mubr.msk.bf16.mxu1 %vm3192_vm3, %v9520_v36 }
 0x43b   : > { %7118 = vmatmul.mubr.msk.bf16.gmra.mrb[16].mxu1 %vm3192_vm3, %v9526_v29 }
 0x43c   : > { %7121 = vmatprep.mubr.msk.bf16.mxu1 %vm3192_vm3, %v9528_v39 }
 0x443   : > { %7122 = vmatmul.mubr.msk.bf16.gmra.mrb[20].mxu1 %vm3192_vm3, %v9534_v63 }
 0x444   : > { %7125 = vmatprep.mubr.msk.bf16.mxu1 %vm3192_vm3, %v9536_v55 }
 0x44b   : > { %7126 = vmatmul.mubr.msk.bf16.gmra.mrb[24].mxu1 %vm3192_vm3, %v9542_v40 }
 0x44c   : > { %7129 = vmatprep.mubr.msk.bf16.mxu1 %vm3192_vm3, %v9544_v11 }
 0x453   : > { %7130 = vmatmul.mubr.msk.bf16.gmra.mrb[28].mxu1 %vm3192_vm3, %v9550_v2 }
 0x454   : > { %7135 = vmatprep.mubr.msk.bf16.mxu1 %vm3192_vm3, %v3834_v51  ;;  %v3825_v51 = vld [vmem:[#allocation3 + $0x112] sm:$0xff] }
 0x455   : > { %v9598_v34 = vpack.c.bf16 %v3825_v51, %v3824_v26  ;;  %v5272_v26 = vld [vmem:[#allocation3 + $0x99] sm:$0xff] }
 0x456   : > { %v5269_v51 = vld [vmem:[#allocation3 + $0x79] sm:$0xff] }
 0x45b   : > { %7136 = vmatmul.mubr.msk.bf16.vlgmr.msra.gmra.mrb[0].mxu1 %vm3192_vm3, %v9555_v49 }
 0x45c   : > { %7168 = vmatpush3.bf16.msra.mxu1 %v4191_v50  ;;  %7139 = vmatprep.mubr.msk.bf16.mxu1 %vm3192_vm3, %v9559_v31  ;;  %v3828_v50 = vld [vmem:[#allocation3 + $0x13a] sm:$0xff] }
 0x45d   : > { %7896 = vmatprep.subr.msk.bf16.mxu1 %vm3425_vm5, %v390_v8  ;;  %v9606_v43 = vpack.c.bf16 %v3829_v3, %v3828_v50  ;;  %v4124_v8 = vld [vmem:[#allocation3 + $0x180] sm:$0xff]  ;;  %v5299_v50 = vpack.c.bf16 %v5272_v26, %v5271_v14 }
 0x463   : > { %7140 = vmatmul.mubr.msk.bf16.gmra.mrb[4].mxu1 %vm3192_vm3, %v9566_v20 }
 0x464   : > { %7143 = vmatprep.mubr.msk.bf16.mxu1 %vm3192_vm3, %v9568_v33 }
 0x46b   : > { %7144 = vmatmul.mubr.msk.bf16.gmra.mrb[8].mxu1 %vm3192_vm3, %v9574_v27 }
 0x46c   : > { %7147 = vmatprep.mubr.msk.bf16.mxu1 %vm3192_vm3, %v9576_v32 }
 0x473   : > { %7148 = vmatmul.mubr.msk.bf16.gmra.mrb[12].mxu1 %vm3192_vm3, %v9582_v15 }
 0x474   : > { %7151 = vmatprep.mubr.msk.bf16.mxu1 %vm3192_vm3, %v9584_v56 }
 0x47b   : > { %7152 = vmatmul.mubr.msk.bf16.gmra.mrb[16].mxu1 %vm3192_vm3, %v9590_v17 }
 0x47c   : > { %7155 = vmatprep.mubr.msk.bf16.mxu1 %vm3192_vm3, %v9592_v22 }
 0x483   : > { %7156 = vmatmul.mubr.msk.bf16.gmra.mrb[20].mxu1 %vm3192_vm3, %v9598_v34 }
 0x484   : > { %7159 = vmatprep.mubr.msk.bf16.mxu1 %vm3192_vm3, %v9600_v35 }
 0x48b   : > { %7160 = vmatmul.mubr.msk.bf16.gmra.mrb[24].mxu1 %vm3192_vm3, %v9606_v43 }
 0x48c   : > { %7163 = vmatprep.mubr.msk.bf16.mxu1 %vm3192_vm3, %v9608_v48 }
 0x493   : > { %7164 = vmatmul.mubr.msk.bf16.gmra.mrb[28].mxu1 %vm3192_vm3, %v9614_v23 }
 0x494   : > { %7169 = vmatprep.mubr.msk.bf16.mxu1 %vm3192_vm3, %v9488_v24  ;;  %v4125_v24 = vld [vmem:[#allocation3 + $0x188] sm:$0xff] }
 0x495   : > { %v9650_v53 = vpack.c.bf16 %v4125_v24, %v4124_v8 }
 0x49b   : > { %7170 = vmatmul.mubr.msk.bf16.vlgmr.msra.gmra.mrb[0].mxu1 %vm3192_vm3, %v9492_v41 }
 0x49c   : > { %7202 = vmatpush3.bf16.msra.mxu1 %v4483_v38  ;;  %7173 = vmatprep.mubr.msk.bf16.mxu1 %vm3192_vm3, %v9502_v58 }
 0x49d   : > { %7897 = vmatprep.subr.msk.bf16.mxu1 %vm3425_vm5, %v391_v52 }
 0x4a3   : > { %7174 = vmatmul.mubr.msk.bf16.gmra.mrb[4].mxu1 %vm3192_vm3, %v9504_v59 }
 0x4a4   : > { %7177 = vmatprep.mubr.msk.bf16.mxu1 %vm3192_vm3, %v9510_v28 }
 0x4ab   : > { %7178 = vmatmul.mubr.msk.bf16.gmra.mrb[8].mxu1 %vm3192_vm3, %v9512_v19 }
 0x4ac   : > { %7181 = vmatprep.mubr.msk.bf16.mxu1 %vm3192_vm3, %v9518_v44 }
 0x4b3   : > { %7182 = vmatmul.mubr.msk.bf16.gmra.mrb[12].mxu1 %vm3192_vm3, %v9520_v36 }
 0x4b4   : > { %7185 = vmatprep.mubr.msk.bf16.mxu1 %vm3192_vm3, %v9526_v29 }
 0x4bb   : > { %7186 = vmatmul.mubr.msk.bf16.gmra.mrb[16].mxu1 %vm3192_vm3, %v9528_v39 }
 0x4bc   : > { %7189 = vmatprep.mubr.msk.bf16.mxu1 %vm3192_vm3, %v9534_v63 }
 0x4c3   : > { %7190 = vmatmul.mubr.msk.bf16.gmra.mrb[20].mxu1 %vm3192_vm3, %v9536_v55 }
 0x4c4   : > { %7193 = vmatprep.mubr.msk.bf16.mxu1 %vm3192_vm3, %v9542_v40 }
 0x4cb   : > { %7194 = vmatmul.mubr.msk.bf16.gmra.mrb[24].mxu1 %vm3192_vm3, %v9544_v11 }
 0x4cc   : > { %7197 = vmatprep.mubr.msk.bf16.mxu1 %vm3192_vm3, %v9550_v2 }
 0x4d3   : > { %7198 = vmatmul.mubr.msk.bf16.gmra.mrb[28].mxu1 %vm3192_vm3, %v9650_v53 }
 0x4d4   : > { %7203 = vmatprep.mubr.msk.bf16.mxu1 %vm3192_vm3, %v9352_v46  ;;  %v4417_v46 = vld [vmem:[#allocation3 + $0x189] sm:$0xff] }
 0x4db   : > { %7204 = vmatmul.mubr.msk.bf16.vlgmr.msra.gmra.mrb[0].mxu1 %vm3192_vm3, %v9357_v7  ;;  %v4416_v7 = vld [vmem:[#allocation3 + $0x181] sm:$0xff] }
 0x4dc   : > { %7236 = vmatpush3.bf16.msra.mxu1 %v4775_v60  ;;  %7207 = vmatprep.mubr.msk.bf16.mxu1 %vm3192_vm3, %v9377_v1  ;;  %v9686_v1 = vpack.c.bf16 %v4417_v46, %v4416_v7 }
 0x4dd   : > { %7898 = vmatprep.subr.msk.bf16.mxu1 %vm3425_vm5, %v392_v61 }
 0x4e3   : > { %7208 = vmatmul.mubr.msk.bf16.gmra.mrb[4].mxu1 %vm3192_vm3, %v9381_v25  ;;  %v5068_v25 = vsel %vm3425_vm5, %v392_v61, 0 }
 0x4e4   : > { %7211 = vmatprep.mubr.msk.bf16.mxu1 %vm3192_vm3, %v9397_v12  ;;  %v393_v12 = vld [vmem:[#allocation9 + $0x1c] sm:$0xf] }
 0x4e5   : > { %v5360_v5 = vsel %vm3425_vm5, %v393_v12, 0 }
 0x4eb   : > { %7212 = vmatmul.mubr.msk.bf16.gmra.mrb[8].mxu1 %vm3192_vm3, %v9401_v42  ;;  %v4708_v42 = vld [vmem:[#allocation3 + $0x182] sm:$0xff] }
 0x4ec   : > { %7215 = vmatprep.mubr.msk.bf16.mxu1 %vm3192_vm3, %v9417_v18 }
 0x4f3   : > { %7216 = vmatmul.mubr.msk.bf16.gmra.mrb[12].mxu1 %vm3192_vm3, %v9421_v4 }
 0x4f4   : > { %7219 = vmatprep.mubr.msk.bf16.mxu1 %vm3192_vm3, %v9437_v45 }
 0x4fb   : > { %7220 = vmatmul.mubr.msk.bf16.gmra.mrb[16].mxu1 %vm3192_vm3, %v9441_v57 }
 0x4fc   : > { %7223 = vmatprep.mubr.msk.bf16.mxu1 %vm3192_vm3, %v9457_v30 }
 0x503   : > { %7224 = vmatmul.mubr.msk.bf16.gmra.mrb[20].mxu1 %vm3192_vm3, %v9461_v47 }
 0x504   : > { %7227 = vmatprep.mubr.msk.bf16.mxu1 %vm3192_vm3, %v9475_v10 }
 0x50b   : > { %7228 = vmatmul.mubr.msk.bf16.gmra.mrb[24].mxu1 %vm3192_vm3, %v9477_v16 }
 0x50c   : > { %7231 = vmatprep.mubr.msk.bf16.mxu1 %vm3192_vm3, %v9483_v0 }
 0x513   : > { %7232 = vmatmul.mubr.msk.bf16.gmra.mrb[28].mxu1 %vm3192_vm3, %v9686_v1 }
 0x514   : > { %7237 = vmatprep.mubr.msk.bf16.mxu1 %vm3192_vm3, %v9555_v49  ;;  %v4709_v49 = vld [vmem:[#allocation3 + $0x18a] sm:$0xff] }
 0x515   : > { %v9722_v62 = vpack.c.bf16 %v4709_v49, %v4708_v42 }
 0x51b   : > { %7238 = vmatmul.mubr.msk.bf16.vlgmr.msra.gmra.mrb[0].mxu1 %vm3192_vm3, %v9559_v31 }
 0x51c   : > { %7270 = vmatpush3.bf16.msra.mxu1 %v5068_v25  ;;  %7241 = vmatprep.mubr.msk.bf16.mxu1 %vm3192_vm3, %v9566_v20 }
 0x51d   : > { %7899 = vmatprep.subr.msk.bf16.mxu1 %vm3425_vm5, %v393_v12 }
 0x523   : > { %7242 = vmatmul.mubr.msk.bf16.gmra.mrb[4].mxu1 %vm3192_vm3, %v9568_v33 }
 0x524   : > { %7245 = vmatprep.mubr.msk.bf16.mxu1 %vm3192_vm3, %v9574_v27 }
 0x52b   : > { %7246 = vmatmul.mubr.msk.bf16.gmra.mrb[8].mxu1 %vm3192_vm3, %v9576_v32 }
 0x52c   : > { %7249 = vmatprep.mubr.msk.bf16.mxu1 %vm3192_vm3, %v9582_v15 }
 0x533   : > { %7250 = vmatmul.mubr.msk.bf16.gmra.mrb[12].mxu1 %vm3192_vm3, %v9584_v56 }
 0x534   : > { %7253 = vmatprep.mubr.msk.bf16.mxu1 %vm3192_vm3, %v9590_v17 }
 0x53b   : > { %7254 = vmatmul.mubr.msk.bf16.gmra.mrb[16].mxu1 %vm3192_vm3, %v9592_v22 }
 0x53c   : > { %7257 = vmatprep.mubr.msk.bf16.mxu1 %vm3192_vm3, %v9598_v34 }
 0x543   : > { %7258 = vmatmul.mubr.msk.bf16.gmra.mrb[20].mxu1 %vm3192_vm3, %v9600_v35 }
 0x544   : > { %7261 = vmatprep.mubr.msk.bf16.mxu1 %vm3192_vm3, %v9606_v43 }
 0x54b   : > { %7262 = vmatmul.mubr.msk.bf16.gmra.mrb[24].mxu1 %vm3192_vm3, %v9608_v48 }
 0x54c   : > { %7265 = vmatprep.mubr.msk.bf16.mxu1 %vm3192_vm3, %v9614_v23 }
 0x553   : > { %7266 = vmatmul.mubr.msk.bf16.gmra.mrb[28].mxu1 %vm3192_vm3, %v9722_v62 }
 0x554   : > { %7271 = vmatprep.mubr.msk.bf16.mxu1 %vm3192_vm3, %v9492_v41  ;;  %v5001_v41 = vld [vmem:[#allocation3 + $0x198] sm:$0xff] }
 0x55b   : > { %7272 = vmatmul.mubr.msk.bf16.vlgmr.msra.gmra.mrb[0].mxu1 %vm3192_vm3, %v9502_v58  ;;  %v5002_v58 = vld [vmem:[#allocation3 + $0x1a0] sm:$0xff] }
 0x55c   : > { %7304 = vmatpush3.bf16.msra.mxu1 %v5360_v5  ;;  %7275 = vmatprep.mubr.msk.bf16.mxu1 %vm3192_vm3, %v9504_v59  ;;  %v5018_v59 = vpack.c.bf16 %v5002_v58, %v5001_v41 }
 0x55d   : > { %7900 = vmatprep.subr.msk.bf16.mxu1 %vm3425_vm5, %v394_v54 }
 0x563   : > { %7276 = vmatmul.mubr.msk.bf16.gmra.mrb[4].mxu1 %vm3192_vm3, %v9510_v28  ;;  %v5264_v28 = vld [vmem:[#allocation3 + $0x39] sm:$0xff] }
 0x564   : > { %7279 = vmatprep.mubr.msk.bf16.mxu1 %vm3192_vm3, %v9512_v19  ;;  %v5263_v19 = vld [vmem:[#allocation3 + $0x31] sm:$0xff] }
 0x56b   : > { %7280 = vmatmul.mubr.msk.bf16.gmra.mrb[8].mxu1 %vm3192_vm3, %v9518_v44  ;;  %v5295_v44 = vpack.c.bf16 %v5264_v28, %v5263_v19 }
 0x56c   : > { %7283 = vmatprep.mubr.msk.bf16.mxu1 %vm3192_vm3, %v9520_v36  ;;  %v5266_v36 = vld [vmem:[#allocation3 + $0x51] sm:$0xff] }
 0x573   : > { %7284 = vmatmul.mubr.msk.bf16.gmra.mrb[12].mxu1 %vm3192_vm3, %v9526_v29  ;;  %v5268_v29 = vld [vmem:[#allocation3 + $0x69] sm:$0xff] }
 0x574   : > { %7287 = vmatprep.mubr.msk.bf16.mxu1 %vm3192_vm3, %v9528_v39  ;;  %v5265_v39 = vld [vmem:[#allocation3 + $0x49] sm:$0xff] }
 0x57b   : > { %7288 = vmatmul.mubr.msk.bf16.gmra.mrb[16].mxu1 %vm3192_vm3, %v9534_v63  ;;  %v5296_v63 = vpack.c.bf16 %v5266_v36, %v5265_v39 }
 0x57c   : > { %7291 = vmatprep.mubr.msk.bf16.mxu1 %vm3192_vm3, %v9536_v55  ;;  %v5652_v55 = vsel %vm3425_vm5, %v394_v54, 0 }
 0x583   : > { %7292 = vmatmul.mubr.msk.bf16.gmra.mrb[20].mxu1 %vm3192_vm3, %v9542_v40  ;;  %v5267_v40 = vld [vmem:[#allocation3 + $0x61] sm:$0xff] }
 0x584   : > { %7295 = vmatprep.mubr.msk.bf16.mxu1 %vm3192_vm3, %v9544_v11  ;;  %v5297_v11 = vpack.c.bf16 %v5268_v29, %v5267_v40 }
 0x58b   : > { %7296 = vmatmul.mubr.msk.bf16.gmra.mrb[24].mxu1 %vm3192_vm3, %v9550_v2  ;;  %v5270_v2 = vld [vmem:[#allocation3 + $0x81] sm:$0xff] }
 0x58c   : > { %7299 = vmatprep.mubr.msk.bf16.mxu1 %vm3192_vm3, %v9650_v53  ;;  %v5298_v13 = vpack.c.bf16 %v5270_v2, %v5269_v51 }
 0x593   : > { %7300 = vmatmul.mubr.msk.bf16.gmra.mrb[28].mxu1 %vm3192_vm3, %v5018_v59 }
 0x594   : > { %7305 = vmatprep.mubr.msk.bf16.mxu1 %vm3192_vm3, %v5295_v44 }
 0x59b   : > { %7306 = vmatmul.mubr.msk.bf16.vlgmr.msra.gmra.mrb[0].mxu1 %vm3192_vm3, %v5296_v63 }
 0x59c   : > { %7338 = vmatpush3.bf16.msra.mxu1 %v5652_v55  ;;  %7309 = vmatprep.mubr.msk.bf16.mxu1 %vm3192_vm3, %v5297_v11 }
 0x5a3   : > { %7310 = vmatmul.mubr.msk.bf16.gmra.mrb[4].mxu1 %vm3192_vm3, %v5298_v13 }
 0x5a4   : > { %7313 = vmatprep.mubr.msk.bf16.mxu1 %vm3192_vm3, %v5299_v50 }
 0x5ab   : > { %7314 = vmatmul.mubr.msk.bf16.gmra.mrb[8].mxu1 %vm3192_vm3, %v9417_v18  ;;  %v5293_v18 = vld [vmem:[#allocation3 + $0x199] sm:$0xff] }
 0x5ac   : > { %7317 = vmatprep.mubr.msk.bf16.mxu1 %vm3192_vm3, %v9421_v4  ;;  %v5294_v4 = vld [vmem:[#allocation3 + $0x1a1] sm:$0xff] }
 0x5b3   : > { %7318 = vmatmul.mubr.msk.bf16.gmra.mrb[12].mxu1 %vm3192_vm3, %v9437_v45  ;;  %v5310_v45 = vpack.c.bf16 %v5294_v4, %v5293_v18 }
 0x5b4   : > { %7321 = vmatprep.mubr.msk.bf16.mxu1 %vm3192_vm3, %v9441_v57  ;;  %v5585_v57 = vld [vmem:[#allocation3 + $0x19a] sm:$0xff] }
 0x5bb   : > { %7322 = vmatmul.mubr.msk.bf16.gmra.mrb[16].mxu1 %vm3192_vm3, %v9457_v30  ;;  %v5586_v30 = vld [vmem:[#allocation3 + $0x1a2] sm:$0xff] }
 0x5bc   : > { %7325 = vmatprep.mubr.msk.bf16.mxu1 %vm3192_vm3, %v9461_v47  ;;  %v5602_v47 = vpack.c.bf16 %v5586_v30, %v5585_v57 }
 0x5c3   : > { %7326 = vmatmul.mubr.msk.bf16.gmra.mrb[20].mxu1 %vm3192_vm3, %v9475_v10  ;;  %v9817_v10 = vld [vmem:[#allocation13] ss:$0 sm:$0xff] }
 0x5c4   : > { %7329 = vmatprep.mubr.msk.bf16.mxu1 %vm3192_vm3, %v9477_v16 }
 0x5cb   : > { %7330 = vmatmul.mubr.msk.bf16.gmra.mrb[24].mxu1 %vm3192_vm3, %v9483_v0  ;;  %v9819_v0 = vld [vmem:[#allocation15] ss:$0 sm:$0xff] }
 0x5cc   : > { %7333 = vmatprep.mubr.msk.bf16.mxu1 %vm3192_vm3, %v9686_v1 }
 0x5d3   : > { %7334 = vmatmul.mubr.msk.bf16.gmra.mrb[28].mxu1 %vm3192_vm3, %v5310_v45 }
 0x5d4   : > { %7339 = vmatprep.mubr.msk.bf16.mxu1 %vm3192_vm3, %v9559_v31 }
 0x5db   : > { %7340 = vmatmul.mubr.msk.bf16.vlgmr.msra.gmra.mrb[0].mxu1 %vm3192_vm3, %v9566_v20 }
 0x5dc   : > { %7343 = vmatprep.mubr.msk.bf16.mxu1 %vm3192_vm3, %v9568_v33 }
 0x5e3   : > { %7344 = vmatmul.mubr.msk.bf16.gmra.mrb[4].mxu1 %vm3192_vm3, %v9574_v27 }
 0x5e4   : > { %7347 = vmatprep.mubr.msk.bf16.mxu1 %vm3192_vm3, %v9576_v32 }
 0x5eb   : > { %7348 = vmatmul.mubr.msk.bf16.gmra.mrb[8].mxu1 %vm3192_vm3, %v9582_v15 }
 0x5ec   : > { %7351 = vmatprep.mubr.msk.bf16.mxu1 %vm3192_vm3, %v9584_v56 }
 0x5f3   : > { %7352 = vmatmul.mubr.msk.bf16.gmra.mrb[12].mxu1 %vm3192_vm3, %v9590_v17 }
 0x5f4   : > { %7355 = vmatprep.mubr.msk.bf16.mxu1 %vm3192_vm3, %v9592_v22 }
 0x5fb   : > { %7356 = vmatmul.mubr.msk.bf16.gmra.mrb[16].mxu1 %vm3192_vm3, %v9598_v34 }
 0x5fc   : > { %7359 = vmatprep.mubr.msk.bf16.mxu1 %vm3192_vm3, %v9600_v35 }
 0x603   : > { %7360 = vmatmul.mubr.msk.bf16.gmra.mrb[20].mxu1 %vm3192_vm3, %v9606_v43 }
 0x604   : > { %7363 = vmatprep.mubr.msk.bf16.mxu1 %vm3192_vm3, %v9608_v48 }
 0x60b   : > { %7364 = vmatmul.mubr.msk.bf16.gmra.mrb[24].mxu1 %vm3192_vm3, %v9614_v23 }
 0x60c   : > { %7367 = vmatprep.mubr.msk.bf16.mxu1 %vm3192_vm3, %v9722_v62 }
 0x613   : > { %7368 = vmatmul.mubr.msk.bf16.gmra.mrb[28].mxu1 %vm3192_vm3, %v5602_v47 }
 0x6ae   : > { %v7341_v16 = vpop.f32.mrb[0].mxu1 }
 0x6af   : > { %v5856_v31 = vmul.f32 %v7341_v16, %v9817_v10  ;;  %v5688_v20 = vpop.f32.mrb[1].mxu1 }
 0x6b0   : > { %v5854_v33 = vmul.f32 %v9817_v10, %v5688_v20  ;;  %v7342_v27 = vpop.f32.mrb[2].mxu1 }
 0x6b1   : > { %v5895_v32 = vadd.f32 %v9819_v0, %v5856_v31  ;;  %v5857_v15 = vmul.f32 %v7342_v27, %v9817_v10  ;;  %v5691_v56 = vpop.f32.mrb[3].mxu1 }
 0x6b2   : > { %v5893_v17 = vadd.f32 %v9819_v0, %v5854_v33  ;;  %v5855_v22 = vmul.f32 %v9817_v10, %v5691_v56 }
 0x6b3   : > { %v5927_v34 = vmax.f32 %v5895_v32, 0.0  ;;  %v5896_v35 = vadd.f32 %v9819_v0, %v5857_v15 }
 0x6b4   : > { %v5925_v3 = vmax.f32 %v5893_v17, 0.0  ;;  %v5894_v6 = vadd.f32 %v9819_v0, %v5855_v22 }
 0x6b5   : > { %5959 = vst.msk [vmem:[%s9831_s8 + $0x10] sm:$0xff] %vm3192_vm3, %v5927_v34  ;;  %v5928_v9 = vmax.f32 %v5896_v35, 0.0 }
 0x6b6   : > { %5957 = vst.msk [vmem:[%s9831_s8] sm:$0xff] %vm3192_vm3, %v5925_v3  ;;  %v5926_v43 = vmax.f32 %v5894_v6, 0.0  ;;  %v7345_v48 = vpop.f32.mrb[4].mxu1 }
 0x6b7   : > { %5960 = vst.msk [vmem:[%s9831_s8 + $0x18] sm:$0xff] %vm3192_vm3, %v5928_v9  ;;  %v5860_v37 = vmul.f32 %v7345_v48, %v9817_v10  ;;  %v5704_v21 = vpop.f32.mrb[5].mxu1 }
 0x6b8   : > { %5958 = vst.msk [vmem:[%s9831_s8 + $0x8] sm:$0xff] %vm3192_vm3, %v5926_v43  ;;  %v5858_v23 = vmul.f32 %v9817_v10, %v5704_v21  ;;  %v7346_v38 = vpop.f32.mrb[6].mxu1 }
 0x6b9   : > { %v5899_v52 = vadd.f32 %v9819_v0, %v5860_v37  ;;  %v5861_v24 = vmul.f32 %v7346_v38, %v9817_v10  ;;  %v5707_v8 = vpop.f32.mrb[7].mxu1 }
 0x6ba   : > { %v5897_v53 = vadd.f32 %v9819_v0, %v5858_v23  ;;  %v5859_v60 = vmul.f32 %v9817_v10, %v5707_v8 }
 0x6bb   : > { %v5931_v61 = vmax.f32 %v5899_v52, 0.0  ;;  %v5900_v46 = vadd.f32 %v9819_v0, %v5861_v24 }
 0x6bc   : > { %v5929_v7 = vmax.f32 %v5897_v53, 0.0  ;;  %v5898_v1 = vadd.f32 %v9819_v0, %v5859_v60 }
 0x6bd   : > { %5963 = vst.msk [vmem:[%s9831_s8 + $0x30] sm:$0xff] %vm3192_vm3, %v5931_v61  ;;  %v5932_v25 = vmax.f32 %v5900_v46, 0.0 }
 0x6be   : > { %5961 = vst.msk [vmem:[%s9831_s8 + $0x20] sm:$0xff] %vm3192_vm3, %v5929_v7  ;;  %v5930_v12 = vmax.f32 %v5898_v1, 0.0  ;;  %v7349_v42 = vpop.f32.mrb[8].mxu1 }
 0x6bf   : > { %5964 = vst.msk [vmem:[%s9831_s8 + $0x38] sm:$0xff] %vm3192_vm3, %v5932_v25  ;;  %v5864_v49 = vmul.f32 %v7349_v42, %v9817_v10  ;;  %v5720_v62 = vpop.f32.mrb[9].mxu1 }
 0x6c0   : > { %5962 = vst.msk [vmem:[%s9831_s8 + $0x28] sm:$0xff] %vm3192_vm3, %v5930_v12  ;;  %v5862_v5 = vmul.f32 %v9817_v10, %v5720_v62  ;;  %v7350_v54 = vpop.f32.mrb[10].mxu1 }
 0x6c1   : > { %v5903_v41 = vadd.f32 %v9819_v0, %v5864_v49  ;;  %v5865_v58 = vmul.f32 %v7350_v54, %v9817_v10  ;;  %v5723_v59 = vpop.f32.mrb[11].mxu1 }
 0x6c2   : > { %v5901_v28 = vadd.f32 %v9819_v0, %v5862_v5  ;;  %v5863_v19 = vmul.f32 %v9817_v10, %v5723_v59 }
 0x6c3   : > { %v5935_v44 = vmax.f32 %v5903_v41, 0.0  ;;  %v5904_v36 = vadd.f32 %v9819_v0, %v5865_v58 }
 0x6c4   : > { %v5933_v29 = vmax.f32 %v5901_v28, 0.0  ;;  %v5902_v39 = vadd.f32 %v9819_v0, %v5863_v19 }
 0x6c5   : > { %5967 = vst.msk [vmem:[%s9831_s8 + $0x50] sm:$0xff] %vm3192_vm3, %v5935_v44  ;;  %v5936_v63 = vmax.f32 %v5904_v36, 0.0 }
 0x6c6   : > { %5965 = vst.msk [vmem:[%s9831_s8 + $0x40] sm:$0xff] %vm3192_vm3, %v5933_v29  ;;  %v5934_v55 = vmax.f32 %v5902_v39, 0.0  ;;  %v7353_v40 = vpop.f32.mrb[12].mxu1 }
 0x6c7   : > { %5968 = vst.msk [vmem:[%s9831_s8 + $0x58] sm:$0xff] %vm3192_vm3, %v5936_v63  ;;  %v5868_v11 = vmul.f32 %v7353_v40, %v9817_v10  ;;  %v5736_v2 = vpop.f32.mrb[13].mxu1 }
 0x6c8   : > { %5966 = vst.msk [vmem:[%s9831_s8 + $0x48] sm:$0xff] %vm3192_vm3, %v5934_v55  ;;  %v5866_v26 = vmul.f32 %v9817_v10, %v5736_v2  ;;  %v7354_v51 = vpop.f32.mrb[14].mxu1 }
 0x6c9   : > { %v5907_v13 = vadd.f32 %v9819_v0, %v5868_v11  ;;  %v5869_v14 = vmul.f32 %v7354_v51, %v9817_v10  ;;  %v5739_v50 = vpop.f32.mrb[15].mxu1 }
 0x6ca   : > { %v5905_v18 = vadd.f32 %v9819_v0, %v5866_v26  ;;  %v5867_v4 = vmul.f32 %v9817_v10, %v5739_v50 }
 0x6cb   : > { %v5939_v45 = vmax.f32 %v5907_v13, 0.0  ;;  %v5908_v57 = vadd.f32 %v9819_v0, %v5869_v14 }
 0x6cc   : > { %v5937_v30 = vmax.f32 %v5905_v18, 0.0  ;;  %v5906_v47 = vadd.f32 %v9819_v0, %v5867_v4 }
 0x6cd   : > { %5971 = vst.msk [vmem:[%s9831_s8 + $0x70] sm:$0xff] %vm3192_vm3, %v5939_v45  ;;  %v5940_v16 = vmax.f32 %v5908_v57, 0.0 }
 0x6ce   : > { %5969 = vst.msk [vmem:[%s9831_s8 + $0x60] sm:$0xff] %vm3192_vm3, %v5937_v30  ;;  %v5938_v31 = vmax.f32 %v5906_v47, 0.0  ;;  %v7357_v20 = vpop.f32.mrb[16].mxu1 }
 0x6cf   : > { %5972 = vst.msk [vmem:[%s9831_s8 + $0x78] sm:$0xff] %vm3192_vm3, %v5940_v16  ;;  %v5872_v33 = vmul.f32 %v7357_v20, %v9817_v10  ;;  %v5752_v27 = vpop.f32.mrb[17].mxu1 }
 0x6d0   : > { %5970 = vst.msk [vmem:[%s9831_s8 + $0x68] sm:$0xff] %vm3192_vm3, %v5938_v31  ;;  %v5870_v32 = vmul.f32 %v9817_v10, %v5752_v27  ;;  %v7358_v15 = vpop.f32.mrb[18].mxu1 }
 0x6d1   : > { %v5911_v56 = vadd.f32 %v9819_v0, %v5872_v33  ;;  %v5873_v17 = vmul.f32 %v7358_v15, %v9817_v10  ;;  %v5755_v22 = vpop.f32.mrb[19].mxu1 }
 0x6d2   : > { %v5909_v34 = vadd.f32 %v9819_v0, %v5870_v32  ;;  %v5871_v35 = vmul.f32 %v9817_v10, %v5755_v22 }
 0x6d3   : > { %v5943_v3 = vmax.f32 %v5911_v56, 0.0  ;;  %v5912_v6 = vadd.f32 %v9819_v0, %v5873_v17 }
 0x6d4   : > { %v5941_v9 = vmax.f32 %v5909_v34, 0.0  ;;  %v5910_v43 = vadd.f32 %v9819_v0, %v5871_v35 }
 0x6d5   : > { %5975 = vst.msk [vmem:[%s9831_s8 + $0x90] sm:$0xff] %vm3192_vm3, %v5943_v3  ;;  %v5944_v48 = vmax.f32 %v5912_v6, 0.0 }
 0x6d6   : > { %5973 = vst.msk [vmem:[%s9831_s8 + $0x80] sm:$0xff] %vm3192_vm3, %v5941_v9  ;;  %v5942_v37 = vmax.f32 %v5910_v43, 0.0  ;;  %v7361_v21 = vpop.f32.mrb[20].mxu1 }
 0x6d7   : > { %5976 = vst.msk [vmem:[%s9831_s8 + $0x98] sm:$0xff] %vm3192_vm3, %v5944_v48  ;;  %v5876_v23 = vmul.f32 %v7361_v21, %v9817_v10  ;;  %v5768_v38 = vpop.f32.mrb[21].mxu1 }
 0x6d8   : > { %5974 = vst.msk [vmem:[%s9831_s8 + $0x88] sm:$0xff] %vm3192_vm3, %v5942_v37  ;;  %v5874_v52 = vmul.f32 %v9817_v10, %v5768_v38  ;;  %v7362_v24 = vpop.f32.mrb[22].mxu1 }
 0x6d9   : > { %v5915_v8 = vadd.f32 %v9819_v0, %v5876_v23  ;;  %v5877_v53 = vmul.f32 %v7362_v24, %v9817_v10  ;;  %v5771_v60 = vpop.f32.mrb[23].mxu1 }
 0x6da   : > { %v5913_v61 = vadd.f32 %v9819_v0, %v5874_v52  ;;  %v5875_v46 = vmul.f32 %v9817_v10, %v5771_v60 }
 0x6db   : > { %v5947_v7 = vmax.f32 %v5915_v8, 0.0  ;;  %v5916_v1 = vadd.f32 %v9819_v0, %v5877_v53 }
 0x6dc   : > { %v5945_v25 = vmax.f32 %v5913_v61, 0.0  ;;  %v5914_v12 = vadd.f32 %v9819_v0, %v5875_v46 }
 0x6dd   : > { %5979 = vst.msk [vmem:[%s9831_s8 + $0xb0] sm:$0xff] %vm3192_vm3, %v5947_v7  ;;  %v5948_v42 = vmax.f32 %v5916_v1, 0.0 }
 0x6de   : > { %5977 = vst.msk [vmem:[%s9831_s8 + $0xa0] sm:$0xff] %vm3192_vm3, %v5945_v25  ;;  %v5946_v49 = vmax.f32 %v5914_v12, 0.0  ;;  %v7365_v62 = vpop.f32.mrb[24].mxu1 }
 0x6df   : > { %5980 = vst.msk [vmem:[%s9831_s8 + $0xb8] sm:$0xff] %vm3192_vm3, %v5948_v42  ;;  %v5880_v5 = vmul.f32 %v7365_v62, %v9817_v10  ;;  %v5784_v54 = vpop.f32.mrb[25].mxu1 }
 0x6e0   : > { %5978 = vst.msk [vmem:[%s9831_s8 + $0xa8] sm:$0xff] %vm3192_vm3, %v5946_v49  ;;  %v5878_v41 = vmul.f32 %v9817_v10, %v5784_v54  ;;  %v7366_v58 = vpop.f32.mrb[26].mxu1 }
 0x6e1   : > { %v5919_v59 = vadd.f32 %v9819_v0, %v5880_v5  ;;  %v5881_v28 = vmul.f32 %v7366_v58, %v9817_v10  ;;  %v5787_v19 = vpop.f32.mrb[27].mxu1 }
 0x6e2   : > { %v5917_v44 = vadd.f32 %v9819_v0, %v5878_v41  ;;  %v5879_v36 = vmul.f32 %v9817_v10, %v5787_v19 }
 0x6e3   : > { %v5951_v29 = vmax.f32 %v5919_v59, 0.0  ;;  %v5920_v39 = vadd.f32 %v9819_v0, %v5881_v28 }
 0x6e4   : > { %v5949_v63 = vmax.f32 %v5917_v44, 0.0  ;;  %v5918_v55 = vadd.f32 %v9819_v0, %v5879_v36 }
 0x6e5   : > { %5983 = vst.msk [vmem:[%s9831_s8 + $0xd0] sm:$0xff] %vm3192_vm3, %v5951_v29  ;;  %v5952_v40 = vmax.f32 %v5920_v39, 0.0 }
 0x6e6   : > { %5981 = vst.msk [vmem:[%s9831_s8 + $0xc0] sm:$0xff] %vm3192_vm3, %v5949_v63  ;;  %v5950_v11 = vmax.f32 %v5918_v55, 0.0  ;;  %v7369_v2 = vpop.f32.mrb[28].mxu1 }
 0x6e7   : > { %5984 = vst.msk [vmem:[%s9831_s8 + $0xd8] sm:$0xff] %vm3192_vm3, %v5952_v40  ;;  %v5884_v26 = vmul.f32 %v7369_v2, %v9817_v10  ;;  %v5800_v51 = vpop.f32.mrb[29].mxu1 }
 0x6e8   : > { %5982 = vst.msk [vmem:[%s9831_s8 + $0xc8] sm:$0xff] %vm3192_vm3, %v5950_v11  ;;  %v5882_v13 = vmul.f32 %v9817_v10, %v5800_v51  ;;  %v7370_v14 = vpop.f32.mrb[30].mxu1 }
 0x6e9   : > { %v5923_v50 = vadd.f32 %v9819_v0, %v5884_v26  ;;  %v5885_v18 = vmul.f32 %v7370_v14, %v9817_v10  ;;  %v5803_v4 = vpop.f32.mrb[31].mxu1 }
 0x6ea   : > { %v5921_v45 = vadd.f32 %v9819_v0, %v5882_v13  ;;  %v5883_v57 = vmul.f32 %v9817_v10, %v5803_v4 }
 0x6eb   : > { %v5955_v30 = vmax.f32 %v5923_v50, 0.0  ;;  %v5924_v47 = vadd.f32 %v9819_v0, %v5885_v18 }
 0x6ec   : > { %v5953_v16 = vmax.f32 %v5921_v45, 0.0  ;;  %v5922_v31 = vadd.f32 %v9819_v0, %v5883_v57 }
 0x6ed   : > { %5987 = vst.msk [vmem:[%s9831_s8 + $0xf0] sm:$0xff] %vm3192_vm3, %v5955_v30  ;;  %v5956_v20 = vmax.f32 %v5924_v47, 0.0 }
 0x6ee   : > { %5985 = vst.msk [vmem:[%s9831_s8 + $0xe0] sm:$0xff] %vm3192_vm3, %v5953_v16  ;;  %v5954_v10 = vmax.f32 %v5922_v31, 0.0 }
 0x6ef   : > { %5988 = vst.msk [vmem:[%s9831_s8 + $0xf8] sm:$0xff] %vm3192_vm3, %v5956_v20 }
 0x6f0   : > { %5986 = vst.msk [vmem:[%s9831_s8 + $0xe8] sm:$0xff] %vm3192_vm3, %v5954_v10 }
 0x6f1   : > { %8228 = shalt.err (!%p8225_p8)
}
 0x6f2   : > { %s8229_s22 = scalar_lea.hbm %s9952_s10, 4096  ;;  %s8233_s8 = scalar_lea.hbm %s10011_s7, 8192 }
 0x6f3   : > { %p8230_p4 = scmp.ne.s32.totalorder %s9952_s10, %s8229_s22  ;;  %p8234_p3 = scmp.lt.u32.totalorder %s9952_s10, %s10011_s7 }
 0x6f4   : > { %p8235_p5 = scmp.lt.u32.totalorder %s8233_s8, %s8229_s22  ;;  %p8237_p6 = scmp.lt.u32.totalorder %s8229_s22, %s9952_s10 }
 0x6f5   : > { %p8231_p10 = pnand %p8230_p4, %p10031_p9 }
 0x6f6   : > { %p8236_p7 = por %p8235_p5, %p8234_p3 }
 0x6f7   : > { %p8232_p11 = pneg %p8231_p10 }
 0x6f8   : > { %p8238_p12 = por %p8237_p6, %p8236_p7 }
 0x6fa   : > { %p8239_p1 = pnand %p8238_p12, %p8232_p11 }
 0x6fc   : > { %8242 = shalt.err (!%p8239_p1)
}
 0x6fd   : > { %s8310_s11 = smov 128   ;;  %s8311_s15 = smov 8  }
 0x6fe   : > { %7927 = dma.vmem_to_hbm [thread:$0]  (%p10031_p9), %s9954_s13, 4096, %s9952_s10, %s5990_s30, %s8310_s11, %s8310_s11, %s8311_s15  }
 0x6ff PF: > { %s6018_s16 = sand.u32 1, %s8281_s24   ;;  %p10032_p13 = scmp.ne.s32.totalorder %s10022_s14, 0 }
 0x700   : > { %p10033_p0 = scmp.ge.s32.totalorder %s8293_s27, 2  ;;  %s6019_s20 = scalar_lea.sflag [#allocation6], %s6018_s16 }
 0x702   : > { %p7953_p2 = pnand %p10033_p0, %p10032_p13 }
 0x704   : > { %8276 = dma.done.wait (!%p7953_p2), %s6019_s20, 4096  }
 0x705   : > { %8278 = vsyncadd (!%p7953_p2), %s6019_s20, 4294963200  ;;  %p23_p8 = scmp.ge.s32.totalorder %s8538_s19, 4   ;;  %s10034_s24 = smov %s8285_s25 }
 0x706   : > { %s10035_s25 = smov %s8289_s26  ;;  %s10036_s26 = smov %s8549_s21 }
 0x707   : > { %s10037_s27 = smov %s8538_s19  ;;  %25 = sbr.rel (!%p23_p8) target bundleno = 8 (0x8), region = 121 }
 0x70e   :  { %6024 = vsyncpa [#allocation5], 1 }
 0x70f   :  { %6026 = vsyncpa [#allocation5 + $0x1], 1 }
 0x710   :  { %6027 = vsyncpa [#allocation8], 1 }
 0x711   :  { %6028 = vsyncpa [#allocation11], 1 }
 0x712   :  { %6029 = vsyncpa [#allocation14], 1 }
 0x713   :  { %6030 = vsyncpa [#allocation6], 1 }
 0x714   :  { %6032 = vsyncpa [#allocation6 + $0x1], 1 }

</bundles_post_ra>
